<compile_context>
chip_gen: v6e
topology: v6e:2x2x1
jax: 0.10.0
libtpu: 0.0.40
codegen_flags: <defaults>
</compile_context>

<pallas_src>
import math

import jax
import jax.numpy as jnp
from jax.experimental import pallas as pl
from jax.experimental.pallas import tpu as pltpu

STRIDE = 4
NUM_OUT_CH = 9          # md(3) | dis(1) | res(1) | jloc(2) | joff(2)
DIS_TH = 5.0            # self.distance_threshold (also the hafm decoding scale)
J2L_TH = 10.0           # self.j2l_threshold (compared against SQUARED distance, as in torch)
NUM_JUNCTIONS = 64      # topk junctions (small synthetic value; reference default 512)
JUNC_TH = 0.008         # junction_threshold_hm (probability space)
NEG = -1e30             # "minus infinity" for logit-space suppression

# packed plane layout of kernel 1's output (channel-major, lane-dense)
PK_JLOC = 4             # planes 0:4 = lines (x_st, y_st, x_ed, y_ed)
PK_JOFF = slice(5, 7)
PK_PLANES = 8           # plane 7 = unused residual logit (keeps the slab 8 sublanes tall)


def _pick_tile(n, max_tile):
    """Largest multiple-of-128 divisor of n that is <= max_tile, else n (full dim)."""
    if n <= max_tile:
        return n
    t = max_tile - (max_tile % 128)
    while t >= 128:
        if n % t == 0:
            return t
        t -= 128
    return n


# --------------------------------------------------------------------------------
# Kernel 1 (fused): patch-embed matmul (bf16 -> f32 acc) + head activations +
# hafm_decoding, emitted as ONE packed channel-major / lane-dense slab:
#   packed[:, 0:4]  -> lines (x_st, y_st, x_ed, y_ed) per pixel
#   packed[:, 4]    -> jloc logit   (sigmoid deferred; softmax(...)[1] == sigmoid(o6-o5))
#   packed[:, 5:7]  -> joff logits  (sigmoid deferred)
#   packed[:, 7]    -> residual logit (unused downstream; pad to 8 sublanes)
# --------------------------------------------------------------------------------
def backbone_head_decode(images, weight, bias):
    B, C, H, W = images.shape
    s = STRIDE
    Hs, Ws = H // s, W // s
    HW = Hs * Ws
    CKK = C * s * s

    # TODO(synk): fully fuse the stride-4 patch rearrangement into the kernel
    # (row-band BlockSpec on the raw image + in-VMEM strided reads) to remove this
    # XLA transpose round trip; for now the patch matrix is emitted in bf16 so both
    # the extra HBM traffic and the kernel's dominant read are halved.
    patches = (
        images.reshape(B, C, Hs, s, Ws, s)
        .transpose(0, 1, 3, 5, 2, 4)
        .reshape(B, CKK, HW)
        .astype(jnp.bfloat16)
    )
    w2d = weight.reshape(NUM_OUT_CH, CKK).astype(jnp.bfloat16)
    b2d = bias.reshape(NUM_OUT_CH, 1).astype(jnp.float32)

    # Precomputed pixel-coordinate planes: avoids per-tile int32 div/mod on the VALU.
    flat = jnp.arange(HW, dtype=jnp.int32)
    coords = jnp.stack(
        [(flat % Ws).astype(jnp.float32), (flat // Ws).astype(jnp.float32)], axis=0
    )  # (2, HW)

    THW = _pick_tile(HW, 2048)          # big lane tile -> fewer ~0.35us grid steps
    nT = HW // THW
    pi = float(math.pi)

    def kernel(p_ref, w_ref, b_ref, c_ref, out_ref):
        # (9, CKK)bf16 @ (CKK, THW)bf16 -> (9, THW) f32 on the MXU (spatial axis in lanes).
        o = jnp.dot(w_ref[...], p_ref[0], preferred_element_type=jnp.float32) + b_ref[...]

        jloc_logit = o[6:7, :] - o[5:6, :]      # softmax(o5,o6)[1] == sigmoid(o6 - o5)
        joff_logit = o[7:9, :]

        md = jax.nn.sigmoid(o[0:4, :])          # md0, md1, md2, dis in one EUP pass
        dist = jnp.clip(md[3:4, :], 0.0, 1.0)
        md_un = (md[0:1, :] - 0.5) * (2.0 * pi)
        cs = jnp.cos(md_un)
        ss = jnp.sin(md_un)
        # clamp just below pi/2: tan stays finite (the torch reference can emit inf/NaN here)
        ang = jnp.minimum(md[1:3, :] * (pi * 0.5), pi * 0.5 - 1e-4)
        tan = jnp.sin(ang) * pl.reciprocal(jnp.cos(ang), approx=True)
        y_st = tan[0:1, :]
        y_ed = -tan[1:2, :]                     # tan(-x) = -tan(x)

        dsc = dist * jnp.float32(DIS_TH)
        x0 = c_ref[0:1, :]
        y0 = c_ref[1:2, :]
        x_st = jnp.clip((cs - ss * y_st) * dsc + x0, 0.0, float(Ws - 1))
        y_st2 = jnp.clip((ss + cs * y_st) * dsc + y0, 0.0, float(Hs - 1))
        x_ed = jnp.clip((cs - ss * y_ed) * dsc + x0, 0.0, float(Ws - 1))
        y_ed2 = jnp.clip((ss + cs * y_ed) * dsc + y0, 0.0, float(Hs - 1))

        # One full-sublane, lane-dense (8, THW) store (no masked vst, one DMA stream).
        out_ref[0] = jnp.concatenate(
            [x_st, y_st2, x_ed, y_ed2, jloc_logit, joff_logit, o[4:5, :]], axis=0)

    packed = pl.pallas_call(
        kernel,
        grid=(B, nT),
        in_specs=[
            pl.BlockSpec((1, CKK, THW), lambda b, t: (b, 0, t)),
            pl.BlockSpec((NUM_OUT_CH, CKK), lambda b, t: (0, 0)),
            pl.BlockSpec((NUM_OUT_CH, 1), lambda b, t: (0, 0)),
            pl.BlockSpec((2, THW), lambda b, t: (0, t)),
        ],
        out_specs=pl.BlockSpec((1, PK_PLANES, THW), lambda b, t: (b, 0, t)),
        out_shape=jax.ShapeDtypeStruct((B, PK_PLANES, HW), jnp.float32),
        compiler_params=pltpu.CompilerParams(
            dimension_semantics=("parallel", "parallel")),
    )(patches, w2d, b2d, coords)
    return packed, Hs, Ws


# --------------------------------------------------------------------------------
# Kernel 2: non_maximum_suppression (3x3 max-pool NMS) in LOGIT space.
# Separable 3-window max via XLU rolls + iota border masks (no slice/concat copies).
# Suppressed pixels are set to NEG (sigmoid(NEG) == 0), equivalent to the reference's
# probability-domain `a * mask` for top_k / thresholding / scores.
# --------------------------------------------------------------------------------
def non_maximum_suppression_logits(jloc_logit_2d):
    B, _, Hs, Ws = jloc_logit_2d.shape
    # TODO(synk): for small feature maps (Ws < 128) this (Hs, Ws) layout is lane-sparse;
    # production 512-px inputs give Ws >= 128 where every vld/vst is fully dense.

    def kernel(x_ref, o_ref):
        x = x_ref[0, 0]                                          # (Hs, Ws) logits
        col = jax.lax.broadcasted_iota(jnp.int32, (Hs, Ws), 1)
        row = jax.lax.broadcasted_iota(jnp.int32, (Hs, Ws), 0)

        def window3_max(a, idx, size, axis):
            # 3-wide max along `axis` with -inf borders. Rolling the index plane
            # alongside the data makes the wraparound masking independent of the
            # roll direction convention.
            a1, i1 = pltpu.roll(a, 1, axis), pltpu.roll(idx, 1, axis)
            a2, i2 = pltpu.roll(a, size - 1, axis), pltpu.roll(idx, size - 1, axis)
            n1 = jnp.where(jnp.abs(i1 - idx) == 1, a1, NEG)
            n2 = jnp.where(jnp.abs(i2 - idx) == 1, a2, NEG)
            return jnp.maximum(a, jnp.maximum(n1, n2))

        mw = window3_max(x, col, Ws, 1)      # horizontal 3-max
        m = window3_max(mw, row, Hs, 0)      # then vertical -> full 3x3 max (incl. center)
        o_ref[0, 0] = jnp.where(x >= m, x, NEG)

    return pl.pallas_call(
        kernel,
        grid=(B,),
        in_specs=[pl.BlockSpec((1, 1, Hs, Ws), lambda b: (b, 0, 0, 0))],
        out_specs=pl.BlockSpec((1, 1, Hs, Ws), lambda b: (b, 0, 0, 0)),
        out_shape=jax.ShapeDtypeStruct((B, 1, Hs, Ws), jnp.float32),
        compiler_params=pltpu.CompilerParams(dimension_semantics=("parallel",)),
    )(jloc_logit_2d)


# --------------------------------------------------------------------------------
# get_junctions (batched): top_k in logit space, sigmoid only on the K gathered values.
# --------------------------------------------------------------------------------
def get_junctions_batched(jloc_nms_logit_flat, joff_logit, topk, th, Ws):
    # jloc_nms_logit_flat: (B, HW) logits; joff_logit: (B, 2, HW) raw logits
    scores_logit, index = jax.lax.top_k(jloc_nms_logit_flat, topk)      # (B, K)
    scores = jax.nn.sigmoid(scores_logit)                               # prob space
    joff0 = jax.nn.sigmoid(jnp.take_along_axis(joff_logit[:, 0, :], index, axis=1)) - 0.5
    joff1 = jax.nn.sigmoid(jnp.take_along_axis(joff_logit[:, 1, :], index, axis=1)) - 0.5
    x = (index % Ws).astype(jnp.float32) + joff0 + 0.5
    y = (index // Ws).astype(jnp.float32) + joff1 + 0.5
    juncs = jnp.stack((x, y), axis=-1)                                  # (B, K, 2)
    valid = scores > th
    return juncs, scores, valid


# --------------------------------------------------------------------------------
# Kernel 3: batched wireframe_matcher hot path.
# grid = (B, P, L-tiles): pairwise junction/endpoint cost + argmin per tile, plus the
# KxK half-graph built with a bf16 one-hot MXU matmul accumulated in the output ref
# (== the reference's scatter-add of per-pair counts).  The extra parallel P axis
# keeps both v7x TensorCores busy at batch 1; partial graphs are summed in the wrapper.
# --------------------------------------------------------------------------------
def wireframe_matcher_batched(juncs_masked, packed):
    # juncs_masked: (B, K, 2) (invalid junctions pushed to 1e6)
    # packed:       (B, 8, L) -- rows 0..3 are the per-pixel line endpoints
    B, K, _ = juncs_masked.shape
    L = packed.shape[2]
    TL = _pick_tile(L, 256)                     # 256 keeps the (K, TL) temporaries in vregs
    nL = L // TL
    P = 2 if (nL % 2 == 0 and nL >= 2) else 1   # parallel outer split for v7x's 2 TCs
    nLi = nL // P

    def kernel(j_ref, l_ref, keep_ref, idx_ref, graph_ref):
        @pl.when(pl.program_id(2) == 0)
        def _():
            graph_ref[...] = jnp.zeros_like(graph_ref)

        j = j_ref[0]                       # (K, 2)
        lt = l_ref[0]                      # (8, TL); rows 0..3: x_st, y_st, x_ed, y_ed
        jx = j[:, 0:1]                     # (K, 1)
        jy = j[:, 1:2]
        kidx = jax.lax.broadcasted_iota(jnp.int32, (K, TL), 0)

        def endpoint(xi, yi):
            dx = lt[xi:xi + 1, :] - jx     # (K, TL)
            dy = lt[yi:yi + 1, :] - jy
            c = dx * dx + dy * dy
            cmin = jnp.min(c, axis=0, keepdims=True)                       # (1, TL)
            imin = jnp.min(jnp.where(c == cmin, kidx, K), axis=0, keepdims=True)
            return cmin, imin

        c1, i1 = endpoint(0, 1)
        c2, i2 = endpoint(2, 3)
        imin = jnp.minimum(i1, i2)
        imax = jnp.maximum(i1, i2)
        keep = (imin < imax) & (c1 < J2L_TH) & (c2 < J2L_TH)
        keep_f = keep.astype(jnp.float32)

        keep_ref[0] = keep_f
        idx_ref[0] = jnp.concatenate([imin, imax], axis=0)                 # one (2, TL) store

        # Upper-half graph via one-hot MXU matmul (replaces XLA scatter-add):
        #   G[a, b] += sum_l keep_l * [imin_l == a] * [imax_l == b]
        # bf16 one-hots are exact (values in {0,1}) and halve vreg pressure.
        oh_min = jnp.where(kidx == imin, keep_f, 0.0).astype(jnp.bfloat16)  # (K, TL)
        oh_max = (kidx == imax).astype(jnp.bfloat16)                        # (K, TL)
        graph_ref[0, 0] += jax.lax.dot_general(
            oh_min, oh_max, (((1,), (1,)), ((), ())),
            preferred_element_type=jnp.float32)

    keep_f, idx2, graph_part = pl.pallas_call(
        kernel,
        grid=(B, P, nLi),
        in_specs=[
            pl.BlockSpec((1, K, 2), lambda b, p, l: (b, 0, 0)),
            pl.BlockSpec((1, PK_PLANES, TL), lambda b, p, l: (b, 0, p * nLi + l)),
        ],
        out_specs=[
            pl.BlockSpec((1, 1, TL), lambda b, p, l: (b, 0, p * nLi + l)),
            pl.BlockSpec((1, 2, TL), lambda b, p, l: (b, 0, p * nLi + l)),
            pl.BlockSpec((1, 1, K, K), lambda b, p, l: (b, p, 0, 0)),   # accumulator across l
        ],
        out_shape=[
            jax.ShapeDtypeStruct((B, 1, L), jnp.float32),
            jax.ShapeDtypeStruct((B, 2, L), jnp.int32),
            jax.ShapeDtypeStruct((B, P, K, K), jnp.float32),
        ],
        compiler_params=pltpu.CompilerParams(
            dimension_semantics=("parallel", "parallel", "arbitrary")),
    )(juncs_masked, packed)
    graph_half = jnp.sum(graph_part, axis=1)                            # (B, K, K)
    return keep_f, idx2, graph_half


# --------------------------------------------------------------------------------
# forward_test (use_lsd=False branch; cv2 LSD path is not translatable).
# --------------------------------------------------------------------------------
def scale_lsd_forward_test(images, params, annotations):
    B = images.shape[0]
    packed, Hs, Ws = backbone_head_decode(images, params["w"], params["b"])
    HW = Hs * Ws

    jloc_logit = packed[:, PK_JLOC, :]            # (B, HW)
    joff_logit = packed[:, PK_JOFF, :]            # (B, 2, HW)

    if annotations["use_nms"]:
        jloc_nms = non_maximum_suppression_logits(jloc_logit.reshape(B, 1, Hs, Ws))
        jloc_nms_flat = jloc_nms.reshape(B, HW)
    else:
        jloc_nms_flat = jloc_logit                # kernel_size=1 NMS is the identity

    # TODO(synk): PyTorch uses a data-dependent junction count (threshold + topk);
    # here K is static and below-threshold junctions are masked / pushed far away.
    juncs, jscore, valid = get_junctions_batched(
        jloc_nms_flat, joff_logit, NUM_JUNCTIONS, JUNC_TH, Ws)
    juncs_masked = jnp.where(valid[..., None], juncs, 1e6)

    keep_f, idx2, graph_half = wireframe_matcher_batched(juncs_masked, packed)
    keep = keep_f[:, 0, :] > 0.5                       # (B, L)
    idx_min = idx2[:, 0, :]
    idx_max = idx2[:, 1, :]
    # matches the reference: graph[a, b] and graph[b, a] both get the per-pair line count
    graph = graph_half + jnp.swapaxes(graph_half, 1, 2)

    p1 = jnp.take_along_axis(juncs, idx_min[..., None], axis=1)   # (B, L, 2)
    p2 = jnp.take_along_axis(juncs, idx_max[..., None], axis=1)
    lines_adj = jnp.concatenate([p1, p2], axis=-1)                # (B, L, 4)

    jscales = jnp.array(
        [annotations["width"] / Ws, annotations["height"] / Hs], jnp.float32)
    junctions_scaled = juncs * jscales
    lines_scaled = lines_adj * jnp.concatenate([jscales, jscales])

    output_list = []
    for i in range(B):
        # TODO(synk): triu().nonzero(), torch.unique/split (lines_support) are
        # dynamic-shape ops with no static-shape Pallas/JAX equivalent; the dense
        # graph + keep-mask carry the same information.
        output_list.append(
            {
                "lines_pred": lines_scaled[i],
                "lines_keep": keep[i],
                "juncs_pred": junctions_scaled[i],
                "juncs_score": jscore[i],
                "graph": graph[i],
                "width": annotations["width"],
                "height": annotations["height"],
            }
        )
    return output_list, {}


if __name__ == "__main__":
    key = jax.random.PRNGKey(0)
    k_img, k_w, k_b = jax.random.split(key, 3)
    B, C, H, W = 2, 3, 128, 128          # feature map 32x32, HW=1024 -> exercises matcher tiling
    images = jax.random.uniform(k_img, (B, C, H, W), jnp.float32)
    # deterministic synthetic backbone parameters (stride-4 conv, 9 out channels)
    w = 0.1 * jax.random.normal(k_w, (NUM_OUT_CH, C, STRIDE, STRIDE), jnp.float32)
    b = 0.1 * jax.random.normal(k_b, (NUM_OUT_CH,), jnp.float32)
    params = {"w": w, "b": b}
    annotations = {"use_lsd": False, "use_nms": True, "width": W, "height": H}

    output_list, extra = scale_lsd_forward_test(images, params, annotations)
    jax.block_until_ready(output_list)
    print("KERNEL_OK")
</pallas_src>

<mosaic_0001>
module attributes {stable_mosaic.version = 11 : i64} {
  func.func @kernel(%arg0: i32, %arg1: i32, %arg2: memref<1x48x1024xbf16, #tpu.memory_space<vmem>>, %arg3: memref<9x48xbf16, #tpu.memory_space<vmem>>, %arg4: memref<9x1xf32, #tpu.memory_space<vmem>>, %arg5: memref<2x1024xf32, #tpu.memory_space<vmem>>, %arg6: memref<1x8x1024xf32, #tpu.memory_space<vmem>>) attributes {dimension_semantics = [#tpu.dimension_semantics<parallel>, #tpu.dimension_semantics<parallel>], iteration_bounds = array<i64: 2, 1>, scalar_prefetch = 0 : i64, scratch_operands = 0 : i64, tpu.core_type = #tpu.core_type<tc>, window_params = [{transform_indices = @transform_0, window_bounds = array<i64: 1, 48, 1024>}, {pipeline_mode = #tpu.pipeline_mode<synchronous>, transform_indices = @transform_1, window_bounds = array<i64: 9, 48>}, {pipeline_mode = #tpu.pipeline_mode<synchronous>, transform_indices = @transform_2, window_bounds = array<i64: 9, 1>}, {transform_indices = @transform_3, window_bounds = array<i64: 2, 1024>}, {transform_indices = @transform_4, window_bounds = array<i64: 1, 8, 1024>}]} {
    %c0 = arith.constant 0 : index
    %c0_0 = arith.constant 0 : index
    %0 = vector.load %arg3[%c0, %c0_0] : memref<9x48xbf16, #tpu.memory_space<vmem>>, vector<9x48xbf16>
    %c0_1 = arith.constant 0 : index
    %c0_2 = arith.constant 0 : index
    %c0_3 = arith.constant 0 : index
    %1 = vector.load %arg2[%c0_1, %c0_2, %c0_3] : memref<1x48x1024xbf16, #tpu.memory_space<vmem>>, vector<1x48x1024xbf16>
    %2 = vector.shape_cast %1 : vector<1x48x1024xbf16> to vector<48x1024xbf16>
    %cst = arith.constant dense<0.000000e+00> : vector<9x1024xf32>
    %3 = tpu.matmul %0, %2, %cst {dimension_numbers = #tpu.dot_dimension_numbers<[1], [0], [0], [1], [0, 0, 1, 1], [], []>} : vector<9x48xbf16>, vector<48x1024xbf16>, vector<9x1024xf32> -> vector<9x1024xf32>
    %c0_4 = arith.constant 0 : index
    %c0_5 = arith.constant 0 : index
    %4 = vector.load %arg4[%c0_4, %c0_5] : memref<9x1xf32, #tpu.memory_space<vmem>>, vector<9x1xf32>
    %5 = vector.broadcast %4 : vector<9x1xf32> to vector<9x1024xf32>
    %6 = arith.addf %3, %5 : vector<9x1024xf32>
    %7 = vector.extract_strided_slice %6 {offsets = [6, 0], sizes = [1, 1024], strides = [1, 1]} : vector<9x1024xf32> to vector<1x1024xf32>
    %8 = vector.extract_strided_slice %6 {offsets = [5, 0], sizes = [1, 1024], strides = [1, 1]} : vector<9x1024xf32> to vector<1x1024xf32>
    %9 = arith.subf %7, %8 : vector<1x1024xf32>
    %10 = vector.extract_strided_slice %6 {offsets = [7, 0], sizes = [2, 1024], strides = [1, 1]} : vector<9x1024xf32> to vector<2x1024xf32>
    %11 = vector.extract_strided_slice %6 {offsets = [0, 0], sizes = [4, 1024], strides = [1, 1]} : vector<9x1024xf32> to vector<4x1024xf32>
    %12 = arith.negf %11 : vector<4x1024xf32>
    %13 = math.exp %12 : vector<4x1024xf32>
    %cst_6 = arith.constant 1.000000e+00 : f32
    %14 = vector.broadcast %cst_6 : f32 to vector<4x1024xf32>
    %15 = arith.addf %14, %13 : vector<4x1024xf32>
    %16 = arith.divf %14, %15 : vector<4x1024xf32>
    %17 = vector.extract_strided_slice %16 {offsets = [3, 0], sizes = [1, 1024], strides = [1, 1]} : vector<4x1024xf32> to vector<1x1024xf32>
    %cst_7 = arith.constant 0.000000e+00 : f32
    %cst_8 = arith.constant 1.000000e+00 : f32
    %18 = vector.broadcast %cst_7 : f32 to vector<1x1024xf32>
    %19 = arith.maximumf %18, %17 : vector<1x1024xf32>
    %20 = vector.broadcast %cst_8 : f32 to vector<1x1024xf32>
    %21 = arith.minimumf %20, %19 : vector<1x1024xf32>
    %22 = vector.extract_strided_slice %16 {offsets = [0, 0], sizes = [1, 1024], strides = [1, 1]} : vector<4x1024xf32> to vector<1x1024xf32>
    %cst_9 = arith.constant 5.000000e-01 : f32
    %23 = vector.broadcast %cst_9 : f32 to vector<1x1024xf32>
    %24 = arith.subf %22, %23 : vector<1x1024xf32>
    %cst_10 = arith.constant 6.28318548 : f32
    %25 = vector.broadcast %cst_10 : f32 to vector<1x1024xf32>
    %26 = arith.mulf %24, %25 : vector<1x1024xf32>
    %27 = math.cos %26 : vector<1x1024xf32>
    %28 = math.sin %26 : vector<1x1024xf32>
    %29 = vector.extract_strided_slice %16 {offsets = [1, 0], sizes = [2, 1024], strides = [1, 1]} : vector<4x1024xf32> to vector<2x1024xf32>
    %cst_11 = arith.constant 1.57079637 : f32
    %30 = vector.broadcast %cst_11 : f32 to vector<2x1024xf32>
    %31 = arith.mulf %29, %30 : vector<2x1024xf32>
    %cst_12 = arith.constant 1.57069635 : f32
    %32 = vector.broadcast %cst_12 : f32 to vector<2x1024xf32>
    %33 = arith.minimumf %31, %32 : vector<2x1024xf32>
    %34 = math.sin %33 : vector<2x1024xf32>
    %35 = math.cos %33 : vector<2x1024xf32>
    %36 = tpu.reciprocal %35 {approx = true} : vector<2x1024xf32> -> vector<2x1024xf32>
    %37 = arith.mulf %34, %36 : vector<2x1024xf32>
    %38 = vector.extract_strided_slice %37 {offsets = [0, 0], sizes = [1, 1024], strides = [1, 1]} : vector<2x1024xf32> to vector<1x1024xf32>
    %39 = vector.extract_strided_slice %37 {offsets = [1, 0], sizes = [1, 1024], strides = [1, 1]} : vector<2x1024xf32> to vector<1x1024xf32>
    %cst_13 = arith.constant 0.000000e+00 : f32
    %40 = vector.broadcast %cst_13 : f32 to vector<1x1024xf32>
    %41 = arith.subf %40, %39 : vector<1x1024xf32>
    %cst_14 = arith.constant 5.000000e+00 : f32
    %42 = vector.broadcast %cst_14 : f32 to vector<1x1024xf32>
    %43 = arith.mulf %21, %42 : vector<1x1024xf32>
    %c0_15 = arith.constant 0 : index
    %c0_16 = arith.constant 0 : index
    %44 = vector.load %arg5[%c0_15, %c0_16] : memref<2x1024xf32, #tpu.memory_space<vmem>>, vector<1x1024xf32>
    %c1 = arith.constant 1 : index
    %c0_17 = arith.constant 0 : index
    %45 = vector.load %arg5[%c1, %c0_17] : memref<2x1024xf32, #tpu.memory_space<vmem>>, vector<1x1024xf32>
    %46 = arith.mulf %28, %38 : vector<1x1024xf32>
    %47 = arith.subf %27, %46 : vector<1x1024xf32>
    %48 = arith.mulf %47, %43 : vector<1x1024xf32>
    %49 = arith.addf %48, %44 : vector<1x1024xf32>
    %cst_18 = arith.constant 0.000000e+00 : f32
    %cst_19 = arith.constant 3.100000e+01 : f32
    %50 = vector.broadcast %cst_18 : f32 to vector<1x1024xf32>
    %51 = arith.maximumf %50, %49 : vector<1x1024xf32>
    %52 = vector.broadcast %cst_19 : f32 to vector<1x1024xf32>
    %53 = arith.minimumf %52, %51 : vector<1x1024xf32>
    %54 = arith.mulf %27, %38 : vector<1x1024xf32>
    %55 = arith.addf %28, %54 : vector<1x1024xf32>
    %56 = arith.mulf %55, %43 : vector<1x1024xf32>
    %57 = arith.addf %56, %45 : vector<1x1024xf32>
    %cst_20 = arith.constant 0.000000e+00 : f32
    %cst_21 = arith.constant 3.100000e+01 : f32
    %58 = vector.broadcast %cst_20 : f32 to vector<1x1024xf32>
    %59 = arith.maximumf %58, %57 : vector<1x1024xf32>
    %60 = vector.broadcast %cst_21 : f32 to vector<1x1024xf32>
    %61 = arith.minimumf %60, %59 : vector<1x1024xf32>
    %62 = arith.mulf %28, %41 : vector<1x1024xf32>
    %63 = arith.subf %27, %62 : vector<1x1024xf32>
    %64 = arith.mulf %63, %43 : vector<1x1024xf32>
    %65 = arith.addf %64, %44 : vector<1x1024xf32>
    %cst_22 = arith.constant 0.000000e+00 : f32
    %cst_23 = arith.constant 3.100000e+01 : f32
    %66 = vector.broadcast %cst_22 : f32 to vector<1x1024xf32>
    %67 = arith.maximumf %66, %65 : vector<1x1024xf32>
    %68 = vector.broadcast %cst_23 : f32 to vector<1x1024xf32>
    %69 = arith.minimumf %68, %67 : vector<1x1024xf32>
    %70 = arith.mulf %27, %41 : vector<1x1024xf32>
    %71 = arith.addf %28, %70 : vector<1x1024xf32>
    %72 = arith.mulf %71, %43 : vector<1x1024xf32>
    %73 = arith.addf %72, %45 : vector<1x1024xf32>
    %cst_24 = arith.constant 0.000000e+00 : f32
    %cst_25 = arith.constant 3.100000e+01 : f32
    %74 = vector.broadcast %cst_24 : f32 to vector<1x1024xf32>
    %75 = arith.maximumf %74, %73 : vector<1x1024xf32>
    %76 = vector.broadcast %cst_25 : f32 to vector<1x1024xf32>
    %77 = arith.minimumf %76, %75 : vector<1x1024xf32>
    %78 = vector.extract_strided_slice %6 {offsets = [4, 0], sizes = [1, 1024], strides = [1, 1]} : vector<9x1024xf32> to vector<1x1024xf32>
    %79 = tpu.concatenate %53, %61, %69, %77, %9, %10, %78 in 0 : vector<1x1024xf32>, vector<1x1024xf32>, vector<1x1024xf32>, vector<1x1024xf32>, vector<1x1024xf32>, vector<2x1024xf32>, vector<1x1024xf32> -> vector<8x1024xf32>
    %c0_26 = arith.constant 0 : index
    %c0_27 = arith.constant 0 : index
    %c0_28 = arith.constant 0 : index
    %80 = vector.load %arg6[%c0_26, %c0_27, %c0_28] : memref<1x8x1024xf32, #tpu.memory_space<vmem>>, vector<1x8x1024xf32>
    %81 = vector.shape_cast %80 : vector<1x8x1024xf32> to vector<8x1024xf32>
    %82 = vector.shape_cast %79 : vector<8x1024xf32> to vector<1x8x1024xf32>
    tpu.vector_store %arg6[%c0_26, %c0_27, %c0_28], %82 {strides = array<i32>} : memref<1x8x1024xf32, #tpu.memory_space<vmem>>, vector<1x8x1024xf32>,
    return
  }
  func.func @transform_0(%arg0: i32, %arg1: i32) -> (i32, i32, i32) {
    %c0_i32 = arith.constant 0 : i32
    %c0_i32_0 = arith.constant 0 : i32
    return %arg0, %c0_i32, %arg1 : i32, i32, i32
  }
  func.func @transform_1(%arg0: i32, %arg1: i32) -> (i32, i32) {
    %c0_i32 = arith.constant 0 : i32
    %c0_i32_0 = arith.constant 0 : i32
    %c0_i32_1 = arith.constant 0 : i32
    return %c0_i32, %c0_i32_0 : i32, i32
  }
  func.func @transform_2(%arg0: i32, %arg1: i32) -> (i32, i32) {
    %c0_i32 = arith.constant 0 : i32
    %c0_i32_0 = arith.constant 0 : i32
    %c0_i32_1 = arith.constant 0 : i32
    return %c0_i32, %c0_i32_0 : i32, i32
  }
  func.func @transform_3(%arg0: i32, %arg1: i32) -> (i32, i32) {
    %c0_i32 = arith.constant 0 : i32
    %c0_i32_0 = arith.constant 0 : i32
    return %c0_i32, %arg1 : i32, i32
  }
  func.func @transform_4(%arg0: i32, %arg1: i32) -> (i32, i32, i32) {
    %c0_i32 = arith.constant 0 : i32
    %c0_i32_0 = arith.constant 0 : i32
    return %arg0, %c0_i32, %arg1 : i32, i32, i32
  }
}

</mosaic_0001>

<bundles_post_ra>
// kernel: tpu_custom_call.1
= control target key start
LH: loop header
LB: loop body
LE: loop exit
PB: predicated region body
PF: predicated region fallthrough
CT: control target
= control target key end

     0   :  { %9 = vsyncpa [#allocation3], 0  ;;  %s7479_s0 = inlined_call_operand.hbm [shape: bf16[2,48,1024], index: 0, kind: input, shape index: {}]   ;;  %s7480_s1 = inlined_call_operand.hbm [shape: bf16[9,48], index: 1, kind: input, shape index: {}]   ;;  %s7481_s2 = inlined_call_operand.vmem [shape: f32[9,1], index: 2, kind: input, shape index: {}]   ;;  %s7482_s3 = inlined_call_operand.vmem [shape: f32[2,1024], index: 3, kind: input, shape index: {}]   ;;  %s7483_s4 = inlined_call_operand.hbm [shape: f32[2,8,1024], index: 4, kind: output, shape index: {}]  }
   0x1   :  { %11 = vsyncpa [#allocation3 + $0x1], 0 }
   0x2   :  { %12 = vsyncpa [#allocation6], 0 }
   0x3   :  { %13 = vsyncpa [#allocation4], 0 }
   0x4   :  { %15 = vsyncpa [#allocation4 + $0x1], 0  ;;  %s5413_s15 = smov 0   ;;  %s5415_s16 = smov 0  }
   0x5   :  { %s5417_s17 = smov 0   ;;  %s5419_s18 = smov 0  }
   0x6   :  { %s5421_s19 = smov 0   ;;  %s5423_s20 = smov 0  }
   0x7 LB: > { %s4775_s21 = sadd.s32 4294967295, %s5372_s20   ;;  %s4776_s22 = sadd.s32 4294967294, %s5372_s20   ;;  %s5372_s20 = sphi %s5423_s20, %s21_s20   ;;  %s5368_s19 = sphi %s5421_s19, %s7573_s19   ;;  %s5364_s18 = sphi %s5419_s18, %s7572_s18   ;;  %s5360_s17 = sphi %s5417_s17, %s7571_s17   ;;  %s5356_s16 = sphi %s5415_s16, %s7570_s16   ;;  %s5352_s15 = sphi %s5413_s15, %s7569_s15  }
   0x8   : > { %p55_p0 = scmp.ne.s32.totalorder %s5356_s16, %s5352_s15  ;;  %p5447_p1 = scmp.eq.s32.totalorder %s4775_s21, 0 }
   0x9   : > { %p5451_p2 = scmp.eq.s32.totalorder %s4775_s21, 1  ;;  %p155_p3 = scmp.eq.s32.totalorder %s4776_s22, 1 }
   0xa   : > { %p5457_p4 = por %p5447_p1, %p55_p0  ;;  %p4777_p5 = scmp.ge.s32.totalorder %s5372_s20, 1 }
   0xb   : > { %p5462_p6 = por %p155_p3, %p55_p0  ;;  %p162_p7 = scmp.lt.s32.totalorder %s5372_s20, 3 }
   0xc   : > { %s7504_s25 = scalar_select %p5457_p4, 1, 0 }
   0xd   : > { %s7505_s26 = scalar_select %p5462_p6, 1, 0 }
   0xe   : > { %p5467_p8 = pnand %p4777_p5, %p162_p7  ;;  %s5374_s28 = smov [#allocation5]  }
   0xf   : > { %s174_s29 = sshll.u32 %s5374_s28, 4  ;;  %p4780_p10 = scmp.ge.s32.totalorder %s5372_s20, 2  ;;  %s175_s29 = int_to_ptr.vmem [resolvable:$true] %s174_s29 }
  0x10   : > { %p5040_p9 = pneg %p5467_p8  ;;  %s33_s5 = sadd.s32 1, %s5368_s19 }
  0x11   : > { %s5245_s6 = scalar_lea.vmem %s175_s29, 128  ;;  %p5253_p5 = scmp.lt.s32.totalorder %s175_s29, %s175_s29 }
  0x12   : > { %p5476_p11 = pnand %p5040_p9, %p5447_p1  ;;  %p5246_p13 = scmp.ne.s32.totalorder %s175_s29, %s5245_s6 }
  0x13   : > { %p5254_p7 = scmp.lt.s32.totalorder %s5245_s6, %s5245_s6 }
  0x14   : > { %p5236_p12 = pneg %p5476_p11 }
  0x15   : > { %p5255_p6 = por %p5254_p7, %p5253_p5 }
  0x16   : > { %p5248_p0 = pnand %p5246_p13, %p5236_p12 }
  0x18   : > { %p5249_p3 = pneg %p5248_p0 }
  0x1a   : > { %p5256_p4 = pnand %p5255_p6, %p5249_p3 }
  0x1c   : > { %5259 = shalt.err (!%p5256_p4)
}
  0x1d   : > { %s5375_s7 = smov 64   ;;  %s5376_s8 = smov 4  }
  0x1e   : > { %5043 = dma.hbm_to_vmem [thread:$0]  (!%p5476_p11), %s7480_s1, 128, %s175_s29, [#allocation6], %s5375_s7, %s5375_s7, %s5376_s8  }
  0x1f   : > { %p35_p6 = scmp.ge.s32.totalorder %s33_s5, 2  ;;  %s42_s11 = sadd.s32 1, %s5360_s17 }
  0x20   : > { %p49_p4 = scmp.ne.s32.totalorder %s5360_s17, %s5356_s16  ;;  %p50_p9 = scmp.eq.s32.totalorder %s5372_s20, 0 }
  0x21   : > { %s7575_s5 = smov (%p35_p6, %s33_s5), 0  ;;  %p5053_p0 = scmp.lt.s32.totalorder %s5372_s20, 2 }
  0x22   : > { %p51_p12 = por %p50_p9, %p49_p4  ;;  %p5496_p13 = por %p5451_p2, %p49_p4 }
  0x23   : > { %s37_s13 = ssub.s32 %s5368_s19, %s7575_s5  ;;  %s200_s14 = sand.u32 1, %s5360_s17  }
  0x24   : > { %p40_p3 = scmp.eq.s32.totalorder %s37_s13, 0  ;;  %s4965_s21 = smul.u32 192, %s200_s14 }
  0x25   : > { %s4966_s28 = smul.u32 3072, %s5368_s19  ;;  %p5508_p11 = pnand %p5053_p0, %p51_p12 }
  0x26   : > { %s5505_s22 = scalar_select %p40_p3, %s5360_s17, %s42_s11  }
  0x27   : > { %s204_s29 = scalar_lea.vmem [#allocation2], %s4965_s21  ;;  %s212_s8 = scalar_lea.hbm %s7479_s0, %s4966_s28 }
  0x28   : > { %s213_s30 = sshll.u32 %s204_s29, 4  ;;  %s201_s9 = scalar_lea.sflag [#allocation3], %s200_s14  ;;  %s214_s30 = int_to_ptr.vmem [resolvable:$true] %s213_s30 }
  0x29   : > { %p5262_p2 = pneg %p5508_p11  ;;  %s5273_s10 = scalar_lea.vmem %s214_s30, 3072 }
  0x2a   : > { %p5274_p5 = scmp.ne.s32.totalorder %s214_s30, %s5273_s10  ;;  %s5377_s11 = smov [#allocation2]  }
  0x2b   : > { %s5278_s13 = sshll.u32 %s5377_s11, 4  ;;  %s5279_s13 = int_to_ptr.vmem [resolvable:$false] %s5278_s13 }
  0x2c   : > { %p5276_p7 = pnand %p5274_p5, %p5262_p2  ;;  %s5280_s21 = scalar_lea.vmem %s5279_s13, 6144 }
  0x2d   : > { %p5281_p4 = scmp.lt.s32.totalorder %s214_s30, %s5279_s13  ;;  %p5282_p9 = scmp.lt.s32.totalorder %s5280_s21, %s5273_s10 }
  0x2e   : > { %p5277_p6 = pneg %p5276_p7 }
  0x2f   : > { %p5283_p12 = por %p5282_p9, %p5281_p4 }
  0x31   : > { %p5284_p0 = pnand %p5283_p12, %p5277_p6 }
  0x33   : > { %5287 = shalt.err (!%p5284_p0)
}
  0x34   : > { %s5378_s29 = smov 512   ;;  %s5379_s28 = smov 32  }
  0x35   : > { %5047 = dma.hbm_to_vmem [thread:$0]  (!%p5508_p11), %s212_s8, 3072, %s214_s30, %s201_s9, %s5378_s29, %s5378_s29, %s5379_s28  }
  0x36   : > { %225 = sbr.rel (%p5467_p8) target bundleno = 921 (0x399), region = 36  ;;  %s5522_s14 = sand.u32 (!%p5467_p8), 1, %s5356_s16  }
  0x37   : > { %s4967_s7 = smul.u32 (!%p5467_p8), 192, %s5522_s14  ;;  %s228_s24 = scalar_lea.sflag (!%p5467_p8), [#allocation3], %s5522_s14 }
  0x38   : > { %p7510_p3 = scmp.ne.s32.totalorder (!%p5467_p8), %s7504_s25, 0 }
  0x39   : > { %s5526_s10 = scalar_lea.vmem (!%p5467_p8), [#allocation2], %s4967_s7 }
  0x3b   : > { %5339 = dma.done.wait (%p7510_p3), %s228_s24, 3072  }
  0x3c   : > { %5341 = vsyncadd (%p7510_p3), %s228_s24, 4294964224 }
  0x3d   : > { %5343 = dma.done.wait (%p5447_p1), [#allocation6], 128  }
  0x3e   : > { %5345 = vsyncadd (%p5447_p1), [#allocation6], 4294967168  ;;  %v5380_v0 = vmov 0   ;;  %v292_v1 = vld [vmem:[%s5526_s10 + $0x80] sm:$0xff]  ;;  %v293_v3 = vld [vmem:[%s5526_s10 + $0x88] sm:$0xff]  ;;  %vm437_vm0 = vcmask 392192  }
  0x3f   : > { %473 = vmatprep.mubr.bf16.mxu0 %v5380_v0  ;;  %516 = vmatprep.mubr.bf16.mxu1 %v5380_v0  ;;  %v296_v2 = vld [vmem:[%s5526_s10 + $0xa0] sm:$0xff]  ;;  %v297_v5 = vld [vmem:[%s5526_s10 + $0xa8] sm:$0xff]  ;;  %v294_v23 = vld [vmem:[%s5526_s10 + $0x90] sm:$0xff]  ;;  %vm7487_vm15 = vcmask 1045504   ;;  %s4784_s13 = sshll.u32 %s5522_s14, 6  ;;  %s4964_s30 = sshll.u32 %s5364_s18, 10 }
  0x40   : > { %5116 = vset.pattern.permute.xlu0 %v5380_v0  ;;  %v4803_v4 = vcombine.high %v292_v1, %v296_v2  ;;  %v4802_v6 = vcombine.low %v292_v1, %v296_v2  ;;  %v284_v7 = vld [vmem:[%s5526_s10 + $0x40] sm:$0xff]  ;;  %v4805_v9 = vcombine.high %v293_v3, %v297_v5  ;;  %v4804_v10 = vcombine.low %v293_v3, %v297_v5  ;;  %v285_v12 = vld [vmem:[%s5526_s10 + $0x48] sm:$0xff]  ;;  %v298_v24 = vld [vmem:[%s5526_s10 + $0xb0] sm:$0xff]  ;;  %s6066_s21 = scalar_lea.vmem [#allocation7], %s4784_s13  ;;  %s7435_s11 = scalar_lea.hbm %s7483_s4, %s4964_s30 }
  0x41   : > { %v288_v8 = vld [vmem:[%s5526_s10 + $0x60] sm:$0xff]  ;;  %v289_v13 = vld [vmem:[%s5526_s10 + $0x68] sm:$0xff]  ;;  %v295_v25 = vld [vmem:[%s5526_s10 + $0x98] sm:$0xff]  ;;  %v4807_v29 = vcombine.high %v294_v23, %v298_v24  ;;  %v4806_v38 = vcombine.low %v294_v23, %v298_v24  ;;  %s4666_s6 = sshll.u32 %s6066_s21, 4  ;;  %s4650_s18 = scalar_lea.sflag [#allocation4], %s5522_s14  ;;  %s4667_s6 = int_to_ptr.vmem [resolvable:$true] %s4666_s6 }
  0x42   : > { %v4795_v11 = vcombine.high %v284_v7, %v288_v8  ;;  %v276_v14 = vld [vmem:[%s5526_s10] sm:$0xff]  ;;  %451 = vmatprep.subr.bf16.mxu0 %v4803_v4  ;;  %v4797_v15 = vcombine.high %v285_v12, %v289_v13  ;;  %v277_v17 = vld [vmem:[%s5526_s10 + $0x8] sm:$0xff]  ;;  %494 = vmatprep.subr.bf16.mxu1 %v4805_v9  ;;  %v4794_v19 = vcombine.low %v284_v7, %v288_v8  ;;  %v299_v26 = vld [vmem:[%s5526_s10 + $0xb8] sm:$0xff]  ;;  %s5288_s13 = scalar_lea.vmem %s4667_s6, 1024  ;;  %s5387_s29 = smov [#allocation7]  }
  0x43   : > { %v280_v16 = vld [vmem:[%s5526_s10 + $0x20] sm:$0xff]  ;;  %v281_v18 = vld [vmem:[%s5526_s10 + $0x28] sm:$0xff]  ;;  %452 = vmatpush1.bf16.msra.mxu0 %v4802_v6  ;;  %495 = vmatpush1.bf16.msra.mxu1 %v4804_v10  ;;  %v4796_v20 = vcombine.low %v285_v12, %v289_v13  ;;  %v4809_v32 = vcombine.high %v295_v25, %v299_v26  ;;  %v286_v33 = vld [vmem:[%s5526_s10 + $0x50] sm:$0xff]  ;;  %v4808_v39 = vcombine.low %v295_v25, %v299_v26  ;;  %p5289_p1 = scmp.ne.s32.totalorder %s4667_s6, %s5288_s13  ;;  %s5292_s28 = sshll.u32 %s5387_s29, 4  ;;  %s5293_s28 = int_to_ptr.vmem [resolvable:$false] %s5292_s28 }
  0x44   : > { %453 = vmatprep.subr.bf16.mxu0 %v4795_v11  ;;  %v4787_v21 = vcombine.high %v276_v14, %v280_v16  ;;  %496 = vmatprep.subr.bf16.mxu1 %v4797_v15  ;;  %v4789_v22 = vcombine.high %v277_v17, %v281_v18  ;;  %v4786_v27 = vcombine.low %v276_v14, %v280_v16  ;;  %v300_v30 = vld [vmem:[%s7481_s2] sm:$0xff]  ;;  %v290_v34 = vld [vmem:[%s5526_s10 + $0x70] sm:$0xff]  ;;  %v287_v35 = vld [vmem:[%s5526_s10 + $0x58] sm:$0xff]  ;;  %s5294_s7 = scalar_lea.vmem %s5293_s28, 2048  ;;  %p5295_p2 = scmp.lt.s32.totalorder %s4667_s6, %s5293_s28 }
  0x45   : > { %v4788_v28 = vcombine.low %v277_v17, %v281_v18  ;;  %v5117_v31 = vld [vmem:[#allocation5] sm:$0x1f]   ;;  %304 = vperm.xlu0 %5116, %v300_v30   ;;  %v291_v36 = vld [vmem:[%s5526_s10 + $0x78] sm:$0xff]  ;;  %v301_v37 = vld [vmem:[%s7481_s2 + $0x8] sm:$0x1]  ;;  %v4799_v40 = vcombine.high %v286_v33, %v290_v34  ;;  %v4798_v46 = vcombine.low %v286_v33, %v290_v34  ;;  %p5290_p8 = pnand %p5289_p1, %p5496_p13  ;;  %p5296_p5 = scmp.lt.s32.totalorder %s5294_s7, %s5288_s13 }
  0x46   : > { %v4801_v41 = vcombine.high %v287_v35, %v291_v36  ;;  %v278_v42 = vld [vmem:[%s5526_s10 + $0x10] sm:$0xff]  ;;  %v279_v44 = vld [vmem:[%s5526_s10 + $0x18] sm:$0xff]  ;;  %v4800_v47 = vcombine.low %v287_v35, %v291_v36  ;;  %v5381_v34 = vmov 683565275  }
  0x47   : > { %454 = vmatpush1.bf16.msra.mxu0 %v4794_v19  ;;  %497 = vmatpush1.bf16.msra.mxu1 %v4796_v20  ;;  %v282_v43 = vld [vmem:[%s5526_s10 + $0x30] sm:$0xff]  ;;  %v283_v45 = vld [vmem:[%s5526_s10 + $0x38] sm:$0xff]  ;;  %p5291_p11 = pneg %p5290_p8  ;;  %p5297_p7 = por %p5296_p5, %p5295_p2 }
  0x48   : > { %455 = vmatprep.subr.bf16.mxu0 %v4787_v21  ;;  %498 = vmatprep.subr.bf16.mxu1 %v4789_v22  ;;  %v4791_v48 = vcombine.high %v278_v42, %v282_v43  ;;  %v4793_v49 = vcombine.high %v279_v44, %v283_v45  ;;  %v4790_v50 = vcombine.low %v278_v42, %v282_v43  ;;  %v7496_v42 = vmov 2102212464  }
  0x49   : > { %309 = vperm.xlu0 %5116, %v301_v37   ;;  %v4792_v51 = vcombine.low %v279_v44, %v283_v45  ;;  %v7494_v44 = vmov 920167782   ;;  %p5298_p6 = pnand %p5297_p7, %p5291_p11 }
  0x4b   : > { %456 = vmatpush1.bf16.msra.mxu0 %v4786_v27  ;;  %499 = vmatpush1.bf16.msra.mxu1 %v4788_v28 }
  0x4c   : > { %537 = vmatprep.subr.bf16.mxu0 %v4807_v29  ;;  %580 = vmatprep.subr.bf16.mxu1 %v4809_v32 }
  0x4e   : > { %4810 = vmatmul.mubr.msk.bf16.vlgmr.msra.gmra.mxu0 %vm437_vm0, %v5117_v31  ;;  %4811 = vmatmul.mubr.msk.bf16.vlgmr.msra.gmra.mxu1 %vm437_vm0, %v5117_v31 }
  0x4f   : > { %538 = vmatpush1.bf16.msra.mxu0 %v4806_v38  ;;  %581 = vmatpush1.bf16.msra.mxu1 %v4808_v39  ;;  %v5382_v38 = vmov 2475754826  }
  0x50   : > { %539 = vmatprep.subr.bf16.mxu0 %v4799_v40  ;;  %582 = vmatprep.subr.bf16.mxu1 %v4801_v41  ;;  %v7500_v40 = vmov 2131351028  }
  0x51   : > { %559 = vmatprep.mubr.bf16.mxu0 %v5380_v0  ;;  %602 = vmatprep.mubr.bf16.mxu1 %v5380_v0 }
  0x53   : > { %540 = vmatpush1.bf16.msra.mxu0 %v4798_v46  ;;  %583 = vmatpush1.bf16.msra.mxu1 %v4800_v47 }
  0x54   : > { %541 = vmatprep.subr.bf16.mxu0 %v4791_v48  ;;  %584 = vmatprep.subr.bf16.mxu1 %v4793_v49 }
  0x57   : > { %542 = vmatpush1.bf16.msra.mxu0 %v4790_v50  ;;  %585 = vmatpush1.bf16.msra.mxu1 %v4792_v51  ;;  %v7492_v51 = vmov 1326507024  }
  0x5a   : > { %4812 = vmatmul.mubr.msk.bf16.vlgmr.msra.gmra.mxu0 %vm437_vm0, %v5117_v31  ;;  %4813 = vmatmul.mubr.msk.bf16.vlgmr.msra.gmra.mxu1 %vm437_vm0, %v5117_v31 }
  0xc0   : > { %v5575_v52 = vpop.permute.xlu0 %304 }
 0x10e   : > { %v475_v53 = vpop.f32.mrf.mxu0  ;;  %v518_v55 = vpop.f32.mrf.mxu1 }
 0x10f   : > { %v5578_v54 = vadd.f32 %v475_v53, %v5575_v52  ;;  %v5581_v56 = vadd.f32 %v518_v55, %v5575_v52 }
 0x110   : > { %v477_v6 = vpop.f32.mrf.mxu0 }
 0x111   : > { %v4814_v57 = vmul.f32 -1.442695, %v5578_v54  ;;  %v4816_v58 = vmul.f32 -1.442695, %v5581_v56  ;;  %v5601_v11 = vadd.f32 %v477_v6, %v5575_v52 }
 0x113   : > { %5118 = vpow2.f32 %v4814_v57  ;;  %v4815_v19 = vmul.f32 -1.442695, %v5601_v11 }
 0x114   : > { %5120 = vpow2.f32 %v4816_v58 }
 0x120   : > { %v5119_v59 = vpop.eup %5118 }
 0x121   : > { %v5121_v60 = vpop.eup %5120  ;;  %v669_v61 = vadd.f32 1.0, %v5119_v59 }
 0x122   : > { %v671_v62 = vadd.f32 1.0, %v5121_v60 }
 0x123   : > { %5122 = vrcp.f32 %v669_v61 }
 0x124   : > { %5124 = vrcp.f32 %v671_v62 }
 0x125   : > { %5126 = vpow2.f32 %v4815_v19 }
 0x130   : > { %v5585_v63 = vpop.eup %5122 }
 0x131   : > { %v5587_v0 = vpop.eup %5124  ;;  %v4822_v1 = vadd.f32 -0.5, %v5585_v63  ;;  %v2381_v2 = vmul.f32 1.5707964, %v5585_v63 }
 0x132   : > { %v4824_v5 = vadd.f32 -0.5, %v5587_v0 }
 0x133   : > { %v5591_v3 = vmul.f32 6.2831855, %v4822_v1  ;;  %v5593_v4 = vmin.f32 %v2381_v2, 1.5706964 }
 0x134   : > { %v5603_v13 = vmul.f32 6.2831855, %v4824_v5 }
 0x135   : > { %v725_v7 = vand.u32 2147483647, %v5591_v3  ;;  %v728_v8 = vand.u32 2139095040, %v5591_v3  ;;  %v2397_v9 = vand.u32 2147483647, %v5593_v4  ;;  %v2400_v10 = vand.u32 2139095040, %v5593_v4 }
 0x136   : > { %v934_v24 = vand.u32 2139095040, %v5603_v13 }
 0x137   : > { %v729_v12 = vshrl.u32 %v728_v8, 23  ;;  %v732_v14 = vand.u32 8388607, %v725_v7  ;;  %v2401_v15 = vshrl.u32 %v2400_v10, 23  ;;  %v2404_v16 = vand.u32 8388607, %v2397_v9 }
 0x138   : > { %v935_v26 = vshrl.u32 %v934_v24, 23 }
 0x139   : > { %v4830_v17 = vadd.s32 4294967169, %v729_v12  ;;  %v4894_v18 = vadd.s32 4294967169, %v2401_v15  ;;  %v733_v21 = vor.u32 8388608, %v732_v14  ;;  %v2405_v22 = vor.u32 8388608, %v2404_v16 }
 0x13a   : > { %v5618_v37 = vadd.s32 4294967169, %v935_v26 }
 0x13b   : > { %v735_v20 = vadd.s32 1, %v4830_v17  ;;  %v2407_v23 = vadd.s32 1, %v4894_v18  ;;  %v5611_v30 = vshll.u32 %v733_v21, 8  ;;  %v5615_v32 = vshll.u32 %v2405_v22, 8 }
 0x13d   : > { %vm736_vm1 = vcmp.gt.s32.totalorder %v735_v20, 0  ;;  %vm2408_vm2 = vcmp.gt.s32.totalorder %v2407_v23, 0 }
 0x13e   : > { %v737_v25 = vsel %vm736_vm1, %v735_v20, 0  ;;  %v2409_v29 = vsel %vm2408_vm2, %v2407_v23, 0 }
 0x13f   : > { %v738_v27 = vshrl.u32 %v737_v25, 5  ;;  %v739_v28 = vand.u32 31, %v737_v25  ;;  %v5613_v31 = vshrl.u32 %v2409_v29, 5  ;;  %v2411_v36 = vand.u32 31, %v2409_v29 }
 0x141   : > { %v740_v33 = vsub.s32 32, %v739_v28  ;;  %v742_v35 = vshll.u32 %v5381_v34, %v739_v28  ;;  %v745_v39 = vshll.u32 %v5382_v38, %v739_v28  ;;  %v748_v41 = vshll.u32 %v7500_v40, %v739_v28 }
 0x142   : > { %v751_v43 = vshll.u32 %v7496_v42, %v739_v28  ;;  %v754_v45 = vshll.u32 %v7494_v44, %v739_v28  ;;  %vm757_vm3 = vcmp.lt.s32.totalorder %v738_v27, 1  ;;  %vm758_vm4 = vcmp.lt.s32.totalorder %v738_v27, 2 }
 0x143   : > { %v743_v46 = vshrl.u32 %v5382_v38, %v740_v33  ;;  %v746_v47 = vshrl.u32 %v7500_v40, %v740_v33  ;;  %v749_v48 = vshrl.u32 %v7496_v42, %v740_v33  ;;  %v741_v49 = vshrl.u32 %v5381_v34, %v740_v33 }
 0x144   : > { %v752_v50 = vshrl.u32 %v7494_v44, %v740_v33  ;;  %v755_v53 = vshrl.u32 %v7492_v51, %v740_v33  ;;  %v2412_v59 = vsub.s32 32, %v2411_v36  ;;  %vm759_vm5 = vcmp.lt.s32.totalorder %v738_v27, 3 }
 0x145   : > { %v744_v55 = vor.u32 %v743_v46, %v742_v35  ;;  %v747_v57 = vor.u32 %v746_v47, %v745_v39  ;;  %v750_v58 = vor.u32 %v749_v48, %v748_v41  ;;  %vm760_vm6 = vcmp.lt.s32.totalorder %v738_v27, 4  ;;  %v5651_v35 = vpop.eup %5126 }
 0x146   : > { %v753_v60 = vor.u32 %v752_v50, %v751_v43  ;;  %v756_v61 = vor.u32 %v755_v53, %v754_v45  ;;  %v2414_v12 = vshll.u32 %v5381_v34, %v2411_v36  ;;  %v2415_v16 = vshrl.u32 %v5382_v38, %v2412_v59 }
 0x147   : > { %v761_v62 = vsel %vm757_vm3, %v741_v49, %v744_v55  ;;  %v762_v1 = vsel %vm760_vm6, %v750_v58, 2102212464  ;;  %v765_v2 = vsel %vm757_vm3, %v744_v55, %v747_v57  ;;  %v769_v5 = vsel %vm757_vm3, %v747_v57, %v750_v58 }
 0x148   : > { %v763_v6 = vsel %vm759_vm5, %v747_v57, %v762_v1  ;;  %v766_v8 = vsel %vm760_vm6, %v753_v60, 920167782  ;;  %v770_v10 = vsel %vm760_vm6, %v756_v61, 1326507024  ;;  %v2417_v17 = vshll.u32 %v5382_v38, %v2411_v36 }
 0x149   : > { %v767_v14 = vsel %vm759_vm5, %v750_v58, %v766_v8  ;;  %v771_v15 = vsel %vm759_vm5, %v753_v60, %v770_v10  ;;  %v764_v18 = vsel %vm758_vm4, %v761_v62, %v763_v6  ;;  %v2418_v21 = vshrl.u32 %v7500_v40, %v2412_v59 }
 0x14a   : > { %v768_v19 = vsel %vm758_vm4, %v765_v2, %v767_v14  ;;  %v772_v20 = vsel %vm758_vm4, %v769_v5, %v771_v15  ;;  %v2416_v26 = vor.u32 %v2415_v16, %v2414_v12  ;;  %v2420_v29 = vshll.u32 %v7500_v40, %v2411_v36  ;;  %v520_v14 = vpop.f32.mrf.mxu1 }
 0x14b   : > { %v5641_v22 = vmul.u32.u64.low %v5611_v30, %v772_v20  ;;  %v5642_v23 = vmul.u32.u64.high %v5611_v30, %v772_v20, %v5641_v22  ;;  %v5645_v24 = vmul.u32.u64.low %v5611_v30, %v768_v19  ;;  %v5646_v25 = vmul.u32.u64.high %v5611_v30, %v768_v19, %v5645_v24 }
 0x14c   : > { %v2419_v28 = vor.u32 %v2418_v21, %v2417_v17  ;;  %v2421_v33 = vshrl.u32 %v7496_v42, %v2412_v59  ;;  %v2413_v27 = vshrl.u32 %v5381_v34, %v2412_v59  ;;  %v2423_v39 = vshll.u32 %v7496_v42, %v2411_v36 }
 0x14d   : > { %v2424_v41 = vshrl.u32 %v7494_v44, %v2412_v59  ;;  %v2427_v43 = vshrl.u32 %v7492_v51, %v2412_v59  ;;  %v780_v45 = vmul.u32 %v5611_v30, %v764_v18  ;;  %v2426_v47 = vshll.u32 %v7494_v44, %v2411_v36 }
 0x14e   : > { %v2422_v46 = vor.u32 %v2421_v33, %v2420_v29  ;;  %vm2429_vm7 = vcmp.lt.s32.totalorder %v5613_v31, 1  ;;  %vm782_vm8 = vc.u32 %v5642_v23, %v5645_v24  ;;  %v783_v48 = vadd.s32 1, %v5646_v25 }
 0x14f   : > { %v2425_v49 = vor.u32 %v2424_v41, %v2423_v39  ;;  %vm2430_vm9 = vcmp.lt.s32.totalorder %v5613_v31, 2  ;;  %v2428_v50 = vor.u32 %v2427_v43, %v2426_v47  ;;  %vm2431_vm10 = vcmp.lt.s32.totalorder %v5613_v31, 3 }
 0x150   : > { %vm2432_vm11 = vcmp.lt.s32.totalorder %v5613_v31, 4  ;;  %v2437_v53 = vsel %vm2429_vm7, %v2416_v26, %v2419_v28  ;;  %v784_v30 = vsel %vm782_vm8, %v783_v48, %v5646_v25  ;;  %v2441_v57 = vsel %vm2429_vm7, %v2419_v28, %v2422_v46  ;;  %v479_v31 = vpop.f32.mrf.mxu0 }
 0x151   : > { %v2434_v55 = vsel %vm2432_vm11, %v2422_v46, 2102212464  ;;  %v2438_v36 = vsel %vm2432_vm11, %v2425_v49, 920167782  ;;  %v785_v58 = vadd.s32 %v784_v30, %v780_v45  ;;  %v2433_v59 = vsel %vm2429_vm7, %v2413_v27, %v2416_v26 }
 0x152   : > { %v2439_v60 = vsel %vm2431_vm10, %v2422_v46, %v2438_v36  ;;  %v2442_v61 = vsel %vm2432_vm11, %v2428_v50, 1326507024  ;;  %v2435_v62 = vsel %vm2431_vm10, %v2419_v28, %v2434_v55  ;;  %v941_v5 = vadd.s32 1, %v5618_v37  ;;  %v5695_v28 = vpop.permute.xlu0 %309 }
 0x153   : > { %v2440_v1 = vsel %vm2430_vm9, %v2437_v53, %v2439_v60  ;;  %v2443_v2 = vsel %vm2431_vm10, %v2425_v49, %v2442_v61  ;;  %v786_v6 = vadd.s32 536870912, %v785_v58  ;;  %v2436_v37 = vsel %vm2430_vm9, %v2433_v59, %v2435_v62 }
 0x154   : > { %v2444_v8 = vsel %vm2430_vm9, %v2441_v57, %v2443_v2  ;;  %v5673_v10 = vmul.u32.u64.low %v5615_v32, %v2440_v1  ;;  %v5674_v12 = vmul.u32.u64.high %v5615_v32, %v2440_v1, %v5673_v10  ;;  %vm942_vm12 = vcmp.gt.s32.totalorder %v941_v5, 0 }
 0x155   : > { %v5678_v15 = vmul.u32.u64.low %v5615_v32, %v2444_v8  ;;  %v5679_v16 = vmul.u32.u64.high %v5615_v32, %v2444_v8, %v5678_v15  ;;  %v5681_v17 = vshrl.u32 %v786_v6, 30  ;;  %v931_v18 = vand.u32 2147483647, %v5603_v13 }
 0x156   : > { %v943_v19 = vsel %vm942_vm12, %v941_v5, 0  ;;  %v621_v20 = vrot.slane %v5578_v54, 7  ;;  %v5688_v21 = vadd.f32 %v520_v14, %v5575_v52  ;;  %v2455_v25 = vadd.s32 1, %v5674_v12 }
 0x157   : > { %v788_v22 = vshll.u32 %v5681_v17, 30  ;;  %v2452_v26 = vmul.u32 %v5615_v32, %v2436_v37  ;;  %vm2454_vm13 = vc.u32 %v5679_v16, %v5673_v10  ;;  %v938_v27 = vand.u32 8388607, %v931_v18 }
 0x158   : > { %v2456_v33 = vsel %vm2454_vm13, %v2455_v25, %v5674_v12  ;;  %v945_v39 = vand.u32 31, %v943_v19  ;;  %v623_v41 = vrot.slane %v5581_v56, 7  ;;  %v2383_v45 = vmul.f32 1.5707964, %v5587_v0 }
 0x159   : > { %v5697_v29 = vsub.s32 %v785_v58, %v788_v22  ;;  %v2457_v43 = vadd.s32 %v2456_v33, %v2452_v26  ;;  %v5705_v32 = vsub.f32 %v5578_v54, %v621_v20  ;;  %v4817_v46 = vmul.f32 -1.442695, %v5688_v21 }
 0x15a   : > { %v5710_v48 = vadd.f32 %v479_v31, %v5695_v28  ;;  %v939_v30 = vor.u32 8388608, %v938_v27  ;;  %v946_v55 = vsub.s32 32, %v945_v39  ;;  %v5715_v36 = vsub.f32 %v5581_v56, %v623_v41 }
 0x15b   : > { %v791_v47 = vsub.s32 0, %v5697_v29  ;;  %v2458_v49 = vadd.s32 536870912, %v2457_v43  ;;  %v5720_v59 = vmin.f32 %v2383_v45, 1.5706964  ;;  %5128 = vpow2.f32 %v4817_v46 }
 0x15c   : > { %v4539_v62 = vrot.slane %v5578_v54, 2  ;;  %v5725_v1 = vadd.f32 1.0, %v5651_v35  ;;  %v4161_v5 = vlaneseq  ;;  %v4540_v6 = vrot.slane %v5710_v48, 2 }
 0x15d   : > { %v4831_v53 = vmin.u32 %v791_v47, %v5697_v29  ;;  %v5718_v58 = vshrl.u32 %v2458_v49, 30  ;;  %v781_v8 = vadd.s32 %v5645_v24, %v5642_v23  ;;  %v949_v14 = vshrl.u32 %v5382_v38, %v946_v55 }
 0x15e   : > { %v5732_v15 = vshll.u32 %v939_v30, 8  ;;  %v952_v20 = vshrl.u32 %v7500_v40, %v946_v55  ;;  %v958_v35 = vshrl.u32 %v7494_v44, %v946_v55  ;;  %v2608_v22 = vand.u32 2139095040, %v5720_v59 }
 0x15f   : > { %v793_v61 = vclz %v4831_v53  ;;  %v2460_v2 = vshll.u32 %v5718_v58, 30  ;;  %v948_v25 = vshll.u32 %v5381_v34, %v945_v39  ;;  %v951_v26 = vshll.u32 %v5382_v38, %v945_v39 }
 0x160   : > { %v955_v23 = vshrl.u32 %v7496_v42, %v946_v55  ;;  %v957_v33 = vshll.u32 %v7496_v42, %v945_v39  ;;  %v961_v27 = vshrl.u32 %v7492_v51, %v946_v55  ;;  %v954_v46 = vshll.u32 %v7500_v40, %v945_v39 }
 0x161   : > { %v4832_v12 = vadd.s32 4294967294, %v793_v61  ;;  %v5734_v37 = vsub.s32 %v2457_v43, %v2460_v2  ;;  %v944_v43 = vshrl.u32 %v943_v19, 5  ;;  %v950_v45 = vor.u32 %v949_v14, %v948_v25 }
 0x162   : > { %v953_v49 = vor.u32 %v952_v20, %v951_v26  ;;  %v959_v53 = vor.u32 %v958_v35, %v957_v33  ;;  %v960_v30 = vshll.u32 %v7494_v44, %v945_v39  ;;  %v2453_v2 = vadd.s32 %v5673_v10, %v5679_v16 }
 0x163   : > { %vm4833_vm14 = vcmp.lt.s32.totalorder %v4832_v12, 0  ;;  %v2463_v31 = vsub.s32 0, %v5734_v37  ;;  %v2609_v57 = vshrl.u32 %v2608_v22, 23  ;;  %v947_v19 = vshrl.u32 %v5381_v34, %v946_v55 }
 0x164   : > { %v796_v24 = vsel %vm4833_vm14, 0, %v4832_v12  ;;  %v956_v12 = vor.u32 %v955_v23, %v954_v46  ;;  %v962_v14 = vor.u32 %v961_v27, %v960_v30  ;;  %vm963_vm0 = vcmp.lt.s32.totalorder %v944_v43, 1  ;;  %v522_v30 = vpop.f32.mrf.mxu1 }
 0x165   : > { %v801_v41 = vsub.s32 4294967266, %v796_v24  ;;  %v4895_v47 = vmin.u32 %v2463_v31, %v5734_v37  ;;  %v797_v50 = vsub.s32 32, %v796_v24  ;;  %vm964_vm1 = vcmp.lt.s32.totalorder %v944_v43, 2 }
 0x166   : > { %vm965_vm2 = vcmp.lt.s32.totalorder %v944_v43, 3  ;;  %vm966_vm3 = vcmp.lt.s32.totalorder %v944_v43, 4  ;;  %v967_v35 = vsel %vm963_vm0, %v947_v19, %v950_v45  ;;  %v971_v25 = vsel %vm963_vm0, %v950_v45, %v953_v49 }
 0x167   : > { %v802_v61 = vadd.s32 127, %v801_v41  ;;  %v2465_v60 = vclz %v4895_v47  ;;  %v972_v39 = vsel %vm966_vm3, %v959_v53, 920167782  ;;  %v968_v31 = vsel %vm966_vm3, %v956_v12, 2102212464 }
 0x168   : > { %v973_v10 = vsel %vm965_vm2, %v956_v12, %v972_v39  ;;  %v975_v16 = vsel %vm963_vm0, %v953_v49, %v956_v12  ;;  %v5129_v23 = vpop.eup %5128  ;;  %v798_v22 = vshll.u32 %v5697_v29, %v796_v24  ;;  %v799_v33 = vshrl.u32 %v781_v8, %v797_v50 }
 0x169   : > { %v4896_v20 = vadd.s32 4294967294, %v2465_v60  ;;  %v803_v26 = vshll.u32 %v802_v61, 23  ;;  %v976_v55 = vsel %vm966_vm3, %v962_v14, 1326507024  ;;  %v974_v41 = vsel %vm964_vm1, %v971_v25, %v973_v10 }
 0x16a   : > { %v977_v46 = vsel %vm965_vm2, %v959_v53, %v976_v55  ;;  %v4902_v60 = vadd.s32 4294967169, %v2609_v57  ;;  %v969_v61 = vsel %vm965_vm2, %v953_v49, %v968_v31  ;;  %v5769_v49 = vadd.f32 %v522_v30, %v5695_v28 }
 0x16b   : > { %vm4897_vm4 = vcmp.lt.s32.totalorder %v4896_v20, 0  ;;  %v978_v19 = vsel %vm964_vm1, %v975_v16, %v977_v46  ;;  %v804_v12 = vor.u32 4788187, %v803_v26  ;;  %v970_v31 = vsel %vm964_vm1, %v967_v35, %v969_v61 }
 0x16c   : > { %v2468_v27 = vsel %vm4897_vm4, 0, %v4896_v20  ;;  %v5759_v29 = vmul.u32.u64.low %v5732_v15, %v978_v19  ;;  %v5760_v50 = vmul.u32.u64.high %v5732_v15, %v978_v19, %v5759_v29  ;;  %v800_v20 = vor.u32 %v799_v33, %v798_v22 }
 0x16d   : > { %v2469_v47 = vsub.s32 32, %v2468_v27  ;;  %v2473_v45 = vsub.s32 4294967266, %v2468_v27  ;;  %v2470_v39 = vshll.u32 %v5734_v37, %v2468_v27  ;;  %v2615_v25 = vadd.s32 1, %v4902_v60 }
 0x16e   : > { %v5763_v14 = vmul.u32.u64.low %v5732_v15, %v974_v41  ;;  %v5764_v53 = vmul.u32.u64.high %v5732_v15, %v974_v41, %v5763_v14  ;;  %v672_v10 = vadd.f32 1.0, %v5129_v23  ;;  %v805_v16 = vand.u32 2147483647, %v804_v12 }
 0x16f   : > { %v2471_v8 = vshrl.u32 %v2453_v2, %v2469_v47  ;;  %v2474_v24 = vadd.s32 127, %v2473_v45  ;;  %v5776_v2 = vsel %vm7487_vm15, %v4539_v62, %v4540_v6  ;;  %vm2616_vm6 = vcmp.gt.s32.totalorder %v2615_v25, 0 }
 0x170   : > { %vm988_vm5 = vc.u32 %v5760_v50, %v5763_v14  ;;  %5130 = vrcp.f32 %v5725_v1  ;;  %v5783_v33 = vshrl.u32 %v4161_v5, 7  ;;  %v989_v48 = vadd.s32 1, %v5764_v53 }
 0x171   : > { %v2472_v26 = vor.u32 %v2471_v8, %v2470_v39  ;;  %v2475_v37 = vshll.u32 %v2474_v24, 23  ;;  %v807_v55 = vcvt.s32.f32 %v800_v20  ;;  %v986_v62 = vmul.u32 %v5732_v15, %v970_v31 }
 0x172   : > { %v2605_v6 = vand.u32 2147483647, %v5720_v59  ;;  %v2617_v43 = vsel %vm2616_vm6, %v2615_v25, 0  ;;  %v2483_v27 = vsub.s32 4, %v5718_v58  ;;  %v990_v41 = vsel %vm988_vm5, %v989_v48, %v5764_v53 }
 0x173   : > { %v2476_v22 = vor.u32 4788187, %v2475_v37  ;;  %v2479_v23 = vcvt.s32.f32 %v2472_v26  ;;  %5132 = vrcp.f32 %v672_v10  ;;  %v808_v1 = vmul.f32 %v807_v55, %v805_v16  ;;  %v5823_v55 = vld [vmem:[%s7482_s3] ss:$2 sm:$0xff] }
 0x174   : > { %v991_v46 = vadd.s32 %v990_v41, %v986_v62  ;;  %v2619_v60 = vand.u32 31, %v2617_v43  ;;  %v693_v5 = vmax.f32 %v5585_v63, 0.0  ;;  %vm727_vm7 = vcmp.lt.s32.totalorder %v5591_v3, 0 }
 0x175   : > { %v2477_v35 = vand.u32 2147483647, %v2476_v22  ;;  %v4163_v15 = vsub.s32 0, %v5783_v33  ;;  %vm5795_vm8 = vcmp.le.f32.partialorder %v2397_v9, 0.7853982  ;;  %vm2399_vm9 = vcmp.lt.s32.totalorder %v5593_v4, 0 }
 0x176   : > { %v992_v30 = vadd.s32 536870912, %v991_v46  ;;  %v2620_v61 = vsub.s32 32, %v2619_v60  ;;  %v811_v19 = vsub.s32 4, %v5681_v17  ;;  %v2484_v63 = vsel %vm2399_vm9, %v2483_v27, %v5718_v58 }
 0x177   : > { %v2480_v47 = vmul.f32 %v2479_v23, %v2477_v35  ;;  %v2612_v39 = vand.u32 8388607, %v2605_v6  ;;  %v809_v29 = vxor.u32 2147483648, %v808_v1  ;;  %v5806_v24 = vshrl.u32 %v2617_v43, 5 }
 0x178   : > { %v5804_v8 = vshrl.u32 %v992_v30, 30  ;;  %v2631_v9 = vshll.u32 %v7496_v42, %v2619_v60  ;;  %v2623_v20 = vshrl.u32 %v5382_v38, %v2620_v61  ;;  %v2626_v25 = vshrl.u32 %v7500_v40, %v2620_v61 }
 0x179   : > { %v2481_v12 = vxor.u32 2147483648, %v2480_v47  ;;  %v2632_v26 = vshrl.u32 %v7494_v44, %v2620_v61  ;;  %v2629_v31 = vshrl.u32 %v7496_v42, %v2620_v61  ;;  %v2635_v10 = vshrl.u32 %v7492_v51, %v2620_v61 }
 0x17a   : > { %v994_v37 = vshll.u32 %v5804_v8, 30  ;;  %v2622_v16 = vshll.u32 %v5381_v34, %v2619_v60  ;;  %v2625_v22 = vshll.u32 %v5382_v38, %v2619_v60  ;;  %v2628_v43 = vshll.u32 %v7500_v40, %v2619_v60 }
 0x17b   : > { %v2482_v53 = vsel %vm2399_vm9, %v2481_v12, %v2480_v47  ;;  %v2633_v48 = vor.u32 %v2632_v26, %v2631_v9  ;;  %v2634_v35 = vshll.u32 %v7494_v44, %v2619_v60  ;;  %v810_v23 = vsel %vm727_vm7, %v809_v29, %v808_v1 }
 0x17c   : > { %v2485_v58 = vsel %vm5795_vm8, %v5593_v4, %v2482_v53  ;;  %v5825_v62 = vsub.s32 %v991_v46, %v994_v37  ;;  %v812_v27 = vsel %vm727_vm7, %v811_v19, %v5681_v17  ;;  %v2624_v41 = vor.u32 %v2623_v20, %v2622_v16 }
 0x17d   : > { %5134 = vcosq.f32 %v2485_v58  ;;  %v2627_v47 = vor.u32 %v2626_v25, %v2625_v22  ;;  %v5834_v30 = vpop.eup %5130  ;;  %v2630_v9 = vor.u32 %v2629_v31, %v2628_v43  ;;  %v2636_v46 = vor.u32 %v2635_v10, %v2634_v35 }
 0x17e   : > { %5136 = vsinq.f32 %v2485_v58  ;;  %v997_v12 = vsub.s32 0, %v5825_v62  ;;  %vm2640_vm10 = vcmp.lt.s32.totalorder %v5806_v24, 4  ;;  %vm726_vm11 = vcmp.le.f32.partialorder %v725_v7, 0.7853982 }
 0x17f   : > { %v2486_v1 = vsel %vm5795_vm8, 0, %v2484_v63  ;;  %v5845_v17 = vrot.slane %v5823_v55, %v4163_v15  ;;  %v2646_v60 = vsel %vm2640_vm10, %v2633_v48, 920167782  ;;  %v813_v19 = vsel %vm726_vm11, %v5591_v3, %v810_v23 }
 0x180   : > { %v4839_v29 = vmin.u32 %v997_v12, %v5825_v62  ;;  %v2613_v53 = vor.u32 8388608, %v2612_v39  ;;  %vm2637_vm12 = vcmp.lt.s32.totalorder %v5806_v24, 1  ;;  %v5852_v20 = vpop.eup %5132  ;;  %v5854_v7 = vmin.f32 %v693_v5, 1.0 }
 0x181   : > { %v814_v45 = vsel %vm726_vm11, 0, %v812_v27  ;;  %vm2639_vm13 = vcmp.lt.s32.totalorder %v5806_v24, 3  ;;  %v2645_v63 = vsel %vm2637_vm12, %v2624_v41, %v2627_v47  ;;  %v2642_v26 = vsel %vm2640_vm10, %v2630_v9, 2102212464 }
 0x182   : > { %v999_v25 = vclz %v4839_v29  ;;  %v2647_v58 = vsel %vm2639_vm13, %v2630_v9, %v2646_v60  ;;  %v2650_v39 = vsel %vm2640_vm10, %v2636_v46, 1326507024  ;;  %5138 = vcosq.f32 %v813_v19 }
 0x183   : > { %v3322_v37 = vand.u32 3, %v2486_v1  ;;  %v2621_v5 = vshrl.u32 %v5381_v34, %v2620_v61  ;;  %v2649_v31 = vsel %vm2637_vm12, %v2627_v47, %v2630_v9  ;;  %5140 = vsinq.f32 %v813_v19 }
 0x184   : > { %v4840_v10 = vadd.s32 4294967294, %v999_v25  ;;  %vm2638_vm14 = vcmp.lt.s32.totalorder %v5806_v24, 2  ;;  %v2653_v16 = vshll.u32 %v2613_v53, 8  ;;  %v2643_v43 = vsel %vm2639_vm13, %v2627_v47, %v2642_v26 }
 0x185   : > { %v2641_v22 = vsel %vm2637_vm12, %v2621_v5, %v2624_v41  ;;  %v2648_v35 = vsel %vm2638_vm14, %v2645_v63, %v2647_v58  ;;  %v2651_v61 = vsel %vm2639_vm13, %v2633_v48, %v2650_v39  ;;  %vm2489_vm1 = vweird.f32 %v5593_v4 }
 0x186   : > { %vm4841_vm0 = vcmp.lt.s32.totalorder %v4840_v10, 0  ;;  %v2652_v23 = vsel %vm2638_vm14, %v2649_v31, %v2651_v61  ;;  %v5879_v27 = vmul.u32.u64.low %v2653_v16, %v2648_v35  ;;  %v5880_v12 = vmul.u32.u64.high %v2653_v16, %v2648_v35, %v5879_v27 }
 0x187   : > { %v1002_v41 = vsel %vm4841_vm0, 0, %v4840_v10  ;;  %v5884_v9 = vmul.u32.u64.low %v2653_v16, %v2652_v23  ;;  %v5885_v46 = vmul.u32.u64.high %v2653_v16, %v2652_v23, %v5884_v9  ;;  %v5889_v60 = vand.u32 3, %v814_v45 }
 0x188   : > { %v1642_v19 = vadd.s32 3, %v814_v45  ;;  %v2490_v48 = vadd.s32 3, %v2486_v1  ;;  %v1007_v29 = vsub.s32 4294967266, %v1002_v41  ;;  %v1003_v25 = vsub.s32 32, %v1002_v41  ;;  %v5899_v1 = vld [vmem:[%s7482_s3 + $0x1] ss:$2 sm:$0xff] }
 0x189   : > { %v2644_v26 = vsel %vm2638_vm14, %v2641_v22, %v2643_v43  ;;  %v4823_v58 = vadd.f32 -0.5, %v5834_v30  ;;  %vm3327_vm2 = vcmp.eq.s32.totalorder %v3322_v37, 2  ;;  %v2663_v31 = vadd.s32 1, %v5880_v12 }
 0x18a   : > { %v5887_v47 = vpop.eup %5134  ;;  %v1008_v5 = vadd.s32 127, %v1007_v29  ;;  %vm3324_vm3 = vcmp.eq.s32.totalorder %v3322_v37, 0  ;;  %v987_v45 = vadd.s32 %v5763_v14, %v5760_v50  ;;  %vm2662_vm4 = vc.u32 %v5885_v46, %v5879_v27 }
 0x18b   : > { %v5137_v53 = vpop.eup %5136  ;;  %v2497_v63 = vxor.u32 2147483648, %v5887_v47  ;;  %vm3323_vm5 = vcmp.lt.s32.totalorder %v3322_v37, 2  ;;  %v2660_v43 = vmul.u32 %v2653_v16, %v2644_v26  ;;  %v2664_v23 = vsel %vm2662_vm4, %v2663_v31, %v5880_v12 }
 0x18c   : > { %v2494_v39 = vxor.u32 2147483648, %v5137_v53  ;;  %v1009_v22 = vshll.u32 %v1008_v5, 23  ;;  %v1005_v61 = vshrl.u32 %v987_v45, %v1003_v25  ;;  %v5907_v9 = vmul.f32 6.2831855, %v4823_v58 }
 0x18d   : > { %v3329_v10 = vsel %vm3327_vm2, %v2497_v63, %v5137_v53  ;;  %v1643_v29 = vand.u32 3, %v1642_v19  ;;  %v5914_v50 = vrot.slane %v5899_v1, %v4163_v15  ;;  %v2382_v14 = vmul.f32 1.5707964, %v5834_v30 }
 0x18e   : > { %v3326_v24 = vsel %vm3324_vm3, %v5887_v47, %v2494_v39  ;;  %v1004_v37 = vshll.u32 %v5825_v62, %v1002_v41  ;;  %v1010_v16 = vor.u32 4788187, %v1009_v22  ;;  %v2665_v25 = vadd.s32 %v2664_v23, %v2660_v43 }
 0x18f   : > { %v3330_v35 = vsel %vm3323_vm5, %v3326_v24, %v3329_v10  ;;  %v5139_v26 = vpop.eup %5138  ;;  %v2491_v12 = vand.u32 3, %v2490_v48  ;;  %v4077_v58 = vmul.f32 5.0, %v5854_v7  ;;  %v831_v5 = vand.u32 2139095040, %v5907_v9 }
 0x190   : > { %v3331_v57 = vsel %vm2489_vm1, nan, %v3330_v35  ;;  %v5141_v31 = vpop.eup %5140  ;;  %vm820_vm6 = vcmp.eq.s32.totalorder %v5889_v60, 0  ;;  %vm933_vm7 = vcmp.lt.s32.totalorder %v5603_v13, 0  ;;  %v1006_v15 = vor.u32 %v1005_v61, %v1004_v37 }
 0x191   : > { %5142 = vrcp.f32 %v3331_v57  ;;  %v2666_v10 = vadd.s32 536870912, %v2665_v25  ;;  %vm823_vm8 = vcmp.eq.s32.totalorder %v5889_v60, 2  ;;  %vm1645_vm9 = vcmp.eq.s32.totalorder %v1643_v29, 0 }
 0x192   : > { %v832_v57 = vshrl.u32 %v831_v5, 23  ;;  %v5924_v62 = vmin.f32 %v2382_v14, 1.5706964  ;;  %v824_v41 = vxor.u32 2147483648, %v5139_v26  ;;  %vm1648_vm10 = vcmp.eq.s32.totalorder %v1643_v29, 2 }
 0x193   : > { %v1011_v7 = vand.u32 2147483647, %v1010_v16  ;;  %v5926_v48 = vshrl.u32 %v2666_v10, 30  ;;  %v821_v45 = vxor.u32 2147483648, %v5141_v31  ;;  %vm2493_vm11 = vcmp.eq.s32.totalorder %v2491_v12, 0 }
 0x194   : > { %vm2496_vm12 = vcmp.eq.s32.totalorder %v2491_v12, 2  ;;  %v4834_v24 = vadd.s32 4294967169, %v832_v57  ;;  %vm817_vm13 = vweird.f32 %v5591_v3  ;;  %v1013_v43 = vcvt.s32.f32 %v1006_v15 }
 0x195   : > { %v2498_v22 = vsel %vm2496_vm12, %v2497_v63, %v5137_v53  ;;  %v1017_v35 = vsub.s32 4, %v5804_v8  ;;  %v2668_v61 = vshll.u32 %v5926_v48, 30  ;;  %v2495_v23 = vsel %vm2493_vm11, %v5887_v47, %v2494_v39 }
 0x196   : > { %v7486_v14 = vand.u32 2147483647, %v5907_v9  ;;  %v838_v37 = vadd.s32 1, %v4834_v24  ;;  %v2504_v16 = vand.u32 2139095040, %v5924_v62  ;;  %v825_v5 = vsel %vm823_vm8, %v824_v41, %v5141_v31 }
 0x197   : > { %vm2492_vm14 = vcmp.lt.s32.totalorder %v2491_v12, 2  ;;  %v1014_v10 = vmul.f32 %v1013_v43, %v1011_v7  ;;  %v5936_v57 = vsub.s32 %v2665_v25, %v2668_v61  ;;  %v822_v53 = vsel %vm820_vm6, %v5139_v26, %v821_v45 }
 0x198   : > { %v1647_v63 = vsel %vm1645_vm9, %v5139_v26, %v821_v45  ;;  %v1650_v15 = vsel %vm1648_vm10, %v824_v41, %v5141_v31  ;;  %vm839_vm0 = vcmp.gt.s32.totalorder %v838_v37, 0  ;;  %vm819_vm2 = vcmp.lt.s32.totalorder %v5889_v60, 2 }
 0x199   : > { %vm1644_vm3 = vcmp.lt.s32.totalorder %v1643_v29, 2  ;;  %v2499_v47 = vsel %vm2492_vm14, %v2495_v23, %v2498_v22  ;;  %v2671_v39 = vsub.s32 0, %v5936_v57  ;;  %v1018_v12 = vsel %vm933_vm7, %v1017_v35, %v5804_v8 }
 0x19a   : > { %v835_v25 = vand.u32 8388607, %v7486_v14  ;;  %v840_v7 = vsel %vm839_vm0, %v838_v37, 0  ;;  %v2505_v24 = vshrl.u32 %v2504_v16, 23  ;;  %v826_v43 = vsel %vm819_vm2, %v822_v53, %v825_v5 }
 0x19b   : > { %v1651_v26 = vsel %vm1644_vm3, %v1647_v63, %v1650_v15  ;;  %v1015_v45 = vxor.u32 2147483648, %v1014_v10  ;;  %v4903_v31 = vmin.u32 %v2671_v39, %v5936_v57  ;;  %v2500_v60 = vsel %vm2489_vm1, nan, %v2499_v47 }
 0x19c   : > { %vm5954_vm4 = vcmp.le.f32.partialorder %v931_v18, 0.7853982  ;;  %v5958_v8 = vand.u32 31, %v840_v7  ;;  %v7485_v22 = vand.u32 2147483647, %v5924_v62  ;;  %v4136_v61 = vrot.slane %v4077_v58, 3 }
 0x19d   : > { %v5963_v23 = vsel %vm5954_vm4, 0, %v1018_v12  ;;  %v2673_v37 = vclz %v4903_v31  ;;  %v827_v4 = vsel %vm817_vm13, nan, %v826_v43  ;;  %v1652_v18 = vsel %vm817_vm13, nan, %v1651_v26 }
 0x19e   : > { %v5143_v41 = vpop.eup %5142  ;;  %v836_v16 = vor.u32 8388608, %v835_v25  ;;  %v4898_v5 = vadd.s32 4294967169, %v2505_v24  ;;  %v1016_v15 = vsel %vm933_vm7, %v1015_v45, %v1014_v10  ;;  %v2661_v58 = vadd.s32 %v5879_v27, %v5885_v46 }
 0x19f   : > { %v4061_v35 = vmul.f32 %v5143_v41, %v2500_v60  ;;  %v4904_v47 = vadd.s32 4294967294, %v2673_v37  ;;  %v2691_v39 = vsub.s32 4, %v5926_v48  ;;  %v5975_v12 = vsub.s32 32, %v5958_v8 }
 0x1a0   : > { %v5979_v3 = vand.u32 8388607, %v7485_v22  ;;  %v5984_v10 = vsel %vm5954_vm4, %v5603_v13, %v1016_v15  ;;  %v5986_v27 = vshll.u32 %v836_v16, 8  ;;  %v5988_v46 = vadd.s32 1, %v4898_v5 }
 0x1a1   : > { %v4069_v53 = vsub.f32 0.0, %v4061_v35  ;;  %v4096_v63 = vrot.slane %v4061_v35, 1  ;;  %vm4905_vm1 = vcmp.lt.s32.totalorder %v4904_v47, 0  ;;  %vm4587_vm5 = vcmask 1040384  }
 0x1a2   : > { %v2676_v26 = vsel %vm4905_vm1, 0, %v4904_v47  ;;  %vm4596_vm6 = vcmask 1041408   ;;  %vm4605_vm7 = vcmask 1042432   ;;  %vm4614_vm8 = vcmask 1043456  }
 0x1a3   : > { %v4112_v25 = vmul.f32 %v4096_v63, %v1652_v18  ;;  %v4225_v24 = vmul.f32 %v4096_v63, %v827_v4  ;;  %v4322_v43 = vrot.slane %v4069_v53, 2  ;;  %v2677_v35 = vsub.s32 32, %v2676_v26 }
 0x1a4   : > { %v2681_v37 = vsub.s32 4294967266, %v2676_v26  ;;  %v5990_v63 = vshrl.u32 %v840_v7, 5  ;;  %v846_v53 = vshrl.u32 %v5382_v38, %v5975_v12  ;;  %v2678_v16 = vshll.u32 %v5936_v57, %v2676_v26 }
 0x1a5   : > { %v4120_v45 = vsub.f32 %v827_v4, %v4112_v25  ;;  %v4233_v31 = vadd.f32 %v4225_v24, %v1652_v18  ;;  %v4338_v41 = vmul.f32 %v4322_v43, %v1652_v18  ;;  %v4386_v60 = vmul.f32 %v4322_v43, %v827_v4 }
 0x1a6   : > { %v2679_v5 = vshrl.u32 %v2661_v58, %v2677_v35  ;;  %v2682_v25 = vadd.s32 127, %v2681_v37  ;;  %v849_v24 = vshrl.u32 %v7500_v40, %v5975_v12  ;;  %v848_v57 = vshll.u32 %v5382_v38, %v5958_v8 }
 0x1a7   : > { %v4152_v29 = vmul.f32 %v4136_v61, %v4120_v45  ;;  %v4241_v15 = vmul.f32 %v4233_v31, %v4136_v61  ;;  %v4346_v22 = vsub.f32 %v827_v4, %v4338_v41  ;;  %v4394_v47 = vadd.f32 %v4386_v60, %v1652_v18 }
 0x1a8   : > { %v2680_v45 = vor.u32 %v2679_v5, %v2678_v16  ;;  %v845_v4 = vshll.u32 %v5381_v34, %v5958_v8  ;;  %v852_v18 = vshrl.u32 %v7496_v42, %v5975_v12  ;;  %vm4623_vm9 = vcmask 1044480  }
 0x1a9   : > { %v4201_v43 = vadd.f32 %v5845_v17, %v4152_v29  ;;  %v4290_v7 = vadd.f32 %v5914_v50, %v4241_v15  ;;  %v4354_v14 = vmul.f32 %v4346_v22, %v4136_v61  ;;  %v4402_v19 = vmul.f32 %v4394_v47, %v4136_v61 }
 0x1aa   : > { %vm7488_vm10 = vcmask 1046528   ;;  %v2683_v22 = vshll.u32 %v2682_v25, 23  ;;  %v847_v61 = vor.u32 %v846_v53, %v845_v4  ;;  %v851_v60 = vshll.u32 %v7500_v40, %v5958_v8 }
 0x1ab   : > { %v4209_v58 = vmax.f32 %v4201_v43, 0.0  ;;  %v4298_v26 = vmax.f32 %v4290_v7, 0.0  ;;  %v4362_v31 = vadd.f32 %v4354_v14, %v5845_v17  ;;  %v4410_v41 = vadd.f32 %v4402_v19, %v5914_v50 }
 0x1ac   : > { %v855_v35 = vshrl.u32 %v7494_v44, %v5975_v12  ;;  %vm2607_vm11 = vcmp.lt.s32.totalorder %v5720_v59, 0  ;;  %v850_v47 = vor.u32 %v849_v24, %v848_v57  ;;  %vm6014_vm12 = vcmp.le.f32.partialorder %v2605_v6, 0.7853982 }
 0x1ad   : > { %v4306_v37 = vmin.f32 %v4298_v26, 31.0  ;;  %v4370_v29 = vmax.f32 %v4362_v31, 0.0  ;;  %v4418_v15 = vmax.f32 %v4410_v41, 0.0  ;;  %v2684_v50 = vor.u32 4788187, %v2683_v22 }
 0x1ae   : > { %v2687_v19 = vcvt.s32.f32 %v2680_v45  ;;  %v853_v14 = vor.u32 %v852_v18, %v851_v60  ;;  %v854_v53 = vshll.u32 %v7496_v42, %v5958_v8  ;;  %v4217_v16 = vmin.f32 %v4209_v58, 31.0 }
 0x1af   : > { %v4378_v5 = vmin.f32 %v4370_v29, 31.0  ;;  %v4426_v25 = vmin.f32 %v4418_v15, 31.0  ;;  %v4442_v43 = vrot.slane %v4306_v37, 7  ;;  %v2685_v7 = vand.u32 2147483647, %v2684_v50 }
 0x1b0   : > { %v856_v4 = vor.u32 %v855_v35, %v854_v53  ;;  %v857_v24 = vshll.u32 %v7494_v44, %v5958_v8  ;;  %v858_v6 = vshrl.u32 %v7492_v51, %v5975_v12  ;;  %vm2512_vm13 = vcmp.gt.s32.totalorder %v5988_v46, 0 }
 0x1b1   : > { %v4466_v57 = vrot.slane %v4378_v5, 6  ;;  %v4490_v26 = vrot.slane %v4426_v25, 5  ;;  %v4588_v45 = vsel %vm4587_vm5, %v4217_v16, %v4442_v43  ;;  %v2688_v18 = vmul.f32 %v2687_v19, %v2685_v7 }
 0x1b2   : > { %v844_v58 = vshrl.u32 %v5381_v34, %v5975_v12  ;;  %v859_v31 = vor.u32 %v858_v6, %v857_v24  ;;  %vm860_vm14 = vcmp.lt.s32.totalorder %v5990_v63, 1  ;;  %vm862_vm0 = vcmp.lt.s32.totalorder %v5990_v63, 3 }
 0x1b3   : > { %v4597_v41 = vsel %vm4596_vm6, %v4588_v45, %v4466_v57  ;;  %vm863_vm2 = vcmp.lt.s32.totalorder %v5990_v63, 4  ;;  %v868_v8 = vsel %vm860_vm14, %v847_v61, %v850_v47  ;;  %v2689_v60 = vxor.u32 2147483648, %v2688_v18 }
 0x1b4   : > { %v4606_v22 = vsel %vm4605_vm7, %v4597_v41, %v4490_v26  ;;  %v865_v35 = vsel %vm863_vm2, %v853_v14, 2102212464  ;;  %v869_v12 = vsel %vm863_vm2, %v856_v4, 920167782  ;;  %v7517_v37 = vrot.slane %v5705_v32, 2 }
 0x1b5   : > { %vm861_vm3 = vcmp.lt.s32.totalorder %v5990_v63, 2  ;;  %v864_v15 = vsel %vm860_vm14, %v844_v58, %v847_v61  ;;  %v870_v50 = vsel %vm862_vm0, %v853_v14, %v869_v12  ;;  %v2690_v53 = vsel %vm2607_vm11, %v2689_v60, %v2688_v18 }
 0x1b6   : > { %v4615_v29 = vsel %vm4614_vm8, %v4606_v22, %v7517_v37  ;;  %v871_v16 = vsel %vm861_vm3, %v868_v8, %v870_v50  ;;  %v872_v32 = vsel %vm860_vm14, %v850_v47, %v853_v14  ;;  %v7518_v5 = vrot.slane %v5578_v54, 5 }
 0x1b7   : > { %v4624_v19 = vsel %vm4623_vm9, %v4615_v29, %v5776_v2  ;;  %v2693_v61 = vsel %vm6014_vm12, %v5720_v59, %v2690_v53  ;;  %v866_v2 = vsel %vm862_vm0, %v850_v47, %v865_v35  ;;  %v873_v43 = vsel %vm863_vm2, %v859_v31, 1326507024 }
 0x1b8   : > { %v4633_v25 = vsel %vm7488_vm10, %v4624_v19, %v7518_v5  ;;  %5144 = vcosq.f32 %v2693_v61  ;;  %v874_v54 = vsel %vm862_vm0, %v856_v4, %v873_v43  ;;  %v2692_v47 = vsel %vm2607_vm11, %v2691_v39, %v5926_v48 }
 0x1b9   : > { %4641 = vst [vmem:[%s6066_s21] sm:$0xff] %v4633_v25  ;;  %v6072_v14 = vmul.u32.u64.low %v5986_v27, %v871_v16  ;;  %v6073_v7 = vmul.u32.u64.high %v5986_v27, %v871_v16, %v6072_v14  ;;  %5146 = vsinq.f32 %v2693_v61  ;;  %v875_v24 = vsel %vm861_vm3, %v872_v32, %v874_v54 }
 0x1ba   : > { %v2513_v6 = vsel %vm2512_vm13, %v5988_v46, 0  ;;  %v867_v4 = vsel %vm861_vm3, %v864_v15, %v866_v2  ;;  %v6089_v57 = vmul.u32.u64.low %v5986_v27, %v875_v24  ;;  %v6090_v26 = vmul.u32.u64.high %v5986_v27, %v875_v24, %v6089_v57 }
 0x1bb   : > { %v2515_v45 = vand.u32 31, %v2513_v6  ;;  %v7519_v18 = vmax.f32 %v5587_v0, 0.0  ;;  %v6097_v48 = vadd.s32 3, %v5963_v23  ;;  %v4545_v39 = vrot.slane %v5581_v56, 2 }
 0x1bc   : > { %v4546_v31 = vrot.slane %v5769_v49, 2  ;;  %5148 = vcosq.f32 %v5984_v10  ;;  %v886_v46 = vadd.s32 1, %v6073_v7  ;;  %v2509_v63 = vor.u32 8388608, %v5979_v3 }
 0x1bd   : > { %v6094_v58 = vmin.f32 %v7519_v18, 1.0  ;;  %v2516_v41 = vsub.s32 32, %v2515_v45  ;;  %v2694_v8 = vsel %vm6014_vm12, 0, %v2692_v47  ;;  %v883_v0 = vmul.u32 %v5986_v27, %v867_v4 }
 0x1be   : > { %v6107_v22 = vshrl.u32 %v2513_v6, 5  ;;  %v2521_v60 = vshll.u32 %v5382_v38, %v2515_v45  ;;  %vm885_vm4 = vc.u32 %v6090_v26, %v6072_v14  ;;  %v2524_v12 = vshll.u32 %v7500_v40, %v2515_v45 }
 0x1bf   : > { %v2519_v35 = vshrl.u32 %v5382_v38, %v2516_v41  ;;  %v2527_v37 = vshll.u32 %v7496_v42, %v2515_v45  ;;  %v887_v3 = vsel %vm885_vm4, %v886_v46, %v6073_v7  ;;  %v2522_v17 = vshrl.u32 %v7500_v40, %v2516_v41 }
 0x1c0   : > { %v2525_v29 = vshrl.u32 %v7496_v42, %v2516_v41  ;;  %v2528_v27 = vshrl.u32 %v7494_v44, %v2516_v41  ;;  %5150 = vsinq.f32 %v5984_v10  ;;  %v888_v15 = vadd.s32 %v887_v3, %v883_v0 }
 0x1c1   : > { %v2530_v50 = vshll.u32 %v7494_v44, %v2515_v45  ;;  %v2531_v19 = vshrl.u32 %v7492_v51, %v2516_v41  ;;  %v2518_v53 = vshll.u32 %v5381_v34, %v2515_v45  ;;  %v2523_v16 = vor.u32 %v2522_v17, %v2521_v60 }
 0x1c2   : > { %v2526_v32 = vor.u32 %v2525_v29, %v2524_v12  ;;  %v2529_v5 = vor.u32 %v2528_v27, %v2527_v37  ;;  %vm2697_vm1 = vweird.f32 %v5720_v59  ;;  %v3528_v25 = vand.u32 3, %v2694_v8 }
 0x1c3   : > { %v889_v61 = vadd.s32 536870912, %v888_v15  ;;  %v2532_v2 = vor.u32 %v2531_v19, %v2530_v50  ;;  %vm2533_vm11 = vcmp.lt.s32.totalorder %v6107_v22, 1  ;;  %v2520_v43 = vor.u32 %v2519_v35, %v2518_v53 }
 0x1c4   : > { %vm2536_vm12 = vcmp.lt.s32.totalorder %v6107_v22, 4  ;;  %v2545_v10 = vsel %vm2533_vm11, %v2523_v16, %v2526_v32  ;;  %v6128_v54 = vshll.u32 %v2509_v63, 8  ;;  %vm2535_vm13 = vcmp.lt.s32.totalorder %v6107_v22, 3 }
 0x1c5   : > { %v6130_v7 = vshrl.u32 %v889_v61, 30  ;;  %v2542_v47 = vsel %vm2536_vm12, %v2529_v5, 920167782  ;;  %v2546_v24 = vsel %vm2536_vm12, %v2532_v2, 1326507024  ;;  %v6137_v6 = vpop.eup %5144  ;;  %v2698_v4 = vadd.s32 3, %v2694_v8 }
 0x1c6   : > { %vm2534_vm14 = vcmp.lt.s32.totalorder %v6107_v22, 2  ;;  %v2547_v57 = vsel %vm2535_vm13, %v2529_v5, %v2546_v24  ;;  %v4825_v45 = vadd.f32 -0.5, %v5852_v20  ;;  %v5147_v18 = vpop.eup %5146  ;;  %v2705_v46 = vxor.u32 2147483648, %v6137_v6 }
 0x1c7   : > { %vm3530_vm0 = vcmp.eq.s32.totalorder %v3528_v25, 0  ;;  %v891_v63 = vshll.u32 %v6130_v7, 30  ;;  %v2548_v0 = vsel %vm2534_vm14, %v2545_v10, %v2547_v57  ;;  %v2702_v60 = vxor.u32 2147483648, %v5147_v18 }
 0x1c8   : > { %vm3533_vm2 = vcmp.eq.s32.totalorder %v3528_v25, 2  ;;  %v2541_v8 = vsel %vm2533_vm11, %v2520_v43, %v2523_v16  ;;  %v2543_v35 = vsel %vm2535_vm13, %v2526_v32, %v2542_v47  ;;  %vm3529_vm3 = vcmp.lt.s32.totalorder %v3528_v25, 2 }
 0x1c9   : > { %v3535_v12 = vsel %vm3533_vm2, %v2705_v46, %v5147_v18  ;;  %v6151_v37 = vsub.s32 %v888_v15, %v891_v63  ;;  %v6154_v3 = vmul.u32.u64.low %v6128_v54, %v2548_v0  ;;  %v6155_v17 = vmul.u32.u64.high %v6128_v54, %v2548_v0, %v6154_v3  ;;  %v5149_v29 = vpop.eup %5148 }
 0x1ca   : > { %v3532_v27 = vsel %vm3530_vm0, %v6137_v6, %v2702_v60  ;;  %v2538_v50 = vsel %vm2536_vm12, %v2526_v32, 2102212464  ;;  %v6160_v19 = vmul.f32 6.2831855, %v4825_v45  ;;  %v2517_v61 = vshrl.u32 %v5381_v34, %v2516_v41 }
 0x1cb   : > { %v3536_v53 = vsel %vm3529_vm3, %v3532_v27, %v3535_v12  ;;  %v894_v5 = vsub.s32 0, %v6151_v37  ;;  %v2544_v15 = vsel %vm2534_vm14, %v2541_v8, %v2543_v35  ;;  %v1024_v2 = vand.u32 3, %v5963_v23 }
 0x1cc   : > { %v1851_v10 = vand.u32 3, %v6097_v48  ;;  %v3537_v25 = vsel %vm2697_vm1, nan, %v3536_v53  ;;  %v6175_v32 = vsel %vm7487_vm15, %v4545_v39, %v4546_v31  ;;  %v2537_v47 = vsel %vm2533_vm11, %v2517_v61, %v2520_v43 }
 0x1cd   : > { %5152 = vrcp.f32 %v3537_v25  ;;  %v4835_v41 = vmin.u32 %v894_v5, %v6151_v37  ;;  %v2539_v23 = vsel %vm2535_vm13, %v2523_v16, %v2538_v50  ;;  %v5151_v48 = vpop.eup %5150  ;;  %v2699_v24 = vand.u32 3, %v2698_v4 }
 0x1ce   : > { %v4079_v57 = vmul.f32 5.0, %v6094_v58  ;;  %v6184_v49 = vmul.u32.u64.low %v6128_v54, %v2544_v15  ;;  %v6185_v45 = vmul.u32.u64.high %v6128_v54, %v2544_v15, %v6184_v49  ;;  %v4171_v39 = vsub.s32 2, %v5783_v33 }
 0x1cf   : > { %v896_v31 = vclz %v4835_v41  ;;  %v1037_v63 = vand.u32 2139095040, %v6160_v19  ;;  %v2384_v0 = vmul.f32 1.5707964, %v5852_v20  ;;  %vm1026_vm4 = vcmp.eq.s32.totalorder %v1024_v2, 0 }
 0x1d0   : > { %vm1029_vm11 = vcmp.eq.s32.totalorder %v1024_v2, 2  ;;  %vm1853_vm12 = vcmp.eq.s32.totalorder %v1851_v10, 0  ;;  %v2540_v16 = vsel %vm2534_vm14, %v2537_v47, %v2539_v23  ;;  %v1030_v43 = vxor.u32 2147483648, %v5149_v29 }
 0x1d1   : > { %v4836_v58 = vadd.s32 4294967294, %v896_v31  ;;  %vm2558_vm13 = vc.u32 %v6155_v17, %v6184_v49  ;;  %v1038_v4 = vshrl.u32 %v1037_v63, 23  ;;  %v1027_v8 = vxor.u32 2147483648, %v5151_v48 }
 0x1d2   : > { %vm2701_vm0 = vcmp.eq.s32.totalorder %v2699_v24, 0  ;;  %vm2704_vm2 = vcmp.eq.s32.totalorder %v2699_v24, 2  ;;  %v2559_v35 = vadd.s32 1, %v6185_v45  ;;  %vm1023_vm3 = vweird.f32 %v5603_v13 }
 0x1d3   : > { %vm4837_vm15 = vcmp.lt.s32.totalorder %v4836_v58, 0  ;;  %v2556_v12 = vmul.u32 %v6128_v54, %v2540_v16  ;;  %v4842_v3 = vadd.s32 4294967169, %v1038_v4  ;;  %v6198_v27 = vmin.f32 %v2384_v0, 1.5706964 }
 0x1d4   : > { %v2703_v22 = vsel %vm2701_vm0, %v6137_v6, %v2702_v60  ;;  %v2706_v50 = vsel %vm2704_vm2, %v2705_v46, %v5147_v18  ;;  %v899_v53 = vsel %vm4837_vm15, 0, %v4836_v58  ;;  %v2560_v5 = vsel %vm2558_vm13, %v2559_v35, %v6185_v45 }
 0x1d5   : > { %v1031_v61 = vsel %vm1029_vm11, %v1030_v43, %v5151_v48  ;;  %vm1856_vm14 = vcmp.eq.s32.totalorder %v1851_v10, 2  ;;  %vm2700_vm10 = vcmp.lt.s32.totalorder %v2699_v24, 2  ;;  %v2561_v15 = vadd.s32 %v2560_v5, %v2556_v12 }
 0x1d6   : > { %v1028_v25 = vsel %vm1026_vm4, %v5149_v29, %v1027_v8  ;;  %v1858_v41 = vsel %vm1856_vm14, %v1030_v43, %v5151_v48  ;;  %v904_v47 = vsub.s32 4294967266, %v899_v53  ;;  %v1044_v23 = vadd.s32 1, %v4842_v3 }
 0x1d7   : > { %v1855_v54 = vsel %vm1853_vm12, %v5149_v29, %v1027_v8  ;;  %v2707_v31 = vsel %vm2700_vm10, %v2703_v22, %v2706_v50  ;;  %v2562_v63 = vadd.s32 536870912, %v2561_v15  ;;  %v1034_v6 = vand.u32 2147483647, %v6160_v19 }
 0x1d8   : > { %vm1025_vm0 = vcmp.lt.s32.totalorder %v1024_v2, 2  ;;  %v4138_v18 = vrot.slane %v4079_v57, 3  ;;  %vm1045_vm15 = vcmp.gt.s32.totalorder %v1044_v23, 0  ;;  %v2712_v46 = vand.u32 2139095040, %v6198_v27 }
 0x1d9   : > { %v1032_v60 = vsel %vm1025_vm0, %v1028_v25, %v1031_v61  ;;  %vm1852_vm11 = vcmp.lt.s32.totalorder %v1851_v10, 2  ;;  %v4172_v24 = vrot.slane %v5823_v55, %v4171_v39  ;;  %v6208_v45 = vshrl.u32 %v2562_v63, 30 }
 0x1da   : > { %v5153_v48 = vpop.eup %5152  ;;  %v1859_v0 = vsel %vm1852_vm11, %v1855_v54, %v1858_v41  ;;  %v2708_v29 = vsel %vm2697_vm1, nan, %v2707_v31  ;;  %v900_v16 = vsub.s32 32, %v899_v53  ;;  %v905_v43 = vadd.s32 127, %v904_v47 }
 0x1db   : > { %v4063_v58 = vmul.f32 %v5153_v48, %v2708_v29  ;;  %v2564_v2 = vshll.u32 %v6208_v45, 30  ;;  %v1041_v57 = vand.u32 8388607, %v1034_v6  ;;  %v1046_v4 = vsel %vm1045_vm15, %v1044_v23, 0 }
 0x1dc   : > { %v1033_v10 = vsel %vm1023_vm3, nan, %v1032_v60  ;;  %v4261_v55 = vrot.slane %v5899_v1, %v4171_v39  ;;  %v884_v8 = vadd.s32 %v6072_v14, %v6090_v26  ;;  %v2713_v35 = vshrl.u32 %v2712_v46, 23 }
 0x1dd   : > { %v1860_v59 = vsel %vm1023_vm3, nan, %v1859_v0  ;;  %v4071_v12 = vsub.f32 0.0, %v4063_v58  ;;  %v4098_v3 = vrot.slane %v4063_v58, 1  ;;  %v6222_v22 = vsub.s32 %v2561_v15, %v2564_v2 }
 0x1de   : > { %v902_v50 = vshrl.u32 %v884_v8, %v900_v16  ;;  %v906_v5 = vshll.u32 %v905_v43, 23  ;;  %v6226_v61 = vadd.s32 %v6184_v49, %v6155_v17  ;;  %v6228_v25 = vand.u32 31, %v1046_v4 }
 0x1df   : > { %v4114_v1 = vmul.f32 %v4098_v3, %v1860_v59  ;;  %v4227_v39 = vmul.f32 %v4098_v3, %v1033_v10  ;;  %v4324_v41 = vrot.slane %v4071_v12, 2  ;;  %v1042_v14 = vor.u32 8388608, %v1041_v57 }
 0x1e0   : > { %v901_v26 = vshll.u32 %v6151_v37, %v899_v53  ;;  %v2567_v13 = vsub.s32 0, %v6222_v22  ;;  %v2709_v47 = vand.u32 2147483647, %v6198_v27  ;;  %v4906_v15 = vadd.s32 4294967169, %v2713_v35 }
 0x1e1   : > { %v4122_v23 = vsub.f32 %v1033_v10, %v4114_v1  ;;  %v4235_v54 = vadd.f32 %v4227_v39, %v1860_v59  ;;  %v4340_v31 = vmul.f32 %v4324_v41, %v1860_v59  ;;  %v4388_v63 = vmul.f32 %v4324_v41, %v1033_v10 }
 0x1e2   : > { %v903_v46 = vor.u32 %v902_v50, %v901_v26  ;;  %v907_v17 = vor.u32 4788187, %v906_v5  ;;  %v4899_v49 = vmin.u32 %v2567_v13, %v6222_v22  ;;  %v1049_v60 = vsub.s32 32, %v6228_v25 }
 0x1e3   : > { %v4154_v48 = vmul.f32 %v4138_v18, %v4122_v23  ;;  %v4243_v0 = vmul.f32 %v4235_v54, %v4138_v18  ;;  %v4348_v29 = vsub.f32 %v1033_v10, %v4340_v31  ;;  %v4396_v16 = vadd.f32 %v4388_v63, %v1860_v59 }
 0x1e4   : > { %v2569_v37 = vclz %v4899_v49  ;;  %v6235_v53 = vshrl.u32 %v1046_v4, 5  ;;  %v6237_v43 = vshll.u32 %v1042_v14, 8  ;;  %v6239_v58 = vadd.s32 1, %v4906_v15 }
 0x1e5   : > { %v4203_v2 = vadd.f32 %v4172_v24, %v4154_v48  ;;  %v4292_v57 = vadd.f32 %v4261_v55, %v4243_v0  ;;  %v4356_v8 = vmul.f32 %v4348_v29, %v4138_v18  ;;  %v4404_v35 = vmul.f32 %v4396_v16, %v4138_v18 }
 0x1e6   : > { %v908_v12 = vand.u32 2147483647, %v907_v17  ;;  %v910_v3 = vcvt.s32.f32 %v903_v46  ;;  %v4900_v50 = vadd.s32 4294967294, %v2569_v37  ;;  %v1052_v5 = vshrl.u32 %v5382_v38, %v1049_v60 }
 0x1e7   : > { %v4211_v1 = vmax.f32 %v4203_v2, 0.0  ;;  %v4300_v39 = vmax.f32 %v4292_v57, 0.0  ;;  %v4364_v10 = vadd.f32 %v4356_v8, %v4172_v24  ;;  %v4412_v59 = vadd.f32 %v4404_v35, %v4261_v55 }
 0x1e8   : > { %vm4901_vm10 = vcmp.lt.s32.totalorder %v4900_v50, 0  ;;  %v1051_v4 = vshll.u32 %v5381_v34, %v6228_v25  ;;  %v1054_v41 = vshll.u32 %v5382_v38, %v6228_v25  ;;  %v1055_v14 = vshrl.u32 %v7500_v40, %v1049_v60 }
 0x1e9   : > { %v4308_v26 = vmin.f32 %v4300_v39, 31.0  ;;  %v4372_v18 = vmax.f32 %v4364_v10, 0.0  ;;  %v4420_v13 = vmax.f32 %v4412_v59, 0.0  ;;  %v1050_v15 = vshrl.u32 %v5381_v34, %v1049_v60 }
 0x1ea   : > { %v4219_v23 = vmin.f32 %v4211_v1, 31.0  ;;  %v911_v54 = vmul.f32 %v910_v3, %v908_v12  ;;  %v2572_v31 = vsel %vm4901_vm10, 0, %v4900_v50  ;;  %v1053_v63 = vor.u32 %v1052_v5, %v1051_v4 }
 0x1eb   : > { %v4380_v24 = vmin.f32 %v4372_v18, 31.0  ;;  %v4428_v55 = vmin.f32 %v4420_v13, 31.0  ;;  %v4444_v46 = vrot.slane %v4308_v26, 7  ;;  %v2573_v17 = vsub.s32 32, %v2572_v31 }
 0x1ec   : > { %vm2720_vm1 = vcmp.gt.s32.totalorder %v6239_v58, 0  ;;  %v2574_v49 = vshll.u32 %v6222_v22, %v2572_v31  ;;  %v2577_v48 = vsub.s32 4294967266, %v2572_v31  ;;  %v1056_v0 = vor.u32 %v1055_v14, %v1054_v41 }
 0x1ed   : > { %v1058_v29 = vshrl.u32 %v7496_v42, %v1049_v60  ;;  %v4468_v16 = vrot.slane %v4380_v24, 6  ;;  %v4492_v37 = vrot.slane %v4428_v55, 5  ;;  %v4590_v2 = vsel %vm4587_vm5, %v4219_v23, %v4444_v46 }
 0x1ee   : > { %v2575_v57 = vshrl.u32 %v6226_v61, %v2573_v17  ;;  %v2578_v8 = vadd.s32 127, %v2577_v48  ;;  %v1057_v35 = vshll.u32 %v7500_v40, %v6228_v25  ;;  %v1060_v12 = vshll.u32 %v7496_v42, %v6228_v25 }
 0x1ef   : > { %v1061_v3 = vshrl.u32 %v7494_v44, %v1049_v60  ;;  %v4599_v22 = vsel %vm4596_vm6, %v4590_v2, %v4468_v16  ;;  %v1063_v5 = vshll.u32 %v7494_v44, %v6228_v25  ;;  %v1064_v1 = vshrl.u32 %v7492_v51, %v1049_v60 }
 0x1f0   : > { %v2576_v50 = vor.u32 %v2575_v57, %v2574_v49  ;;  %v4608_v39 = vsel %vm4605_vm7, %v4599_v22, %v4492_v37  ;;  %v2579_v61 = vshll.u32 %v2578_v8, 23  ;;  %v1059_v10 = vor.u32 %v1058_v29, %v1057_v35 }
 0x1f1   : > { %v1062_v59 = vor.u32 %v1061_v3, %v1060_v12  ;;  %v7520_v4 = vrot.slane %v5715_v36, 2  ;;  %v1065_v14 = vor.u32 %v1064_v1, %v1063_v5  ;;  %vm1066_vm4 = vcmp.lt.s32.totalorder %v6235_v53, 1 }
 0x1f2   : > { %vm1067_vm12 = vcmp.lt.s32.totalorder %v6235_v53, 2  ;;  %v2580_v26 = vor.u32 4788187, %v2579_v61  ;;  %v2583_v60 = vcvt.s32.f32 %v2576_v50  ;;  %vm1069_vm13 = vcmp.lt.s32.totalorder %v6235_v53, 4 }
 0x1f3   : > { %v4617_v41 = vsel %vm4614_vm8, %v4608_v39, %v7520_v4  ;;  %v7521_v18 = vrot.slane %v5581_v56, 5  ;;  %vm7522_vm2 = vcmask 1046528   ;;  %vm1068_vm3 = vcmp.lt.s32.totalorder %v6235_v53, 3 }
 0x1f4   : > { %v4626_v25 = vsel %vm4623_vm9, %v4617_v41, %v6175_v32  ;;  %v1074_v36 = vsel %vm1066_vm4, %v1053_v63, %v1056_v0  ;;  %v1075_v23 = vsel %vm1069_vm13, %v1062_v59, 920167782  ;;  %v2581_v31 = vand.u32 2147483647, %v2580_v26 }
 0x1f5   : > { %v4635_v13 = vsel %vm7522_vm2, %v4626_v25, %v7521_v18  ;;  %v1071_v24 = vsel %vm1069_vm13, %v1059_v10, 2102212464  ;;  %v1076_v32 = vsel %vm1068_vm3, %v1059_v10, %v1075_v23  ;;  %v1078_v55 = vsel %vm1066_vm4, %v1056_v0, %v1059_v10 }
 0x1f6   : > { %4643 = vst [vmem:[%s6066_s21 + $0x10] sm:$0xff] %v4635_v13  ;;  %v912_v46 = vxor.u32 2147483648, %v911_v54  ;;  %v1077_v56 = vsel %vm1067_vm12, %v1074_v36, %v1076_v32  ;;  %v1079_v17 = vsel %vm1069_vm13, %v1065_v14, 1326507024  ;;  %v2716_v49 = vand.u32 8388607, %v2709_v47 }
 0x1f7   : > { %v2584_v48 = vmul.f32 %v2583_v60, %v2581_v31  ;;  %v1070_v29 = vsel %vm1066_vm4, %v1050_v15, %v1053_v63  ;;  %v1080_v16 = vsel %vm1068_vm3, %v1062_v59, %v1079_v17  ;;  %v2721_v37 = vsel %vm2720_vm1, %v6239_v58, 0 }
 0x1f8   : > { %v1072_v2 = vsel %vm1068_vm3, %v1056_v0, %v1071_v24  ;;  %v1081_v57 = vsel %vm1067_vm12, %v1078_v55, %v1080_v16  ;;  %v6298_v8 = vmul.u32.u64.low %v6237_v43, %v1077_v56  ;;  %v6299_v35 = vmul.u32.u64.high %v6237_v43, %v1077_v56, %v6298_v8 }
 0x1f9   : > { %vm830_vm14 = vcmp.lt.s32.totalorder %v5907_v9, 0  ;;  %vm2503_vm0 = vcmp.lt.s32.totalorder %v5924_v62, 0  ;;  %v2585_v15 = vxor.u32 2147483648, %v2584_v48  ;;  %v2587_v63 = vsub.s32 4, %v6208_v45 }
 0x1fa   : > { %v913_v58 = vsel %vm830_vm14, %v912_v46, %v911_v54  ;;  %v6308_v0 = vmul.u32.u64.low %v6237_v43, %v1081_v57  ;;  %v6309_v12 = vmul.u32.u64.high %v6237_v43, %v1081_v57, %v6308_v0  ;;  %v2723_v3 = vand.u32 31, %v2721_v37 }
 0x1fb   : > { %v7523_v22 = vand.u32 2147483647, %v5907_v9  ;;  %v7526_v5 = vand.u32 2147483647, %v5924_v62  ;;  %v2586_v54 = vsel %vm2503_vm0, %v2585_v15, %v2584_v48  ;;  %v1073_v39 = vsel %vm1067_vm12, %v1070_v29, %v1072_v2 }
 0x1fc   : > { %v914_v61 = vsub.s32 4, %v6130_v7  ;;  %v1092_v59 = vadd.s32 1, %v6299_v35  ;;  %v2717_v4 = vor.u32 8388608, %v2716_v49  ;;  %v2588_v14 = vsel %vm2503_vm0, %v2587_v63, %v6208_v45 }
 0x1fd   : > { %vm6313_vm15 = vcmp.le.f32.partialorder %v7523_v22, 0.7853982  ;;  %vm6319_vm11 = vcmp.le.f32.partialorder %v7526_v5, 0.7853982  ;;  %v2724_v53 = vsub.s32 32, %v2723_v3  ;;  %v1089_v25 = vmul.u32 %v6237_v43, %v1073_v39 }
 0x1fe   : > { %v2589_v10 = vsel %vm6319_vm11, %v5924_v62, %v2586_v54  ;;  %v916_v41 = vsel %vm6313_vm15, %v5907_v9, %v913_v58  ;;  %vm1091_vm10 = vc.u32 %v6309_v12, %v6298_v8  ;;  %v6341_v26 = vshrl.u32 %v2721_v37, 5 }
 0x1ff   : > { %5154 = vcosq.f32 %v2589_v10  ;;  %v1093_v60 = vsel %vm1091_vm10, %v1092_v59, %v6299_v35  ;;  %v2726_v18 = vshll.u32 %v5381_v34, %v2723_v3  ;;  %v2727_v13 = vshrl.u32 %v5382_v38, %v2724_v53 }
 0x200   : > { %5156 = vsinq.f32 %v2589_v10  ;;  %v2729_v36 = vshll.u32 %v5382_v38, %v2723_v3  ;;  %v1094_v23 = vadd.s32 %v1093_v60, %v1089_v25  ;;  %v2730_v45 = vshrl.u32 %v7500_v40, %v2724_v53  ;;  %v6381_v10 = vpop.f32.mrf.mxu0 }
 0x201   : > { %v2732_v31 = vshll.u32 %v7500_v40, %v2723_v3  ;;  %v2733_v43 = vshrl.u32 %v7496_v42, %v2724_v53  ;;  %v2728_v24 = vor.u32 %v2727_v13, %v2726_v18  ;;  %v2735_v32 = vshll.u32 %v7496_v42, %v2723_v3 }
 0x202   : > { %v2736_v55 = vshrl.u32 %v7494_v44, %v2724_v53  ;;  %v2738_v46 = vshll.u32 %v7494_v44, %v2723_v3  ;;  %v1095_v56 = vadd.s32 536870912, %v1094_v23  ;;  %v2731_v17 = vor.u32 %v2730_v45, %v2729_v36 }
 0x203   : > { %v2734_v49 = vor.u32 %v2733_v43, %v2732_v31  ;;  %v2739_v48 = vshrl.u32 %v7492_v51, %v2724_v53  ;;  %v915_v29 = vsel %vm830_vm14, %v914_v61, %v6130_v7  ;;  %vm2741_vm1 = vcmp.lt.s32.totalorder %v6341_v26, 1  ;;  %v561_v31 = vpop.f32.mrf.mxu0 }
 0x204   : > { %v2737_v16 = vor.u32 %v2736_v55, %v2735_v32  ;;  %v6358_v37 = vshll.u32 %v2717_v4, 8  ;;  %v6360_v2 = vshrl.u32 %v1095_v56, 30  ;;  %vm2744_vm4 = vcmp.lt.s32.totalorder %v6341_v26, 4 }
 0x205   : > { %v2740_v57 = vor.u32 %v2739_v48, %v2738_v46  ;;  %v2749_v35 = vsel %vm2741_vm1, %v2728_v24, %v2731_v17  ;;  %5158 = vcosq.f32 %v916_v41  ;;  %v2590_v15 = vsel %vm6319_vm11, 0, %v2588_v14 }
 0x206   : > { %vm2743_vm12 = vcmp.lt.s32.totalorder %v6341_v26, 3  ;;  %v2750_v7 = vsel %vm2744_vm4, %v2737_v16, 920167782  ;;  %v1097_v63 = vshll.u32 %v6360_v2, 30  ;;  %vm2742_vm13 = vcmp.lt.s32.totalorder %v6341_v26, 2 }
 0x207   : > { %v2751_v58 = vsel %vm2743_vm12, %v2734_v49, %v2750_v7  ;;  %v2753_v0 = vsel %vm2741_vm1, %v2731_v17, %v2734_v49  ;;  %5160 = vsinq.f32 %v916_v41  ;;  %v2746_v3 = vsel %vm2744_vm4, %v2734_v49, 2102212464 }
 0x208   : > { %v2752_v22 = vsel %vm2742_vm13, %v2749_v35, %v2751_v58  ;;  %v2754_v5 = vsel %vm2744_vm4, %v2740_v57, 1326507024  ;;  %v3425_v1 = vand.u32 3, %v2590_v15  ;;  %v6376_v54 = vsub.s32 %v1094_v23, %v1097_v63 }
 0x209   : > { %v2725_v39 = vshrl.u32 %v5381_v34, %v2724_v53  ;;  %v2755_v61 = vsel %vm2743_vm12, %v2737_v16, %v2754_v5  ;;  %v6386_v4 = vmul.u32.u64.low %v6358_v37, %v2752_v22  ;;  %v6387_v41 = vmul.u32.u64.high %v6358_v37, %v2752_v22, %v6386_v4  ;;  %v6410_v16 = vpop.f32.mrf.mxu1 }
 0x20a   : > { %v2756_v59 = vsel %vm2742_vm13, %v2753_v0, %v2755_v61  ;;  %v1100_v25 = vsub.s32 0, %v6376_v54  ;;  %v2747_v53 = vsel %vm2743_vm12, %v2731_v17, %v2746_v3  ;;  %v917_v13 = vsel %vm6313_vm15, 0, %v915_v29 }
 0x20b   : > { %v2745_v60 = vsel %vm2741_vm1, %v2725_v39, %v2728_v24  ;;  %v6398_v23 = vmul.u32.u64.low %v6358_v37, %v2756_v59  ;;  %v6399_v45 = vmul.u32.u64.high %v6358_v37, %v2756_v59, %v6398_v23  ;;  %v2594_v43 = vadd.s32 3, %v2590_v15  ;;  %v604_v63 = vpop.f32.mrf.mxu1 }
 0x20c   : > { %v5155_v14 = vpop.eup %5154  ;;  %vm3430_vm2 = vcmp.eq.s32.totalorder %v3425_v1, 2  ;;  %v4843_v55 = vmin.u32 %v1100_v25, %v6376_v54  ;;  %vm3426_vm3 = vcmp.lt.s32.totalorder %v3425_v1, 2  ;;  %vm3427_vm14 = vcmp.eq.s32.totalorder %v3425_v1, 0 }
 0x20d   : > { %v5157_v18 = vpop.eup %5156  ;;  %v2601_v36 = vxor.u32 2147483648, %v5155_v14  ;;  %v2748_v46 = vsel %vm2742_vm13, %v2745_v60, %v2747_v53  ;;  %v2767_v17 = vadd.s32 1, %v6387_v41  ;;  %v6406_v49 = vadd.f32 %v561_v31, %v5575_v52 }
 0x20e   : > { %v2598_v32 = vxor.u32 2147483648, %v5157_v18  ;;  %v1102_v50 = vclz %v4843_v55  ;;  %v694_v48 = vmax.f32 %v5834_v30, 0.0  ;;  %vm2593_vm0 = vweird.f32 %v5924_v62  ;;  %v6440_v62 = vld [vmem:[%s7482_s3] ss:$2 sm:$0xff] }
 0x20f   : > { %v3432_v24 = vsel %vm3430_vm2, %v2601_v36, %v5157_v18  ;;  %v1746_v57 = vadd.s32 3, %v917_v13  ;;  %v2595_v15 = vand.u32 3, %v2594_v43  ;;  %v2764_v7 = vmul.u32 %v6358_v37, %v2748_v46 }
 0x210   : > { %v3429_v56 = vsel %vm3427_vm14, %v5155_v14, %v2598_v32  ;;  %v4844_v26 = vadd.s32 4294967294, %v1102_v50  ;;  %vm2766_vm15 = vc.u32 %v6399_v45, %v6386_v4  ;;  %v4818_v0 = vmul.f32 -1.442695, %v6406_v49 }
 0x211   : > { %v3433_v29 = vsel %vm3426_vm3, %v3429_v56, %v3432_v24  ;;  %v2768_v30 = vsel %vm2766_vm15, %v2767_v17, %v6387_v41  ;;  %v702_v3 = vmin.f32 %v694_v48, 1.0  ;;  %v921_v22 = vand.u32 3, %v917_v13 }
 0x212   : > { %v3434_v35 = vsel %vm2593_vm0, nan, %v3433_v29  ;;  %v5159_v58 = vpop.eup %5158  ;;  %vm4845_vm11 = vcmp.lt.s32.totalorder %v4844_v26, 0  ;;  %v2769_v1 = vadd.s32 %v2768_v30, %v2764_v7  ;;  %v1090_v61 = vadd.s32 %v6298_v8, %v6309_v12 }
 0x213   : > { %5162 = vrcp.f32 %v3434_v35  ;;  %v1105_v5 = vsel %vm4845_vm11, 0, %v4844_v26  ;;  %v6422_v25 = vadd.f32 %v604_v63, %v5575_v52  ;;  %v1747_v60 = vand.u32 3, %v1746_v57 }
 0x214   : > { %v5161_v39 = vpop.eup %5160  ;;  %v1106_v59 = vsub.s32 32, %v1105_v5  ;;  %v1110_v37 = vsub.s32 4294967266, %v1105_v5  ;;  %vm2600_vm10 = vcmp.eq.s32.totalorder %v2595_v15, 2  ;;  %v2770_v53 = vadd.s32 536870912, %v2769_v1 }
 0x215   : > { %5164 = vpow2.f32 %v4818_v0  ;;  %v927_v41 = vxor.u32 2147483648, %v5159_v58  ;;  %v1107_v23 = vshll.u32 %v6376_v54, %v1105_v5  ;;  %v924_v43 = vxor.u32 2147483648, %v5161_v39 }
 0x216   : > { %v1108_v31 = vshrl.u32 %v1090_v61, %v1106_v59  ;;  %v1111_v13 = vadd.s32 127, %v1110_v37  ;;  %vm2597_vm1 = vcmp.eq.s32.totalorder %v2595_v15, 0  ;;  %v2602_v55 = vsel %vm2600_vm10, %v2601_v36, %v5157_v18 }
 0x217   : > { %v6425_v24 = vshrl.u32 %v2770_v53, 30  ;;  %v2599_v8 = vsel %vm2597_vm1, %v5155_v14, %v2598_v32  ;;  %v4820_v56 = vmul.f32 -1.442695, %v6422_v25  ;;  %vm923_vm4 = vcmp.eq.s32.totalorder %v921_v22, 0 }
 0x218   : > { %v1109_v12 = vor.u32 %v1108_v31, %v1107_v23  ;;  %v1112_v46 = vshll.u32 %v1111_v13, 23  ;;  %vm926_vm12 = vcmp.eq.s32.totalorder %v921_v22, 2  ;;  %vm1749_vm13 = vcmp.eq.s32.totalorder %v1747_v60, 0 }
 0x219   : > { %v2772_v50 = vshll.u32 %v6425_v24, 30  ;;  %v928_v17 = vsel %vm926_vm12, %v927_v41, %v5161_v39  ;;  %vm1752_vm2 = vcmp.eq.s32.totalorder %v1747_v60, 2  ;;  %vm2596_vm3 = vcmp.lt.s32.totalorder %v2595_v15, 2 }
 0x21a   : > { %v1113_v54 = vor.u32 4788187, %v1112_v46  ;;  %v925_v48 = vsel %vm923_vm4, %v5159_v58, %v924_v43  ;;  %v1754_v29 = vsel %vm1752_vm2, %v927_v41, %v5161_v39  ;;  %v2603_v57 = vsel %vm2596_vm3, %v2599_v8, %v2602_v55 }
 0x21b   : > { %v6429_v18 = vsub.s32 %v2769_v1, %v2772_v50  ;;  %v1751_v36 = vsel %vm1749_vm13, %v5159_v58, %v924_v43  ;;  %v1116_v32 = vcvt.s32.f32 %v1109_v12  ;;  %5166 = vpow2.f32 %v4820_v56  ;;  %v6449_v43 = vld [vmem:[%s7482_s3 + $0x1] ss:$2 sm:$0xff] }
 0x21c   : > { %v1114_v14 = vand.u32 2147483647, %v1113_v54  ;;  %v4078_v35 = vmul.f32 5.0, %v702_v3  ;;  %v4167_v26 = vsub.s32 1, %v5783_v33  ;;  %vm922_vm14 = vcmp.lt.s32.totalorder %v921_v22, 2 }
 0x21d   : > { %v2775_v7 = vsub.s32 0, %v6429_v18  ;;  %vm1748_vm15 = vcmp.lt.s32.totalorder %v1747_v60, 2  ;;  %v2604_v15 = vsel %vm2593_vm0, nan, %v2603_v57  ;;  %v929_v0 = vsel %vm922_vm14, %v925_v48, %v928_v17 }
 0x21e   : > { %v1117_v30 = vmul.f32 %v1116_v32, %v1114_v14  ;;  %v1755_v5 = vsel %vm1748_vm15, %v1751_v36, %v1754_v29  ;;  %vm920_vm11 = vweird.f32 %v5907_v9  ;;  %v4137_v59 = vrot.slane %v4078_v35, 3 }
 0x21f   : > { %v4907_v58 = vmin.u32 %v2775_v7, %v6429_v18  ;;  %v930_v41 = vsel %vm920_vm11, nan, %v929_v0  ;;  %v1756_v22 = vsel %vm920_vm11, nan, %v1755_v5  ;;  %v4168_v60 = vrot.slane %v6440_v62, %v4167_v26 }
 0x220   : > { %v5163_v63 = vpop.eup %5162  ;;  %v1118_v39 = vxor.u32 2147483648, %v1117_v30  ;;  %vm1036_vm0 = vcmp.lt.s32.totalorder %v6160_v19, 0  ;;  %v4257_v55 = vrot.slane %v6449_v43, %v4167_v26  ;;  %vm6454_vm10 = vcmp.le.f32.partialorder %v1034_v6, 0.7853982 }
 0x221   : > { %v4062_v1 = vmul.f32 %v5163_v63, %v2604_v15  ;;  %v2777_v37 = vclz %v4907_v58  ;;  %v622_v48 = vrot.slane %v5601_v11, 7  ;;  %v482_v32 = vadd.f32 %v6381_v10, %v5695_v28 }
 0x222   : > { %v5165_v53 = vpop.eup %5164  ;;  %v1119_v13 = vsel %vm1036_vm0, %v1118_v39, %v1117_v30  ;;  %v1120_v35 = vsub.s32 4, %v6360_v2  ;;  %v2765_v5 = vadd.s32 %v6386_v4, %v6399_v45  ;;  %v696_v4 = vmax.f32 %v5852_v20, 0.0 }
 0x223   : > { %v4070_v3 = vsub.f32 0.0, %v4062_v1  ;;  %v4097_v61 = vrot.slane %v4062_v1, 1  ;;  %v4908_v12 = vadd.s32 4294967294, %v2777_v37  ;;  %v673_v46 = vadd.f32 1.0, %v5165_v53 }
 0x224   : > { %v1122_v29 = vsel %vm6454_vm10, %v6160_v19, %v1119_v13  ;;  %v2795_v20 = vsub.s32 4, %v6425_v24  ;;  %vm7531_vm4 = vcmask 1045504   ;;  %vm2711_vm12 = vcmp.lt.s32.totalorder %v6198_v27, 0 }
 0x225   : > { %v4113_v23 = vmul.f32 %v4097_v61, %v1756_v22  ;;  %v4226_v31 = vmul.f32 %v4097_v61, %v930_v41  ;;  %v4323_v9 = vrot.slane %v4070_v3, 2  ;;  %vm4909_vm1 = vcmp.lt.s32.totalorder %v4908_v12, 0 }
 0x226   : > { %v2780_v26 = vsel %vm4909_vm1, 0, %v4908_v12  ;;  %5168 = vrcp.f32 %v673_v46  ;;  %vm7532_vm13 = vcmask 1046528   ;;  %vm2710_vm2 = vcmp.le.f32.partialorder %v2709_v47, 0.7853982 }
 0x227   : > { %v4121_v56 = vsub.f32 %v930_v41, %v4113_v23  ;;  %v4234_v50 = vadd.f32 %v4226_v31, %v1756_v22  ;;  %v4339_v17 = vmul.f32 %v4323_v9, %v1756_v22  ;;  %v4387_v54 = vmul.f32 %v4323_v9, %v930_v41 }
 0x228   : > { %v5167_v7 = vpop.eup %5166  ;;  %5170 = vcosq.f32 %v1122_v29  ;;  %v2781_v1 = vsub.s32 32, %v2780_v26  ;;  %v2785_v58 = vsub.s32 4294967266, %v2780_v26  ;;  %v2782_v9 = vshll.u32 %v6429_v18, %v2780_v26 }
 0x229   : > { %v4153_v57 = vmul.f32 %v4137_v59, %v4121_v56  ;;  %v4242_v36 = vmul.f32 %v4234_v50, %v4137_v59  ;;  %v4347_v14 = vsub.f32 %v930_v41, %v4339_v17  ;;  %v4395_v6 = vadd.f32 %v4387_v54, %v1756_v22 }
 0x22a   : > { %5172 = vsinq.f32 %v1122_v29  ;;  %v2783_v10 = vshrl.u32 %v2765_v5, %v2781_v1  ;;  %v2786_v53 = vadd.s32 127, %v2785_v58  ;;  %v675_v41 = vadd.f32 1.0, %v5167_v7 }
 0x22b   : > { %v4202_v63 = vadd.f32 %v4168_v60, %v4153_v57  ;;  %v4291_v15 = vadd.f32 %v4257_v55, %v4242_v36  ;;  %v4355_v30 = vmul.f32 %v4347_v14, %v4137_v59  ;;  %v4403_v0 = vmul.f32 %v4395_v6, %v4137_v59 }
 0x22c   : > { %v638_v59 = vsub.f32 %v5601_v11, %v622_v48  ;;  %v2787_v45 = vshll.u32 %v2786_v53, 23  ;;  %5174 = vrcp.f32 %v675_v41  ;;  %v1121_v18 = vsel %vm1036_vm0, %v1120_v35, %v6360_v2 }
 0x22d   : > { %v4210_v39 = vmax.f32 %v4202_v63, 0.0  ;;  %v4299_v3 = vmax.f32 %v4291_v15, 0.0  ;;  %v4363_v61 = vadd.f32 %v4355_v30, %v4168_v60  ;;  %v4411_v37 = vadd.f32 %v4403_v0, %v4257_v55 }
 0x22e   : > { %v2784_v60 = vor.u32 %v2783_v10, %v2782_v9  ;;  %v4543_v55 = vrot.slane %v482_v32, 2  ;;  %v2788_v50 = vor.u32 4788187, %v2787_v45  ;;  %v704_v48 = vmin.f32 %v696_v4, 1.0 }
 0x22f   : > { %v4307_v22 = vmin.f32 %v4299_v3, 31.0  ;;  %v4371_v23 = vmax.f32 %v4363_v61, 0.0  ;;  %v4419_v31 = vmax.f32 %v4411_v37, 0.0  ;;  %v4218_v13 = vmin.f32 %v4210_v39, 31.0 }
 0x230   : > { %v2789_v57 = vand.u32 2147483647, %v2788_v50  ;;  %v4515_v36 = vrot.slane %v638_v59, 2  ;;  %v4542_v14 = vrot.slane %v5601_v11, 2  ;;  %v2791_v32 = vcvt.s32.f32 %v2784_v60 }
 0x231   : > { %v4379_v12 = vmin.f32 %v4371_v23, 31.0  ;;  %v4427_v46 = vmin.f32 %v4419_v31, 31.0  ;;  %v4443_v56 = vrot.slane %v4307_v22, 7  ;;  %v4572_v26 = vrot.slane %v5601_v11, 5 }
 0x232   : > { %v1123_v63 = vsel %vm6454_vm10, 0, %v1121_v18  ;;  %v4544_v2 = vsel %vm7531_vm4, %v4542_v14, %v4543_v55  ;;  %v2792_v30 = vmul.f32 %v2791_v32, %v2789_v57  ;;  %v2796_v5 = vsel %vm2711_vm12, %v2795_v20, %v6425_v24 }
 0x233   : > { %v4467_v17 = vrot.slane %v4379_v12, 6  ;;  %v4491_v54 = vrot.slane %v4427_v46, 5  ;;  %v4589_v29 = vsel %vm4587_vm5, %v4218_v13, %v4443_v56  ;;  %v6481_v15 = vpop.eup %5168  ;;  %v4080_v11 = vmul.f32 5.0, %v704_v48 }
 0x234   : > { %v1954_v39 = vadd.s32 3, %v1123_v63  ;;  %v2793_v8 = vxor.u32 2147483648, %v2792_v30  ;;  %v4175_v3 = vsub.s32 3, %v5783_v33  ;;  %v4826_v61 = vadd.f32 -0.5, %v6481_v15 }
 0x235   : > { %v4598_v6 = vsel %vm4596_vm6, %v4589_v29, %v4467_v17  ;;  %v5171_v1 = vpop.eup %5170  ;;  %v624_v10 = vrot.slane %v5688_v21, 7  ;;  %v2798_v41 = vsel %vm2710_vm2, 0, %v2796_v5  ;;  %v2385_v24 = vmul.f32 1.5707964, %v6481_v15 }
 0x236   : > { %v4607_v7 = vsel %vm4605_vm7, %v4598_v6, %v4491_v54  ;;  %v2794_v53 = vsel %vm2711_vm12, %v2793_v8, %v2792_v30  ;;  %v1127_v22 = vand.u32 3, %v1123_v63  ;;  %v6497_v31 = vrot.slane %v4080_v11, 3  ;;  %v563_v54 = vpop.f32.mrf.mxu0 }
 0x237   : > { %v4616_v35 = vsel %vm4614_vm8, %v4607_v7, %v4515_v36  ;;  %v5173_v37 = vpop.eup %5172  ;;  %v2797_v23 = vsel %vm2710_vm2, %v6198_v27, %v2794_v53  ;;  %v6499_v9 = vmul.f32 6.2831855, %v4826_v61  ;;  %v1955_v59 = vand.u32 3, %v1954_v39 }
 0x238   : > { %v4625_v0 = vsel %vm4623_vm9, %v4616_v35, %v4544_v2  ;;  %5176 = vcosq.f32 %v2797_v23  ;;  %v6504_v47 = vrot.slane %v6440_v62, %v4175_v3  ;;  %v6506_v13 = vmin.f32 %v2385_v24, 1.5706964 }
 0x239   : > { %v4634_v58 = vsel %vm7532_vm13, %v4625_v0, %v4572_v26  ;;  %5178 = vsinq.f32 %v2797_v23  ;;  %v2802_v4 = vadd.s32 3, %v2798_v41  ;;  %v7489_v45 = vand.u32 2147483647, %v6499_v9  ;;  %v6510_v46 = vpop.eup %5174 }
 0x23a   : > { %4642 = vst [vmem:[%s6066_s21 + $0x8] sm:$0xff] %v4634_v58  ;;  %v1140_v12 = vand.u32 2139095040, %v6499_v9  ;;  %v1130_v56 = vxor.u32 2147483648, %v5173_v37  ;;  %v1133_v60 = vxor.u32 2147483648, %v5171_v1  ;;  %v2813_v55 = vand.u32 2147483647, %v6506_v13 }
 0x23b   : > { %v2816_v50 = vand.u32 2139095040, %v6506_v13  ;;  %vm1126_vm3 = vweird.f32 %v6160_v19  ;;  %vm1128_vm14 = vcmp.lt.s32.totalorder %v1127_v22, 2  ;;  %vm1129_vm15 = vcmp.eq.s32.totalorder %v1127_v22, 0 }
 0x23c   : > { %vm1132_vm11 = vcmp.eq.s32.totalorder %v1127_v22, 2  ;;  %v1141_v17 = vshrl.u32 %v1140_v12, 23  ;;  %vm1956_vm0 = vcmp.lt.s32.totalorder %v1955_v59, 2  ;;  %v1144_v29 = vand.u32 8388607, %v7489_v45 }
 0x23d   : > { %v2817_v18 = vshrl.u32 %v2816_v50, 23  ;;  %v2820_v48 = vand.u32 8388607, %v2813_v55  ;;  %vm1960_vm10 = vcmp.eq.s32.totalorder %v1955_v59, 2  ;;  %v3631_v57 = vand.u32 3, %v2798_v41 }
 0x23e   : > { %v4846_v20 = vadd.s32 4294967169, %v1141_v17  ;;  %v4828_v36 = vadd.f32 -0.5, %v6510_v46  ;;  %v1131_v14 = vsel %vm1129_vm15, %v5171_v1, %v1130_v56  ;;  %v1134_v6 = vsel %vm1132_vm11, %v1133_v60, %v5173_v37 }
 0x23f   : > { %v6520_v32 = vand.u32 3, %v2802_v4  ;;  %v4910_v26 = vadd.s32 4294967169, %v2817_v18  ;;  %vm1957_vm1 = vcmp.eq.s32.totalorder %v1955_v59, 0  ;;  %v1962_v7 = vsel %vm1960_vm10, %v1133_v60, %v5173_v37 }
 0x240   : > { %v6523_v63 = vadd.f32 %v563_v54, %v5575_v52  ;;  %v1147_v2 = vadd.s32 1, %v4846_v20  ;;  %v1959_v35 = vsel %vm1957_vm1, %v5171_v1, %v1130_v56  ;;  %v1145_v30 = vor.u32 8388608, %v1144_v29 }
 0x241   : > { %v2821_v0 = vor.u32 8388608, %v2820_v48  ;;  %v2823_v5 = vadd.s32 1, %v4910_v26  ;;  %v1135_v11 = vsel %vm1128_vm14, %v1131_v14, %v1134_v6  ;;  %vm3632_vm4 = vcmp.lt.s32.totalorder %v3631_v57, 2 }
 0x242   : > { %vm3633_vm12 = vcmp.eq.s32.totalorder %v3631_v57, 0  ;;  %vm1148_vm13 = vcmp.gt.s32.totalorder %v1147_v2, 0  ;;  %v6526_v58 = vmul.f32 6.2831855, %v4828_v36  ;;  %vm2801_vm2 = vweird.f32 %v6198_v27 }
 0x243   : > { %vm2805_vm15 = vcmp.eq.s32.totalorder %v6520_v32, 0  ;;  %vm3636_vm11 = vcmp.eq.s32.totalorder %v3631_v57, 2  ;;  %v1149_v39 = vsel %vm1148_vm13, %v1147_v2, 0  ;;  %vm2824_vm10 = vcmp.gt.s32.totalorder %v2823_v5, 0 }
 0x244   : > { %v6531_v8 = vsel %vm1956_vm0, %v1959_v35, %v1962_v7  ;;  %vm2808_vm1 = vcmp.eq.s32.totalorder %v6520_v32, 2  ;;  %v1151_v1 = vand.u32 31, %v1149_v39  ;;  %v2825_v61 = vsel %vm2824_vm10, %v2823_v5, 0 }
 0x245   : > { %v6536_v37 = vsel %vm1126_vm3, nan, %v1135_v11  ;;  %v1150_v53 = vshrl.u32 %v1149_v39, 5  ;;  %v6538_v41 = vshll.u32 %v1145_v30, 8  ;;  %v6540_v24 = vshll.u32 %v2821_v0, 8  ;;  %v5177_v22 = vpop.eup %5176 }
 0x246   : > { %v1152_v23 = vsub.s32 32, %v1151_v1  ;;  %v1154_v4 = vshll.u32 %v5381_v34, %v1151_v1  ;;  %v2827_v59 = vand.u32 31, %v2825_v61  ;;  %v1346_v12 = vand.u32 2139095040, %v6526_v58  ;;  %v5179_v56 = vpop.eup %5178 }
 0x247   : > { %vm2804_vm14 = vcmp.lt.s32.totalorder %v6520_v32, 2  ;;  %v2809_v60 = vxor.u32 2147483648, %v5177_v22  ;;  %v1157_v50 = vshll.u32 %v5382_v38, %v1151_v1  ;;  %v1160_v17 = vshll.u32 %v7500_v40, %v1151_v1 }
 0x248   : > { %v1163_v54 = vshll.u32 %v7496_v42, %v1151_v1  ;;  %v2806_v29 = vxor.u32 2147483648, %v5179_v56  ;;  %v1155_v18 = vshrl.u32 %v5382_v38, %v1152_v23  ;;  %v1158_v48 = vshrl.u32 %v7500_v40, %v1152_v23 }
 0x249   : > { %v1166_v20 = vshll.u32 %v7494_v44, %v1151_v1  ;;  %v3638_v36 = vsel %vm3636_vm11, %v2809_v60, %v5179_v56  ;;  %v1161_v14 = vshrl.u32 %v7496_v42, %v1152_v23  ;;  %v1164_v6 = vshrl.u32 %v7494_v44, %v1152_v23 }
 0x24a   : > { %vm1169_vm0 = vcmp.lt.s32.totalorder %v1150_v53, 1  ;;  %v3635_v26 = vsel %vm3633_vm12, %v5177_v22, %v2806_v29  ;;  %v1153_v7 = vshrl.u32 %v5381_v34, %v1152_v23  ;;  %v1156_v2 = vor.u32 %v1155_v18, %v1154_v4 }
 0x24b   : > { %v1159_v35 = vor.u32 %v1158_v48, %v1157_v50  ;;  %v2810_v30 = vsel %vm2808_vm1, %v2809_v60, %v5179_v56  ;;  %v3639_v0 = vsel %vm3632_vm4, %v3635_v26, %v3638_v36  ;;  %v1162_v5 = vor.u32 %v1161_v14, %v1160_v17 }
 0x24c   : > { %v1165_v11 = vor.u32 %v1164_v6, %v1163_v54  ;;  %v2807_v39 = vsel %vm2805_vm15, %v5177_v22, %v2806_v29  ;;  %v3640_v1 = vsel %vm2801_vm2, nan, %v3639_v0  ;;  %v1167_v45 = vshrl.u32 %v7492_v51, %v1152_v23 }
 0x24d   : > { %vm1170_vm12 = vcmp.lt.s32.totalorder %v1150_v53, 2  ;;  %5180 = vrcp.f32 %v3640_v1  ;;  %vm1171_vm13 = vcmp.lt.s32.totalorder %v1150_v53, 3  ;;  %vm1172_vm11 = vcmp.lt.s32.totalorder %v1150_v53, 4 }
 0x24e   : > { %v1173_v4 = vsel %vm1169_vm0, %v1153_v7, %v1156_v2  ;;  %v1168_v50 = vor.u32 %v1167_v45, %v1166_v20  ;;  %v1174_v56 = vsel %vm1172_vm11, %v1162_v5, 2102212464  ;;  %v1177_v57 = vsel %vm1169_vm0, %v1156_v2, %v1159_v35 }
 0x24f   : > { %v1178_v60 = vsel %vm1172_vm11, %v1165_v11, 920167782  ;;  %v1175_v17 = vsel %vm1171_vm13, %v1159_v35, %v1174_v56  ;;  %v1181_v54 = vsel %vm1169_vm0, %v1159_v35, %v1162_v5  ;;  %v2828_v29 = vsub.s32 32, %v2827_v59 }
 0x250   : > { %v1179_v22 = vsel %vm1171_vm13, %v1162_v5, %v1178_v60  ;;  %v2811_v23 = vsel %vm2804_vm14, %v2807_v39, %v2810_v30  ;;  %v1182_v48 = vsel %vm1172_vm11, %v1168_v50, 1326507024  ;;  %v6572_v36 = vshrl.u32 %v2825_v61, 5 }
 0x251   : > { %v1180_v18 = vsel %vm1170_vm12, %v1177_v57, %v1179_v22  ;;  %v1176_v45 = vsel %vm1170_vm12, %v1173_v4, %v1175_v17  ;;  %v1183_v20 = vsel %vm1171_vm13, %v1165_v11, %v1182_v48  ;;  %v2830_v7 = vshll.u32 %v5381_v34, %v2827_v59 }
 0x252   : > { %v6577_v14 = vmul.u32.u64.low %v6538_v41, %v1180_v18  ;;  %v6578_v6 = vmul.u32.u64.high %v6538_v41, %v1180_v18, %v6577_v14  ;;  %v1184_v26 = vsel %vm1170_vm12, %v1181_v54, %v1183_v20  ;;  %v2831_v32 = vshrl.u32 %v5382_v38, %v2828_v29 }
 0x253   : > { %v2833_v2 = vshll.u32 %v5382_v38, %v2827_v59  ;;  %v6586_v61 = vmul.u32.u64.low %v6538_v41, %v1184_v26  ;;  %v6587_v35 = vmul.u32.u64.high %v6538_v41, %v1184_v26, %v6586_v61  ;;  %v2834_v30 = vshrl.u32 %v7500_v40, %v2828_v29 }
 0x254   : > { %v2836_v0 = vshll.u32 %v7500_v40, %v2827_v59  ;;  %v2832_v5 = vor.u32 %v2831_v32, %v2830_v7  ;;  %v2837_v11 = vshrl.u32 %v7496_v42, %v2828_v29  ;;  %v2839_v53 = vshll.u32 %v7496_v42, %v2827_v59 }
 0x255   : > { %v2840_v39 = vshrl.u32 %v7494_v44, %v2828_v29  ;;  %v1195_v1 = vadd.s32 1, %v6578_v6  ;;  %v2835_v4 = vor.u32 %v2834_v30, %v2833_v2  ;;  %v2842_v50 = vshll.u32 %v7494_v44, %v2827_v59 }
 0x256   : > { %v2843_v56 = vshrl.u32 %v7492_v51, %v2828_v29  ;;  %v2812_v57 = vsel %vm2801_vm2, nan, %v2811_v23  ;;  %v2838_v60 = vor.u32 %v2837_v11, %v2836_v0  ;;  %v1347_v22 = vshrl.u32 %v1346_v12, 23 }
 0x257   : > { %v2841_v17 = vor.u32 %v2840_v39, %v2839_v53  ;;  %v1192_v54 = vmul.u32 %v6538_v41, %v1176_v45  ;;  %vm1194_vm4 = vc.u32 %v6587_v35, %v6577_v14  ;;  %vm2845_vm15 = vcmp.lt.s32.totalorder %v6572_v36, 1 }
 0x258   : > { %v2844_v18 = vor.u32 %v2843_v56, %v2842_v50  ;;  %v1196_v59 = vsel %vm1194_vm4, %v1195_v1, %v6578_v6  ;;  %v2829_v48 = vshrl.u32 %v5381_v34, %v2828_v29  ;;  %vm2848_vm10 = vcmp.lt.s32.totalorder %v6572_v36, 4 }
 0x259   : > { %v2853_v27 = vsel %vm2845_vm15, %v2832_v5, %v2835_v4  ;;  %v1197_v23 = vadd.s32 %v1196_v59, %v1192_v54  ;;  %vm2847_vm2 = vcmp.lt.s32.totalorder %v6572_v36, 3  ;;  %v2850_v12 = vsel %vm2848_vm10, %v2838_v60, 2102212464 }
 0x25a   : > { %v2854_v41 = vsel %vm2848_vm10, %v2841_v17, 920167782  ;;  %v5181_v45 = vpop.eup %5180  ;;  %vm2846_vm1 = vcmp.lt.s32.totalorder %v6572_v36, 2  ;;  %v2857_v26 = vsel %vm2845_vm15, %v2835_v4, %v2838_v60  ;;  %v2858_v6 = vsel %vm2848_vm10, %v2844_v18, 1326507024 }
 0x25b   : > { %v2855_v20 = vsel %vm2847_vm2, %v2838_v60, %v2854_v41  ;;  %v4064_v7 = vmul.f32 %v5181_v45, %v2812_v57  ;;  %v1198_v29 = vadd.s32 536870912, %v1197_v23  ;;  %v2849_v32 = vsel %vm2845_vm15, %v2829_v48, %v2832_v5 }
 0x25c   : > { %v2856_v2 = vsel %vm2846_vm1, %v2853_v27, %v2855_v20  ;;  %v2851_v61 = vsel %vm2847_vm2, %v2835_v4, %v2850_v12  ;;  %v2859_v30 = vsel %vm2847_vm2, %v2841_v17, %v2858_v6  ;;  %v1964_v5 = vsel %vm1126_vm3, nan, %v6531_v8 }
 0x25d   : > { %v6619_v0 = vmul.u32.u64.low %v6540_v24, %v2856_v2  ;;  %v6620_v11 = vmul.u32.u64.high %v6540_v24, %v2856_v2, %v6619_v0  ;;  %v4072_v53 = vsub.f32 0.0, %v4064_v7  ;;  %v4099_v39 = vrot.slane %v4064_v7, 1 }
 0x25e   : > { %v6623_v1 = vshrl.u32 %v1198_v29, 30  ;;  %v2860_v50 = vsel %vm2846_vm1, %v2857_v26, %v2859_v30  ;;  %v4854_v57 = vadd.s32 4294967169, %v1347_v22  ;;  %v4265_v59 = vrot.slane %v6449_v43, %v4175_v3 }
 0x25f   : > { %v6631_v56 = vmul.u32.u64.low %v6540_v24, %v2860_v50  ;;  %v6632_v4 = vmul.u32.u64.high %v6540_v24, %v2860_v50, %v6631_v56  ;;  %v4115_v60 = vmul.f32 %v4099_v39, %v1964_v5  ;;  %v4228_v17 = vmul.f32 %v4099_v39, %v6536_v37 }
 0x260   : > { %v4325_v54 = vrot.slane %v4072_v53, 2  ;;  %v1200_v18 = vshll.u32 %v6623_v1, 30  ;;  %v4819_v48 = vmul.f32 -1.442695, %v6523_v63  ;;  %v2852_v19 = vsel %vm2846_vm1, %v2849_v32, %v2851_v61 }
 0x261   : > { %v2871_v8 = vadd.s32 1, %v6620_v11  ;;  %v4123_v27 = vsub.f32 %v6536_v37, %v4115_v60  ;;  %v4236_v22 = vadd.f32 %v4228_v17, %v1964_v5  ;;  %v6648_v45 = vsub.f32 %v5688_v21, %v624_v10 }
 0x262   : > { %v4341_v12 = vmul.f32 %v4325_v54, %v1964_v5  ;;  %v4389_v41 = vmul.f32 %v4325_v54, %v6536_v37  ;;  %v6650_v20 = vsub.s32 %v1197_v23, %v1200_v18  ;;  %vm2870_vm3 = vc.u32 %v6632_v4, %v6619_v0  ;;  %v606_v18 = vpop.f32.mrf.mxu1 }
 0x263   : > { %v1353_v3 = vadd.s32 1, %v4854_v57  ;;  %v4155_v36 = vmul.f32 %v6497_v31, %v4123_v27  ;;  %v4244_v26 = vmul.f32 %v4236_v22, %v6497_v31  ;;  %5182 = vpow2.f32 %v4819_v48 }
 0x264   : > { %v4349_v6 = vsub.f32 %v6536_v37, %v4341_v12  ;;  %v4397_v7 = vadd.f32 %v4389_v41, %v1964_v5  ;;  %v1203_v29 = vsub.s32 0, %v6650_v20  ;;  %v2868_v32 = vmul.u32 %v6540_v24, %v2852_v19 }
 0x265   : > { %v2872_v10 = vsel %vm2870_vm3, %v2871_v8, %v6620_v11  ;;  %v4204_v23 = vadd.f32 %v6504_v47, %v4155_v36  ;;  %v4293_v2 = vadd.f32 %v4265_v59, %v4244_v26  ;;  %v525_v53 = vadd.f32 %v6410_v16, %v5695_v28  ;;  %v565_v36 = vpop.f32.mrf.mxu0 }
 0x266   : > { %v4357_v61 = vmul.f32 %v4349_v6, %v6497_v31  ;;  %v4405_v30 = vmul.f32 %v4397_v7, %v6497_v31  ;;  %v4847_v37 = vmin.u32 %v1203_v29, %v6650_v20  ;;  %v2873_v39 = vadd.s32 %v2872_v10, %v2868_v32 }
 0x267   : > { %vm1354_vm14 = vcmp.gt.s32.totalorder %v1353_v3, 0  ;;  %v4212_v50 = vmax.f32 %v4204_v23, 0.0  ;;  %v4301_v5 = vmax.f32 %v4293_v2, 0.0  ;;  %v4517_v11 = vrot.slane %v6648_v45, 2 }
 0x268   : > { %v4365_v24 = vadd.f32 %v4357_v61, %v6504_v47  ;;  %v4413_v56 = vadd.f32 %v4405_v30, %v4265_v59  ;;  %v4574_v57 = vrot.slane %v5688_v21, 5  ;;  %v1205_v60 = vclz %v4847_v37 }
 0x269   : > { %v4309_v17 = vmin.f32 %v4301_v5, 31.0  ;;  %v1355_v48 = vsel %vm1354_vm14, %v1353_v3, 0  ;;  %v4549_v16 = vrot.slane %v525_v53, 2  ;;  %v625_v19 = vrot.slane %v6406_v49, 7 }
 0x26a   : > { %v4373_v54 = vmax.f32 %v4365_v24, 0.0  ;;  %v4421_v31 = vmax.f32 %v4413_v56, 0.0  ;;  %v4848_v8 = vadd.s32 4294967294, %v1205_v60  ;;  %v2874_v27 = vadd.s32 536870912, %v2873_v39 }
 0x26b   : > { %v4220_v22 = vmin.f32 %v4212_v50, 31.0  ;;  %v4445_v47 = vrot.slane %v4309_v17, 7  ;;  %v4548_v59 = vrot.slane %v5688_v21, 2  ;;  %v6672_v45 = vadd.f32 %v606_v18, %v5575_v52 }
 0x26c   : > { %v4381_v12 = vmin.f32 %v4373_v54, 31.0  ;;  %v4429_v41 = vmin.f32 %v4421_v31, 31.0  ;;  %vm4849_vm0 = vcmp.lt.s32.totalorder %v4848_v8, 0  ;;  %v1357_v26 = vand.u32 31, %v1355_v48 }
 0x26d   : > { %v4591_v3 = vsel %vm4587_vm5, %v4220_v22, %v4445_v47  ;;  %v1208_v29 = vsel %vm4849_vm0, 0, %v4848_v8  ;;  %vm7533_vm12 = vcmask 1045504   ;;  %v6677_v10 = vsub.f32 %v6406_v49, %v625_v19 }
 0x26e   : > { %v4469_v6 = vrot.slane %v4381_v12, 6  ;;  %v4493_v7 = vrot.slane %v4429_v41, 5  ;;  %v4550_v32 = vsel %vm7533_vm12, %v4548_v59, %v4549_v16  ;;  %v1213_v23 = vsub.s32 4294967266, %v1208_v29  ;;  %vm7535_vm1 = vmmov %vm7533_vm12 }
 0x26f   : > { %v6679_v2 = vshrl.u32 %v2874_v27, 30  ;;  %v627_v52 = vrot.slane %v6422_v25, 7  ;;  %v6684_v61 = vadd.f32 %v565_v36, %v5695_v28  ;;  %v7491_v30 = vand.u32 2147483647, %v6526_v58 }
 0x270   : > { %v4600_v21 = vsel %vm4596_vm6, %v4591_v3, %v4469_v6  ;;  %v4821_v37 = vmul.f32 -1.442695, %v6672_v45  ;;  %v1209_v50 = vsub.s32 32, %v1208_v29  ;;  %v5183_v24 = vpop.eup %5182  ;;  %v1214_v17 = vadd.s32 127, %v1213_v23 }
 0x271   : > { %v4609_v53 = vsel %vm4605_vm7, %v4600_v21, %v4493_v7  ;;  %v2876_v5 = vshll.u32 %v6679_v2, 30  ;;  %v1358_v54 = vsub.s32 32, %v1357_v26  ;;  %v1193_v18 = vadd.s32 %v6577_v14, %v6587_v35 }
 0x272   : > { %v4618_v56 = vsel %vm4614_vm8, %v4609_v53, %v4517_v11  ;;  %v2387_v19 = vmul.f32 1.5707964, %v6510_v46  ;;  %vm7534_vm13 = vcmask 1046528   ;;  %v6701_v22 = vsub.f32 %v6422_v25, %v627_v52 }
 0x273   : > { %v4627_v31 = vsel %vm4623_vm9, %v4618_v56, %v4550_v32  ;;  %v6695_v16 = vsub.s32 %v2873_v39, %v2876_v5  ;;  %v1350_v11 = vand.u32 8388607, %v7491_v30  ;;  %5184 = vpow2.f32 %v4821_v37 }
 0x274   : > { %v4636_v8 = vsel %vm7534_vm13, %v4627_v31, %v4574_v57  ;;  %v1211_v12 = vshrl.u32 %v1193_v18, %v1209_v50  ;;  %v4552_v14 = vrot.slane %v6684_v61, 2  ;;  %v6708_v35 = vadd.f32 1.0, %v5183_v24 }
 0x275   : > { %4644 = vst [vmem:[%s6066_s21 + $0x18] sm:$0xff] %v4636_v8  ;;  %v2879_v41 = vsub.s32 0, %v6695_v16  ;;  %v1215_v39 = vshll.u32 %v1214_v17, 23  ;;  %v1361_v57 = vshrl.u32 %v5382_v38, %v1358_v54  ;;  %v1364_v47 = vshrl.u32 %v7500_v40, %v1358_v54 }
 0x276   : > { %v1210_v59 = vshll.u32 %v6650_v20, %v1208_v29  ;;  %v1367_v6 = vshrl.u32 %v7496_v42, %v1358_v54  ;;  %v6715_v7 = vmin.f32 %v2387_v19, 1.5706964  ;;  %v1351_v3 = vor.u32 8388608, %v1350_v11 }
 0x277   : > { %v4911_v36 = vmin.u32 %v2879_v41, %v6695_v16  ;;  %v1356_v32 = vshrl.u32 %v1355_v48, 5  ;;  %v1360_v23 = vshll.u32 %v5381_v34, %v1357_v26  ;;  %v1363_v21 = vshll.u32 %v5382_v38, %v1357_v26 }
 0x278   : > { %v1212_v52 = vor.u32 %v1211_v12, %v1210_v59  ;;  %v1366_v37 = vshll.u32 %v7500_v40, %v1357_v26  ;;  %v1370_v50 = vshrl.u32 %v7494_v44, %v1358_v54  ;;  %v1216_v5 = vor.u32 4788187, %v1215_v39 }
 0x279   : > { %v2881_v53 = vclz %v4911_v36  ;;  %v1362_v20 = vor.u32 %v1361_v57, %v1360_v23  ;;  %v1365_v29 = vor.u32 %v1364_v47, %v1363_v21  ;;  %v1369_v24 = vshll.u32 %v7496_v42, %v1357_v26 }
 0x27a   : > { %v1368_v17 = vor.u32 %v1367_v6, %v1366_v37  ;;  %v1372_v31 = vshll.u32 %v7494_v44, %v1357_v26  ;;  %v1373_v48 = vshrl.u32 %v7492_v51, %v1358_v54  ;;  %v2869_v18 = vadd.s32 %v6619_v0, %v6632_v4 }
 0x27b   : > { %v4912_v56 = vadd.s32 4294967294, %v2881_v53  ;;  %v1371_v19 = vor.u32 %v1370_v50, %v1369_v24  ;;  %vm1375_vm11 = vcmp.lt.s32.totalorder %v1356_v32, 1  ;;  %v1391_v8 = vshll.u32 %v1351_v3, 8 }
 0x27c   : > { %v1219_v11 = vcvt.s32.f32 %v1212_v52  ;;  %v1359_v12 = vshrl.u32 %v5381_v34, %v1358_v54  ;;  %v1374_v41 = vor.u32 %v1373_v48, %v1372_v31  ;;  %v1217_v39 = vand.u32 2147483647, %v1216_v5  ;;  %v608_v48 = vpop.f32.mrf.mxu1 }
 0x27d   : > { %vm4913_vm4 = vcmp.lt.s32.totalorder %v4912_v56, 0  ;;  %vm1376_vm15 = vcmp.lt.s32.totalorder %v1356_v32, 2  ;;  %vm1378_vm10 = vcmp.lt.s32.totalorder %v1356_v32, 4  ;;  %v1383_v36 = vsel %vm1375_vm11, %v1362_v20, %v1365_v29 }
 0x27e   : > { %v2884_v57 = vsel %vm4913_vm4, 0, %v4912_v56  ;;  %v1380_v26 = vsel %vm1378_vm10, %v1368_v17, 2102212464  ;;  %vm1377_vm2 = vcmp.lt.s32.totalorder %v1356_v32, 3  ;;  %v1384_v0 = vsel %vm1378_vm10, %v1371_v19, 920167782  ;;  %vm7539_vm4 = vmmov %vm7535_vm1 }
 0x27f   : > { %v2885_v47 = vsub.s32 32, %v2884_v57  ;;  %v2889_v59 = vsub.s32 4294967266, %v2884_v57  ;;  %v2886_v6 = vshll.u32 %v6695_v16, %v2884_v57  ;;  %v1387_v4 = vsel %vm1375_vm11, %v1365_v29, %v1368_v17 }
 0x280   : > { %v1385_v21 = vsel %vm1377_vm2, %v1368_v17, %v1384_v0  ;;  %v1388_v54 = vsel %vm1378_vm10, %v1374_v41, 1326507024  ;;  %v5185_v52 = vpop.eup %5184  ;;  %v1379_v53 = vsel %vm1375_vm11, %v1359_v12, %v1362_v20  ;;  %v1381_v37 = vsel %vm1377_vm2, %v1365_v29, %v1380_v26 }
 0x281   : > { %v2887_v3 = vshrl.u32 %v2869_v18, %v2885_v47  ;;  %v2890_v23 = vadd.s32 127, %v2889_v59  ;;  %v1386_v50 = vsel %vm1376_vm15, %v1383_v36, %v1385_v21  ;;  %v1389_v5 = vsel %vm1377_vm2, %v1371_v19, %v1388_v54 }
 0x282   : > { %v1390_v31 = vsel %vm1376_vm15, %v1387_v4, %v1389_v5  ;;  %v3024_v16 = vand.u32 2139095040, %v6715_v7  ;;  %v6737_v18 = vmul.u32.u64.low %v1391_v8, %v1386_v50  ;;  %v6738_v17 = vmul.u32.u64.high %v1391_v8, %v1386_v50, %v6737_v18 }
 0x283   : > { %v2888_v24 = vor.u32 %v2887_v3, %v2886_v6  ;;  %v2891_v56 = vshll.u32 %v2890_v23, 23  ;;  %v6734_v57 = vmul.u32.u64.low %v1391_v8, %v1390_v31  ;;  %v6735_v60 = vmul.u32.u64.high %v1391_v8, %v1390_v31, %v6734_v57 }
 0x284   : > { %v1220_v29 = vmul.f32 %v1219_v11, %v1217_v39  ;;  %v3025_v41 = vshrl.u32 %v3024_v16, 23  ;;  %5186 = vrcp.f32 %v6708_v35  ;;  %v4551_v47 = vrot.slane %v6406_v49, 2 }
 0x285   : > { %v2892_v12 = vor.u32 4788187, %v2891_v56  ;;  %v1382_v59 = vsel %vm1376_vm15, %v1379_v53, %v1381_v37  ;;  %v2895_v36 = vcvt.s32.f32 %v2888_v24  ;;  %v609_v6 = vadd.f32 %v608_v48, %v5695_v28 }
 0x286   : > { %v4918_v0 = vadd.s32 4294967169, %v3025_v41  ;;  %v697_v4 = vmax.f32 %v6481_v15, 0.0  ;;  %v6751_v11 = vsel %vm7535_vm1, %v4551_v47, %v4552_v14  ;;  %vm1400_vm3 = vc.u32 %v6735_v60, %v6737_v18 }
 0x287   : > { %v2893_v26 = vand.u32 2147483647, %v2892_v12  ;;  %v1401_v35 = vadd.s32 1, %v6738_v17  ;;  %v1221_v39 = vxor.u32 2147483648, %v1220_v29  ;;  %v1398_v3 = vmul.u32 %v1391_v8, %v1382_v59 }
 0x288   : > { %v3031_v23 = vadd.s32 1, %v4918_v0  ;;  %v676_v21 = vadd.f32 1.0, %v5185_v52  ;;  %v1223_v54 = vsub.s32 4, %v6623_v1  ;;  %v2899_v53 = vsub.s32 4, %v6679_v2 }
 0x289   : > { %v2896_v32 = vmul.f32 %v2895_v36, %v2893_v26  ;;  %v1402_v15 = vsel %vm1400_vm3, %v1401_v35, %v6738_v17  ;;  %v4558_v14 = vrot.slane %v609_v6, 2  ;;  %v705_v50 = vmin.f32 %v697_v4, 1.0 }
 0x28a   : > { %v1403_v37 = vadd.s32 %v1402_v15, %v1398_v3  ;;  %vm3032_vm14 = vcmp.gt.s32.totalorder %v3031_v23, 0  ;;  %vm1139_vm0 = vcmp.lt.s32.totalorder %v6499_v9, 0  ;;  %vm2815_vm12 = vcmp.lt.s32.totalorder %v6506_v13, 0 }
 0x28b   : > { %v2897_v61 = vxor.u32 2147483648, %v2896_v32  ;;  %v3033_v5 = vsel %vm3032_vm14, %v3031_v23, 0  ;;  %v1222_v24 = vsel %vm1139_vm0, %v1221_v39, %v1220_v29  ;;  %vm6763_vm13 = vcmp.le.f32.partialorder %v2813_v55, 0.7853982 }
 0x28c   : > { %v1404_v56 = vadd.s32 536870912, %v1403_v37  ;;  %v1224_v31 = vsel %vm1139_vm0, %v1223_v54, %v6623_v1  ;;  %v2900_v16 = vsel %vm2815_vm12, %v2899_v53, %v6679_v2  ;;  %v3035_v57 = vand.u32 31, %v3033_v5 }
 0x28d   : > { %v2898_v52 = vsel %vm2815_vm12, %v2897_v61, %v2896_v32  ;;  %v7538_v17 = vand.u32 2147483647, %v6499_v9  ;;  %v4179_v55 = vsub.s32 4, %v5783_v33  ;;  %v7490_v1 = vand.u32 2147483647, %v6715_v7 }
 0x28e   : > { %v2901_v48 = vsel %vm6763_vm13, %v6506_v13, %v2898_v52  ;;  %v6775_v29 = vshrl.u32 %v1404_v56, 30  ;;  %v4557_v2 = vrot.slane %v6422_v25, 2  ;;  %v2902_v47 = vsel %vm6763_vm13, 0, %v2900_v16 }
 0x28f   : > { %vm1138_vm11 = vcmp.le.f32.partialorder %v7538_v17, 0.7853982  ;;  %5188 = vcosq.f32 %v2901_v48  ;;  %v3036_v26 = vsub.s32 32, %v3035_v57  ;;  %v6783_v36 = vmul.f32 5.0, %v705_v50 }
 0x290   : > { %v1225_v12 = vsel %vm1138_vm11, %v6499_v9, %v1222_v24  ;;  %5190 = vsinq.f32 %v2901_v48  ;;  %v1226_v41 = vsel %vm1138_vm11, 0, %v1224_v31  ;;  %v1406_v59 = vshll.u32 %v6775_v29, 30 }
 0x291   : > { %5192 = vrcp.f32 %v676_v21  ;;  %v699_v6 = vmax.f32 %v6510_v46, 0.0  ;;  %v6787_v0 = vsel %vm7539_vm4, %v4557_v2, %v4558_v14  ;;  %v6789_v4 = vpop.eup %5186  ;;  %v6792_v35 = vrot.slane %v6440_v62, %v4179_v55 }
 0x292   : > { %5194 = vcosq.f32 %v1225_v12  ;;  %v6795_v39 = vrot.slane %v6449_v43, %v4179_v55  ;;  %v6797_v32 = vsub.s32 %v1403_v37, %v1406_v59  ;;  %v6799_v3 = vand.u32 3, %v1226_v41 }
 0x293   : > { %5196 = vsinq.f32 %v1225_v12  ;;  %v6801_v23 = vadd.s32 3, %v1226_v41  ;;  %v3734_v21 = vand.u32 3, %v2902_v47  ;;  %v3028_v53 = vand.u32 8388607, %v7490_v1 }
 0x294   : > { %v1409_v54 = vsub.s32 0, %v6797_v32  ;;  %v3039_v15 = vshrl.u32 %v5382_v38, %v3036_v26  ;;  %v3042_v62 = vshrl.u32 %v7500_v40, %v3036_v26  ;;  %v3045_v43 = vshrl.u32 %v7496_v42, %v3036_v26 }
 0x295   : > { %v3047_v61 = vshll.u32 %v7496_v42, %v3035_v57  ;;  %v3048_v37 = vshrl.u32 %v7494_v44, %v3036_v26  ;;  %v4827_v14 = vadd.f32 -0.5, %v6789_v4  ;;  %v6813_v24 = vshrl.u32 %v3033_v5, 5 }
 0x296   : > { %v4855_v50 = vmin.u32 %v1409_v54, %v6797_v32  ;;  %v3038_v8 = vshll.u32 %v5381_v34, %v3035_v57  ;;  %v3041_v52 = vshll.u32 %v5382_v38, %v3035_v57  ;;  %v3044_v56 = vshll.u32 %v7500_v40, %v3035_v57 }
 0x297   : > { %v3049_v31 = vor.u32 %v3048_v37, %v3047_v61  ;;  %v3050_v16 = vshll.u32 %v7494_v44, %v3035_v57  ;;  %v3051_v48 = vshrl.u32 %v7492_v51, %v3036_v26  ;;  %vm2905_vm15 = vweird.f32 %v6506_v13 }
 0x298   : > { %v2906_v17 = vadd.s32 3, %v2902_v47  ;;  %v1411_v55 = vclz %v4855_v50  ;;  %v3040_v12 = vor.u32 %v3039_v15, %v3038_v8  ;;  %v3043_v2 = vor.u32 %v3042_v62, %v3041_v52 }
 0x299   : > { %vm3735_vm10 = vcmp.lt.s32.totalorder %v3734_v21, 2  ;;  %vm3736_vm2 = vcmp.eq.s32.totalorder %v3734_v21, 0  ;;  %v3046_v5 = vor.u32 %v3045_v43, %v3044_v56  ;;  %v3052_v41 = vor.u32 %v3051_v48, %v3050_v16 }
 0x29a   : > { %vm3739_vm1 = vcmp.eq.s32.totalorder %v3734_v21, 2  ;;  %v4856_v59 = vadd.s32 4294967294, %v1411_v55  ;;  %vm3056_vm3 = vcmp.lt.s32.totalorder %v6813_v24, 4  ;;  %v6822_v54 = vmul.f32 6.2831855, %v4827_v14 }
 0x29b   : > { %v3029_v57 = vor.u32 8388608, %v3028_v53  ;;  %vm3053_vm14 = vcmp.lt.s32.totalorder %v6813_v24, 1  ;;  %vm3055_vm0 = vcmp.lt.s32.totalorder %v6813_v24, 3  ;;  %v3062_v47 = vsel %vm3056_vm3, %v3049_v31, 920167782 }
 0x29c   : > { %v6824_v61 = vpop.eup %5188  ;;  %vm4857_vm12 = vcmp.lt.s32.totalorder %v4856_v59, 0  ;;  %v3061_v43 = vsel %vm3053_vm14, %v3040_v12, %v3043_v2  ;;  %v3066_v37 = vsel %vm3056_vm3, %v3052_v41, 1326507024  ;;  %v3063_v53 = vsel %vm3055_vm0, %v3046_v5, %v3062_v47 }
 0x29d   : > { %v5191_v15 = vpop.eup %5190  ;;  %v2913_v62 = vxor.u32 2147483648, %v6824_v61  ;;  %v1414_v50 = vsel %vm4857_vm12, 0, %v4856_v59  ;;  %v3065_v8 = vsel %vm3053_vm14, %v3043_v2, %v3046_v5  ;;  %v3037_v16 = vshrl.u32 %v5381_v34, %v3036_v26 }
 0x29e   : > { %v2910_v14 = vxor.u32 2147483648, %v5191_v15  ;;  %v6839_v52 = vpop.eup %5192  ;;  %vm3054_vm13 = vcmp.lt.s32.totalorder %v6813_v24, 2  ;;  %v1243_v48 = vand.u32 2139095040, %v6822_v54  ;;  %v1419_v59 = vsub.s32 4294967266, %v1414_v50 }
 0x29f   : > { %v3741_v56 = vsel %vm3739_vm1, %v2913_v62, %v5191_v15  ;;  %v6845_v55 = vpop.eup %5194  ;;  %v3058_v47 = vsel %vm3056_vm3, %v3046_v5, 2102212464  ;;  %v3067_v20 = vsel %vm3055_vm0, %v3049_v31, %v3066_v37  ;;  %v3064_v26 = vsel %vm3054_vm13, %v3061_v43, %v3063_v53 }
 0x2a0   : > { %v3738_v41 = vsel %vm3736_vm2, %v6824_v61, %v2910_v14  ;;  %v5197_v19 = vpop.eup %5196  ;;  %v3068_v27 = vsel %vm3054_vm13, %v3065_v8, %v3067_v20  ;;  %v3069_v30 = vshll.u32 %v3029_v57, 8  ;;  %v2907_v51 = vand.u32 3, %v2906_v17 }
 0x2a1   : > { %v3742_v1 = vsel %vm3735_vm10, %v3738_v41, %v3741_v56  ;;  %v1420_v42 = vadd.s32 127, %v1419_v59  ;;  %v3057_v5 = vsel %vm3053_vm14, %v3037_v16, %v3040_v12  ;;  %v3059_v21 = vsel %vm3055_vm0, %v3043_v2, %v3058_v47 }
 0x2a2   : > { %v3743_v44 = vsel %vm2905_vm15, nan, %v3742_v1  ;;  %v6864_v31 = vmul.u32.u64.low %v3069_v30, %v3068_v27  ;;  %v6865_v37 = vmul.u32.u64.high %v3069_v30, %v3068_v27, %v6864_v31  ;;  %v1415_v43 = vsub.s32 32, %v1414_v50 }
 0x2a3   : > { %5198 = vrcp.f32 %v3743_v44  ;;  %v6867_v53 = vmul.u32.u64.low %v3069_v30, %v3064_v26  ;;  %v6868_v56 = vmul.u32.u64.high %v3069_v30, %v3064_v26, %v6867_v53  ;;  %v1244_v20 = vshrl.u32 %v1243_v48, 23 }
 0x2a4   : > { %vm1235_vm11 = vcmp.eq.s32.totalorder %v6799_v3, 2  ;;  %v2059_v1 = vand.u32 3, %v6801_v23  ;;  %v6874_v17 = vrot.slane %v6783_v36, 3  ;;  %v707_v44 = vmin.f32 %v699_v6, 1.0 }
 0x2a5   : > { %vm1231_vm4 = vcmp.lt.s32.totalorder %v6799_v3, 2  ;;  %v1399_v27 = vadd.s32 %v6737_v18, %v6735_v60  ;;  %v1421_v12 = vshll.u32 %v1420_v42, 23  ;;  %v3060_v2 = vsel %vm3054_vm13, %v3057_v5, %v3059_v21 }
 0x2a6   : > { %v4850_v57 = vadd.s32 4294967169, %v1244_v20  ;;  %v1236_v8 = vxor.u32 2147483648, %v6845_v55  ;;  %vm2912_vm10 = vcmp.eq.s32.totalorder %v2907_v51, 2  ;;  %vm3078_vm2 = vc.u32 %v6865_v37, %v6867_v53 }
 0x2a7   : > { %v2386_v36 = vmul.f32 1.5707964, %v6789_v4  ;;  %v1233_v46 = vxor.u32 2147483648, %v5197_v19  ;;  %v1417_v6 = vshrl.u32 %v1399_v27, %v1415_v43  ;;  %v3079_v23 = vadd.s32 1, %v6868_v56 }
 0x2a8   : > { %v1250_v16 = vadd.s32 1, %v4850_v57  ;;  %vm2909_vm1 = vcmp.eq.s32.totalorder %v2907_v51, 0  ;;  %v2914_v60 = vsel %vm2912_vm10, %v2913_v62, %v5191_v15  ;;  %v3076_v42 = vmul.u32 %v3069_v30, %v3060_v2 }
 0x2a9   : > { %v7498_v18 = vand.u32 2147483647, %v6822_v54  ;;  %vm1229_vm3 = vweird.f32 %v6499_v9  ;;  %v2911_v24 = vsel %vm2909_vm1, %v6824_v61, %v2910_v14  ;;  %v1416_v48 = vshll.u32 %v6797_v32, %v1414_v50 }
 0x2aa   : > { %v1422_v41 = vor.u32 4788187, %v1421_v12  ;;  %v3080_v59 = vsel %vm3078_vm2, %v3079_v23, %v6868_v56  ;;  %vm1232_vm14 = vcmp.eq.s32.totalorder %v6799_v3, 0  ;;  %v1237_v47 = vsel %vm1235_vm11, %v1236_v8, %v5197_v19 }
 0x2ab   : > { %vm2908_vm0 = vcmp.lt.s32.totalorder %v2907_v51, 2  ;;  %v3081_v26 = vadd.s32 %v3080_v59, %v3076_v42  ;;  %v1234_v30 = vsel %vm1232_vm14, %v6845_v55, %v1233_v46  ;;  %v1418_v15 = vor.u32 %v1417_v6, %v1416_v48 }
 0x2ac   : > { %vm1251_vm12 = vcmp.gt.s32.totalorder %v1250_v16, 0  ;;  %v6897_v62 = vmin.f32 %v2386_v36, 1.5706964  ;;  %vm2061_vm13 = vcmp.eq.s32.totalorder %v2059_v1, 0  ;;  %vm2064_vm10 = vcmp.eq.s32.totalorder %v2059_v1, 2 }
 0x2ad   : > { %v2915_v61 = vsel %vm2908_vm0, %v2911_v24, %v2914_v60  ;;  %v3082_v32 = vadd.s32 536870912, %v3081_v26  ;;  %v2063_v14 = vsel %vm2061_vm13, %v6845_v55, %v1233_v46  ;;  %v2066_v50 = vsel %vm2064_vm10, %v1236_v8, %v5197_v19 }
 0x2ae   : > { %v1423_v5 = vand.u32 2147483647, %v1422_v41  ;;  %v1247_v21 = vand.u32 8388607, %v7498_v18  ;;  %v1238_v51 = vsel %vm1231_vm4, %v1234_v30, %v1237_v47  ;;  %vm2060_vm11 = vcmp.lt.s32.totalorder %v2059_v1, 2 }
 0x2af   : > { %v6904_v31 = vshrl.u32 %v3082_v32, 30  ;;  %v1252_v43 = vsel %vm1251_vm12, %v1250_v16, 0  ;;  %v2916_v20 = vsel %vm2905_vm15, nan, %v2915_v61  ;;  %v1425_v27 = vcvt.s32.f32 %v1418_v15 }
 0x2b0   : > { %v5199_v56 = vpop.eup %5198  ;;  %v1429_v12 = vsub.s32 4, %v6775_v29  ;;  %v2920_v19 = vand.u32 2139095040, %v6897_v62  ;;  %v2067_v55 = vsel %vm2060_vm11, %v2063_v14, %v2066_v50  ;;  %vm1345_vm2 = vcmp.lt.s32.totalorder %v6526_v58, 0 }
 0x2b1   : > { %v4065_v2 = vmul.f32 %v5199_v56, %v2916_v20  ;;  %v3084_v3 = vshll.u32 %v6904_v31, 30  ;;  %v6912_v57 = vmul.f32 %v1425_v27, %v1423_v5  ;;  %v6914_v1 = vmul.f32 5.0, %v707_v44 }
 0x2b2   : > { %v1248_v8 = vor.u32 8388608, %v1247_v21  ;;  %v1254_v36 = vand.u32 31, %v1252_v43  ;;  %v1239_v13 = vsel %vm1229_vm3, nan, %v1238_v51  ;;  %v2068_v16 = vsel %vm1229_vm3, nan, %v2067_v55 }
 0x2b3   : > { %v4073_v46 = vsub.f32 0.0, %v4065_v2  ;;  %v4100_v6 = vrot.slane %v4065_v2, 1  ;;  %v6918_v23 = vsub.s32 %v3081_v26, %v3084_v3  ;;  %v6925_v60 = vsel %vm1345_vm2, %v1429_v12, %v6775_v29 }
 0x2b4   : > { %v6929_v44 = vadd.s32 %v6867_v53, %v6865_v37  ;;  %v2921_v42 = vshrl.u32 %v2920_v19, 23  ;;  %v1427_v47 = vxor.u32 2147483648, %v6912_v57  ;;  %v1255_v26 = vsub.s32 32, %v1254_v36 }
 0x2b5   : > { %v4116_v24 = vmul.f32 %v4100_v6, %v2068_v16  ;;  %v4229_v48 = vmul.f32 %v4100_v6, %v1239_v13  ;;  %v4326_v41 = vrot.slane %v4073_v46, 2  ;;  %v3087_v59 = vsub.s32 0, %v6918_v23 }
 0x2b6   : > { %v6933_v9 = vshll.u32 %v1248_v8, 8  ;;  %v2917_v30 = vand.u32 2147483647, %v6897_v62  ;;  %v6937_v53 = vshrl.u32 %v1252_v43, 5  ;;  %v1257_v14 = vshll.u32 %v5381_v34, %v1254_v36 }
 0x2b7   : > { %v4124_v15 = vsub.f32 %v1239_v13, %v4116_v24  ;;  %v4237_v29 = vadd.f32 %v4229_v48, %v2068_v16  ;;  %v4342_v61 = vmul.f32 %v4326_v41, %v2068_v16  ;;  %v4390_v32 = vmul.f32 %v4326_v41, %v1239_v13 }
 0x2b8   : > { %v4919_v37 = vmin.u32 %v3087_v59, %v6918_v23  ;;  %v6940_v50 = vadd.s32 4294967169, %v2921_v42  ;;  %v1258_v27 = vshrl.u32 %v5382_v38, %v1255_v26  ;;  %v1260_v12 = vshll.u32 %v5382_v38, %v1254_v36 }
 0x2b9   : > { %v4156_v5 = vmul.f32 %v6874_v17, %v4124_v15  ;;  %v4245_v21 = vmul.f32 %v4237_v29, %v6874_v17  ;;  %v4350_v51 = vsub.f32 %v1239_v13, %v4342_v61  ;;  %v4398_v56 = vadd.f32 %v4390_v32, %v2068_v16 }
 0x2ba   : > { %v3089_v20 = vclz %v4919_v37  ;;  %v1263_v19 = vshll.u32 %v7500_v40, %v1254_v36  ;;  %v1256_v46 = vshrl.u32 %v5381_v34, %v1255_v26  ;;  %v7540_v13 = vmov 2102212464  }
 0x2bb   : > { %v4205_v43 = vadd.f32 %v6792_v35, %v4156_v5  ;;  %v4294_v55 = vadd.f32 %v6795_v39, %v4245_v21  ;;  %v4358_v2 = vmul.f32 %v4350_v51, %v6874_v17  ;;  %v4406_v3 = vmul.f32 %v4398_v56, %v6874_v17 }
 0x2bc   : > { %v4920_v8 = vadd.s32 4294967294, %v3089_v20  ;;  %v1264_v6 = vshrl.u32 %v7540_v13, %v1255_v26  ;;  %v1266_v16 = vshll.u32 %v7540_v13, %v1254_v36  ;;  %v1259_v59 = vor.u32 %v1258_v27, %v1257_v14 }
 0x2bd   : > { %v4213_v42 = vmax.f32 %v4205_v43, 0.0  ;;  %v4302_v24 = vmax.f32 %v4294_v55, 0.0  ;;  %v4366_v48 = vadd.f32 %v4358_v2, %v6792_v35  ;;  %v4414_v41 = vadd.f32 %v4406_v3, %v6795_v39 }
 0x2be   : > { %vm4921_vm15 = vcmp.lt.s32.totalorder %v4920_v8, 0  ;;  %v1261_v15 = vshrl.u32 %v7500_v40, %v1255_v26  ;;  %v7541_v29 = vmov 920167782   ;;  %v7542_v5 = vmov 1326507024  }
 0x2bf   : > { %v1267_v61 = vshrl.u32 %v7541_v29, %v1255_v26  ;;  %v4310_v17 = vmin.f32 %v4302_v24, 31.0  ;;  %v4374_v32 = vmax.f32 %v4366_v48, 0.0  ;;  %v4422_v37 = vmax.f32 %v4414_v41, 0.0 }
 0x2c0   : > { %v1270_v21 = vshrl.u32 %v7542_v5, %v1255_v26  ;;  %v4221_v51 = vmin.f32 %v4213_v42, 31.0  ;;  %v3092_v56 = vsel %vm4921_vm15, 0, %v4920_v8  ;;  %v1265_v20 = vor.u32 %v1264_v6, %v1263_v19 }
 0x2c1   : > { %v1269_v43 = vshll.u32 %v7541_v29, %v1254_v36  ;;  %v4382_v55 = vmin.f32 %v4374_v32, 31.0  ;;  %v4430_v35 = vmin.f32 %v4422_v37, 31.0  ;;  %v4446_v2 = vrot.slane %v4310_v17, 7 }
 0x2c2   : > { %v3093_v39 = vsub.s32 32, %v3092_v56  ;;  %v3097_v3 = vsub.s32 4294967266, %v3092_v56  ;;  %v1262_v14 = vor.u32 %v1261_v15, %v1260_v12  ;;  %v1268_v27 = vor.u32 %v1267_v61, %v1266_v16 }
 0x2c3   : > { %vm1272_vm4 = vcmp.lt.s32.totalorder %v6937_v53, 1  ;;  %v4470_v18 = vrot.slane %v4382_v55, 6  ;;  %v4494_v24 = vrot.slane %v4430_v35, 5  ;;  %v4592_v48 = vsel %vm4587_vm5, %v4221_v51, %v4446_v2 }
 0x2c4   : > { %v1271_v41 = vor.u32 %v1270_v21, %v1269_v43  ;;  %v3094_v26 = vshll.u32 %v6918_v23, %v3092_v56  ;;  %v3095_v19 = vshrl.u32 %v6929_v44, %v3093_v39  ;;  %v3098_v8 = vadd.s32 127, %v3097_v3 }
 0x2c5   : > { %vm1275_vm1 = vcmp.lt.s32.totalorder %v6937_v53, 4  ;;  %v4601_v36 = vsel %vm4596_vm6, %v4592_v48, %v4470_v18  ;;  %v7543_v6 = vand.u32 2147483647, %v6526_v58  ;;  %vm1273_vm14 = vcmp.lt.s32.totalorder %v6937_v53, 2 }
 0x2c6   : > { %vm1274_vm0 = vcmp.lt.s32.totalorder %v6937_v53, 3  ;;  %v1277_v23 = vsel %vm1275_vm1, %v1265_v20, 2102212464  ;;  %v4610_v44 = vsel %vm4605_vm7, %v4601_v36, %v4494_v24  ;;  %v3096_v16 = vor.u32 %v3095_v19, %v3094_v26 }
 0x2c7   : > { %vm6968_vm3 = vcmp.le.f32.partialorder %v7543_v6, 0.7853982  ;;  %v3099_v42 = vshll.u32 %v3098_v8, 23  ;;  %v1276_v18 = vsel %vm1272_vm4, %v1256_v46, %v1259_v59  ;;  %v7546_v15 = vrot.slane %v6677_v10, 2 }
 0x2c8   : > { %v1278_v17 = vsel %vm1274_vm0, %v1262_v14, %v1277_v23  ;;  %v1280_v32 = vsel %vm1272_vm4, %v1259_v59, %v1262_v14  ;;  %v1281_v37 = vsel %vm1275_vm1, %v1268_v27, 920167782  ;;  %v7547_v51 = vand.u32 2147483647, %v6715_v7 }
 0x2c9   : > { %v4619_v61 = vsel %vm4614_vm8, %v4610_v44, %v7546_v15  ;;  %v3100_v10 = vor.u32 4788187, %v3099_v42  ;;  %v3103_v56 = vcvt.s32.f32 %v3096_v16  ;;  %v1282_v43 = vsel %vm1274_vm0, %v1265_v20, %v1281_v37 }
 0x2ca   : > { %v4628_v21 = vsel %vm4623_vm9, %v4619_v61, %v6751_v11  ;;  %vm6992_vm12 = vcmp.le.f32.partialorder %v7547_v51, 0.7853982  ;;  %v7550_v55 = vrot.slane %v6406_v49, 5  ;;  %vm7551_vm13 = vcmask 1046528  }
 0x2cb   : > { %v1283_v35 = vsel %vm1273_vm14, %v1280_v32, %v1282_v43  ;;  %v1284_v11 = vsel %vm1272_vm4, %v1262_v14, %v1265_v20  ;;  %v1285_v2 = vsel %vm1275_vm1, %v1271_v41, 1326507024  ;;  %v3101_v39 = vand.u32 2147483647, %v3100_v10 }
 0x2cc   : > { %v4637_v59 = vsel %vm7551_vm13, %v4628_v21, %v7550_v55  ;;  %v1286_v3 = vsel %vm1274_vm0, %v1268_v27, %v1285_v2  ;;  %v7011_v24 = vmul.u32.u64.low %v6933_v9, %v1283_v35  ;;  %v7012_v48 = vmul.u32.u64.high %v6933_v9, %v1283_v35, %v7011_v24 }
 0x2cd   : > { %4645 = vst [vmem:[%s6066_s21 + $0x20] sm:$0xff] %v4637_v59  ;;  %v1428_v49 = vsel %vm1345_vm2, %v1427_v47, %v6912_v57  ;;  %v1287_v20 = vsel %vm1273_vm14, %v1284_v11, %v1286_v3  ;;  %v7024_v14 = vand.u32 8388607, %v2917_v30  ;;  %v2927_v27 = vadd.s32 1, %v6940_v50 }
 0x2ce   : > { %v3104_v41 = vmul.f32 %v3103_v56, %v3101_v39  ;;  %v3107_v26 = vsub.s32 4, %v6904_v31  ;;  %v7029_v19 = vmul.u32.u64.low %v6933_v9, %v1287_v20  ;;  %v7030_v8 = vmul.u32.u64.high %v6933_v9, %v1287_v20, %v7029_v19 }
 0x2cf   : > { %vm3023_vm10 = vcmp.lt.s32.totalorder %v6715_v7, 0  ;;  %v4187_v57 = vsub.s32 6, %v5783_v33  ;;  %v1279_v47 = vsel %vm1273_vm14, %v1276_v18, %v1278_v17  ;;  %vm2928_vm11 = vcmp.gt.s32.totalorder %v2927_v27, 0 }
 0x2d0   : > { %v7039_v36 = vsel %vm6968_vm3, 0, %v6925_v60  ;;  %v3105_v50 = vxor.u32 2147483648, %v3104_v41  ;;  %v1298_v6 = vadd.s32 1, %v7012_v48  ;;  %v2929_v23 = vsel %vm2928_vm11, %v2927_v27, 0 }
 0x2d1   : > { %v1431_v44 = vsel %vm6968_vm3, %v6526_v58, %v1428_v49  ;;  %v2925_v16 = vor.u32 8388608, %v7024_v14  ;;  %v2931_v42 = vand.u32 31, %v2929_v23  ;;  %v4829_v53 = vadd.f32 -0.5, %v6839_v52 }
 0x2d2   : > { %v3106_v18 = vsel %vm3023_vm10, %v3105_v50, %v3104_v41  ;;  %v3108_v15 = vsel %vm3023_vm10, %v3107_v26, %v6904_v31  ;;  %v1295_v61 = vmul.u32 %v6933_v9, %v1279_v47  ;;  %vm1297_vm2 = vc.u32 %v7030_v8, %v7011_v24 }
 0x2d3   : > { %v3109_v60 = vsel %vm6992_vm12, %v6715_v7, %v3106_v18  ;;  %v1299_v12 = vsel %vm1297_vm2, %v1298_v6, %v7012_v48  ;;  %v7055_v17 = vshrl.u32 %v2929_v23, 5  ;;  %v2932_v32 = vsub.s32 32, %v2931_v42 }
 0x2d4   : > { %5200 = vcosq.f32 %v3109_v60  ;;  %v1300_v37 = vadd.s32 %v1299_v12, %v1295_v61  ;;  %v2934_v21 = vshll.u32 %v5381_v34, %v2931_v42  ;;  %v2937_v31 = vshll.u32 %v5382_v38, %v2931_v42 }
 0x2d5   : > { %5202 = vsinq.f32 %v3109_v60  ;;  %v2935_v9 = vshrl.u32 %v5382_v38, %v2932_v32  ;;  %v2938_v51 = vshrl.u32 %v7500_v40, %v2932_v32  ;;  %v2940_v10 = vshll.u32 %v7500_v40, %v2931_v42 }
 0x2d6   : > { %v1301_v56 = vadd.s32 536870912, %v1300_v37  ;;  %v2941_v43 = vshrl.u32 %v7540_v13, %v2932_v32  ;;  %v2943_v55 = vshll.u32 %v7540_v13, %v2931_v42  ;;  %v2944_v59 = vshrl.u32 %v7541_v29, %v2932_v32 }
 0x2d7   : > { %v2936_v35 = vor.u32 %v2935_v9, %v2934_v21  ;;  %v2939_v11 = vor.u32 %v2938_v51, %v2937_v31  ;;  %v2946_v2 = vshll.u32 %v7541_v29, %v2931_v42  ;;  %v2947_v39 = vshrl.u32 %v7542_v5, %v2932_v32 }
 0x2d8   : > { %5204 = vcosq.f32 %v1431_v44  ;;  %v7067_v3 = vshrl.u32 %v1301_v56, 30  ;;  %v2942_v48 = vor.u32 %v2941_v43, %v2940_v10  ;;  %v2945_v49 = vor.u32 %v2944_v59, %v2943_v55  ;;  %v7110_v56 = vld [vmem:[%s7482_s3] ss:$2 sm:$0xff] }
 0x2d9   : > { %5206 = vsinq.f32 %v1431_v44  ;;  %v3110_v20 = vsel %vm6992_vm12, 0, %v3108_v15  ;;  %v2948_v14 = vor.u32 %v2947_v39, %v2946_v2  ;;  %v7071_v27 = vmul.f32 6.2831855, %v4829_v53 }
 0x2da   : > { %v1303_v41 = vshll.u32 %v7067_v3, 30  ;;  %v2933_v26 = vshrl.u32 %v5381_v34, %v2932_v32  ;;  %vm2949_vm15 = vcmp.lt.s32.totalorder %v7055_v17, 1  ;;  %vm2952_vm4 = vcmp.lt.s32.totalorder %v7055_v17, 4 }
 0x2db   : > { %vm2950_vm1 = vcmp.lt.s32.totalorder %v7055_v17, 2  ;;  %vm2951_vm3 = vcmp.lt.s32.totalorder %v7055_v17, 3  ;;  %v2957_v19 = vsel %vm2949_vm15, %v2936_v35, %v2939_v11  ;;  %v2958_v46 = vsel %vm2952_vm4, %v2945_v49, 920167782 }
 0x2dc   : > { %v7081_v47 = vsub.s32 %v1300_v37, %v1303_v41  ;;  %v2954_v50 = vsel %vm2952_vm4, %v2942_v48, 2102212464  ;;  %v2959_v6 = vsel %vm2951_vm3, %v2942_v48, %v2958_v46  ;;  %v2961_v23 = vsel %vm2949_vm15, %v2939_v11, %v2942_v48 }
 0x2dd   : > { %v2960_v44 = vsel %vm2950_vm1, %v2957_v19, %v2959_v6  ;;  %v2962_v42 = vsel %vm2952_vm4, %v2948_v14, 1326507024  ;;  %v2965_v53 = vshll.u32 %v2925_v16, 8  ;;  %v1449_v18 = vand.u32 2139095040, %v7071_v27 }
 0x2de   : > { %v3940_v15 = vand.u32 3, %v3110_v20  ;;  %v1306_v61 = vsub.s32 0, %v7081_v47  ;;  %v2953_v60 = vsel %vm2949_vm15, %v2933_v26, %v2936_v35  ;;  %v2963_v12 = vsel %vm2951_vm3, %v2945_v49, %v2962_v42 }
 0x2df   : > { %v2955_v32 = vsel %vm2951_vm3, %v2939_v11, %v2954_v50  ;;  %v2964_v37 = vsel %vm2950_vm1, %v2961_v23, %v2963_v12  ;;  %v7093_v21 = vmul.u32.u64.low %v2965_v53, %v2960_v44  ;;  %v7094_v31 = vmul.u32.u64.high %v2965_v53, %v2960_v44, %v7093_v21 }
 0x2e0   : > { %v7098_v9 = vand.u32 3, %v7039_v36  ;;  %vm3113_vm14 = vweird.f32 %v6715_v7  ;;  %v7102_v16 = vrot.slane %v6914_v1, 3  ;;  %v4851_v51 = vmin.u32 %v1306_v61, %v7081_v47 }
 0x2e1   : > { %v7105_v10 = vpop.eup %5200  ;;  %v7115_v43 = vrot.slane %v7110_v56, %v4187_v57  ;;  %v7117_v55 = vmul.u32.u64.low %v2965_v53, %v2964_v37  ;;  %v7118_v59 = vmul.u32.u64.high %v2965_v53, %v2964_v37, %v7117_v55  ;;  %v1450_v35 = vshrl.u32 %v1449_v18, 23 }
 0x2e2   : > { %v5203_v1 = vpop.eup %5202  ;;  %v2266_v11 = vadd.s32 3, %v7039_v36  ;;  %v3121_v2 = vxor.u32 2147483648, %v7105_v10  ;;  %v1308_v39 = vclz %v4851_v51  ;;  %v2956_v48 = vsel %vm2950_vm1, %v2953_v60, %v2955_v32 }
 0x2e3   : > { %v3114_v49 = vadd.s32 3, %v3110_v20  ;;  %v3118_v14 = vxor.u32 2147483648, %v5203_v1  ;;  %vm3941_vm0 = vcmp.lt.s32.totalorder %v3940_v15, 2  ;;  %vm3945_vm12 = vcmp.eq.s32.totalorder %v3940_v15, 2 }
 0x2e4   : > { %vm1438_vm13 = vcmp.eq.s32.totalorder %v7098_v9, 0  ;;  %vm3942_vm10 = vcmp.eq.s32.totalorder %v3940_v15, 0  ;;  %v3947_v41 = vsel %vm3945_vm12, %v3121_v2, %v5203_v1  ;;  %v4852_v26 = vadd.s32 4294967294, %v1308_v39 }
 0x2e5   : > { %v2975_v19 = vadd.s32 1, %v7094_v31  ;;  %v5205_v46 = vpop.eup %5204  ;;  %v3944_v36 = vsel %vm3942_vm10, %v7105_v10, %v3118_v14  ;;  %v2972_v50 = vmul.u32 %v2965_v53, %v2956_v48  ;;  %vm2974_vm11 = vc.u32 %v7118_v59, %v7093_v21 }
 0x2e6   : > { %v4858_v17 = vadd.s32 4294967169, %v1450_v35  ;;  %v5207_v6 = vpop.eup %5206  ;;  %v2267_v20 = vand.u32 3, %v2266_v11  ;;  %v3948_v23 = vsel %vm3941_vm0, %v3944_v36, %v3947_v41  ;;  %vm4853_vm2 = vcmp.lt.s32.totalorder %v4852_v26, 0 }
 0x2e7   : > { %v2976_v44 = vsel %vm2974_vm11, %v2975_v19, %v7094_v31  ;;  %vm1437_vm15 = vcmp.lt.s32.totalorder %v7098_v9, 2  ;;  %v3949_v42 = vsel %vm3113_vm14, nan, %v3948_v23  ;;  %v1311_v18 = vsel %vm4853_vm2, 0, %v4852_v26 }
 0x2e8   : > { %v2977_v15 = vadd.s32 %v2976_v44, %v2972_v50  ;;  %v2388_v61 = vmul.f32 1.5707964, %v6839_v52  ;;  %v1442_v53 = vxor.u32 2147483648, %v5205_v46  ;;  %v3115_v60 = vand.u32 3, %v3114_v49 }
 0x2e9   : > { %5208 = vrcp.f32 %v3949_v42  ;;  %v1316_v12 = vsub.s32 4294967266, %v1311_v18  ;;  %v1439_v32 = vxor.u32 2147483648, %v5207_v6  ;;  %vm1441_vm4 = vcmp.eq.s32.totalorder %v7098_v9, 2 }
 0x2ea   : > { %v2978_v37 = vadd.s32 536870912, %v2977_v15  ;;  %v1456_v51 = vadd.s32 1, %v4858_v17  ;;  %vm2269_vm1 = vcmp.eq.s32.totalorder %v2267_v20, 0  ;;  %v1312_v31 = vsub.s32 32, %v1311_v18 }
 0x2eb   : > { %v1317_v55 = vadd.s32 127, %v1316_v12  ;;  %v7499_v35 = vand.u32 2147483647, %v7071_v27  ;;  %vm1435_vm3 = vweird.f32 %v6526_v58  ;;  %vm2272_vm0 = vcmp.eq.s32.totalorder %v2267_v20, 2 }
 0x2ec   : > { %v2979_v11 = vshrl.u32 %v2978_v37, 30  ;;  %vm1457_vm12 = vcmp.gt.s32.totalorder %v1456_v51, 0  ;;  %v7137_v39 = vmin.f32 %v2388_v61, 1.5706964  ;;  %v1443_v48 = vsel %vm1441_vm4, %v1442_v53, %v5207_v6 }
 0x2ed   : > { %vm3117_vm10 = vcmp.eq.s32.totalorder %v3115_v60, 0  ;;  %vm3120_vm11 = vcmp.eq.s32.totalorder %v3115_v60, 2  ;;  %v1296_v49 = vadd.s32 %v7011_v24, %v7030_v8  ;;  %v1440_v41 = vsel %vm1438_vm13, %v5205_v46, %v1439_v32 }
 0x2ee   : > { %v2274_v26 = vsel %vm2272_vm0, %v1442_v53, %v5207_v6  ;;  %v1318_v19 = vshll.u32 %v1317_v55, 23  ;;  %v2980_v36 = vshll.u32 %v2979_v11, 30  ;;  %v2271_v50 = vsel %vm2269_vm1, %v5205_v46, %v1439_v32 }
 0x2ef   : > { %v1314_v17 = vshrl.u32 %v1296_v49, %v1312_v31  ;;  %v1453_v23 = vand.u32 8388607, %v7499_v35  ;;  %v1458_v44 = vsel %vm1457_vm12, %v1456_v51, 0  ;;  %v3119_v42 = vsel %vm3117_vm10, %v7105_v10, %v3118_v14  ;;  %v7157_v10 = vld [vmem:[%s7482_s3 + $0x1] ss:$2 sm:$0xff] }
 0x2f0   : > { %v3122_v61 = vsel %vm3120_vm11, %v3121_v2, %v5203_v1  ;;  %v7147_v12 = vsub.s32 %v2977_v15, %v2980_v36  ;;  %v3128_v24 = vand.u32 2139095040, %v7137_v39  ;;  %v1444_v8 = vsel %vm1437_vm15, %v1440_v41, %v1443_v48 }
 0x2f1   : > { %vm2268_vm13 = vcmp.lt.s32.totalorder %v2267_v20, 2  ;;  %vm3116_vm2 = vcmp.lt.s32.totalorder %v3115_v60, 2  ;;  %v1313_v6 = vshll.u32 %v7081_v47, %v1311_v18  ;;  %v1319_v53 = vor.u32 4788187, %v1318_v19 }
 0x2f2   : > { %v2275_v46 = vsel %vm2268_vm13, %v2271_v50, %v2274_v26  ;;  %v2983_v32 = vsub.s32 0, %v7147_v12  ;;  %v1460_v37 = vand.u32 31, %v1458_v44  ;;  %v3123_v51 = vsel %vm3116_vm2, %v3119_v42, %v3122_v61 }
 0x2f3   : > { %v7162_v9 = vrot.slane %v7157_v10, %v4187_v57  ;;  %v1315_v1 = vor.u32 %v1314_v17, %v1313_v6  ;;  %v1454_v2 = vor.u32 8388608, %v1453_v23  ;;  %vm2919_vm15 = vcmp.lt.s32.totalorder %v6897_v62, 0 }
 0x2f4   : > { %v4915_v47 = vmin.u32 %v2983_v32, %v7147_v12  ;;  %v3003_v14 = vsub.s32 4, %v2979_v11  ;;  %v3129_v20 = vshrl.u32 %v3128_v24, 23  ;;  %v1445_v18 = vsel %vm1435_vm3, nan, %v1444_v8 }
 0x2f5   : > { %v2276_v15 = vsel %vm1435_vm3, nan, %v2275_v46  ;;  %v1326_v60 = vsub.s32 4, %v7067_v3  ;;  %v2973_v57 = vadd.s32 %v7093_v21, %v7118_v59  ;;  %v3124_v55 = vsel %vm3113_vm14, nan, %v3123_v51 }
 0x2f6   : > { %v5209_v31 = vpop.eup %5208  ;;  %v1320_v48 = vand.u32 2147483647, %v1319_v53  ;;  %v2985_v49 = vclz %v4915_v47  ;;  %v7175_v41 = vsub.s32 32, %v1460_v37  ;;  %v1322_v19 = vcvt.s32.f32 %v1315_v1 }
 0x2f7   : > { %v4067_v26 = vmul.f32 %v5209_v31, %v3124_v55  ;;  %v7177_v36 = vshrl.u32 %v1458_v44, 5  ;;  %v7179_v50 = vshll.u32 %v1454_v2, 8  ;;  %v7183_v17 = vsel %vm2919_vm15, %v3003_v14, %v2979_v11 }
 0x2f8   : > { %v4916_v58 = vadd.s32 4294967294, %v2985_v49  ;;  %v1463_v21 = vshll.u32 %v5381_v34, %v1460_v37  ;;  %v7186_v59 = vadd.s32 4294967169, %v3129_v20  ;;  %v1466_v42 = vshll.u32 %v5382_v38, %v1460_v37 }
 0x2f9   : > { %v4075_v7 = vsub.f32 0.0, %v4067_v26  ;;  %v4102_v23 = vrot.slane %v4067_v26, 1  ;;  %v1469_v61 = vshll.u32 %v7500_v40, %v1460_v37  ;;  %v7190_v24 = vmul.f32 %v1322_v19, %v1320_v48 }
 0x2fa   : > { %vm4917_vm14 = vcmp.lt.s32.totalorder %v4916_v58, 0  ;;  %v1464_v44 = vshrl.u32 %v5382_v38, %v7175_v41  ;;  %v1467_v11 = vshrl.u32 %v7500_v40, %v7175_v41  ;;  %v1470_v1 = vshrl.u32 %v7540_v13, %v7175_v41 }
 0x2fb   : > { %v4118_v8 = vmul.f32 %v4102_v23, %v2276_v15  ;;  %v4231_v6 = vmul.f32 %v4102_v23, %v1445_v18  ;;  %v4328_v46 = vrot.slane %v4075_v7, 2  ;;  %v2988_v53 = vsel %vm4917_vm14, 0, %v4916_v58 }
 0x2fc   : > { %v2989_v32 = vsub.s32 32, %v2988_v53  ;;  %v2993_v51 = vsub.s32 4294967266, %v2988_v53  ;;  %v1473_v2 = vshrl.u32 %v7541_v29, %v7175_v41  ;;  %v2990_v55 = vshll.u32 %v7147_v12, %v2988_v53 }
 0x2fd   : > { %v4126_v47 = vsub.f32 %v1445_v18, %v4118_v8  ;;  %v4239_v14 = vadd.f32 %v4231_v6, %v2276_v15  ;;  %v4344_v20 = vmul.f32 %v4328_v46, %v2276_v15  ;;  %v4392_v31 = vmul.f32 %v4328_v46, %v1445_v18 }
 0x2fe   : > { %v2991_v48 = vshrl.u32 %v2973_v57, %v2989_v32  ;;  %v2994_v49 = vadd.s32 127, %v2993_v51  ;;  %v1476_v26 = vshrl.u32 %v7542_v5, %v7175_v41  ;;  %v1472_v8 = vshll.u32 %v7540_v13, %v1460_v37 }
 0x2ff   : > { %v4158_v19 = vmul.f32 %v7102_v16, %v4126_v47  ;;  %v4247_v58 = vmul.f32 %v4239_v14, %v7102_v16  ;;  %v4352_v7 = vsub.f32 %v1445_v18, %v4344_v20  ;;  %v4400_v23 = vadd.f32 %v4392_v31, %v2276_v15 }
 0x300   : > { %v2992_v35 = vor.u32 %v2991_v48, %v2990_v55  ;;  %v2995_v40 = vshll.u32 %v2994_v49, 23  ;;  %v1475_v6 = vshll.u32 %v7541_v29, %v1460_v37  ;;  %vm7213_vm4 = vcmp.le.f32.partialorder %v2917_v30, 0.7853982 }
 0x301   : > { %v4207_v46 = vadd.f32 %v7115_v43, %v4158_v19  ;;  %v4296_v12 = vadd.f32 %v7162_v9, %v4247_v58  ;;  %v4360_v57 = vmul.f32 %v4352_v7, %v7102_v16  ;;  %v4408_v53 = vmul.f32 %v4400_v23, %v7102_v16 }
 0x302   : > { %v2996_v18 = vor.u32 4788187, %v2995_v40  ;;  %v1465_v15 = vor.u32 %v1464_v44, %v1463_v21  ;;  %v1474_v51 = vor.u32 %v1473_v2, %v1472_v8  ;;  %v1477_v47 = vor.u32 %v1476_v26, %v1475_v6 }
 0x303   : > { %v4215_v14 = vmax.f32 %v4207_v46, 0.0  ;;  %v4304_v37 = vmax.f32 %v4296_v12, 0.0  ;;  %v4368_v20 = vadd.f32 %v4360_v57, %v7115_v43  ;;  %v4416_v31 = vadd.f32 %v4408_v53, %v7162_v9 }
 0x304   : > { %vm1242_vm1 = vcmp.lt.s32.totalorder %v6822_v54, 0  ;;  %v2997_v55 = vand.u32 2147483647, %v2996_v18  ;;  %v2999_v16 = vcvt.s32.f32 %v2992_v35  ;;  %v1468_v48 = vor.u32 %v1467_v11, %v1466_v42 }
 0x305   : > { %v1471_v49 = vor.u32 %v1470_v1, %v1469_v61  ;;  %v4312_v30 = vmin.f32 %v4304_v37, 31.0  ;;  %v4376_v19 = vmax.f32 %v4368_v20, 0.0  ;;  %v4424_v58 = vmax.f32 %v4416_v31, 0.0 }
 0x306   : > { %vm1481_vm3 = vcmp.lt.s32.totalorder %v7177_v36, 4  ;;  %v4223_v40 = vmin.f32 %v4215_v14, 31.0  ;;  %v3000_v21 = vmul.f32 %v2999_v16, %v2997_v55  ;;  %vm1478_vm0 = vcmp.lt.s32.totalorder %v7177_v36, 1 }
 0x307   : > { %v1487_v43 = vsel %vm1481_vm3, %v1474_v51, 920167782  ;;  %v4384_v44 = vmin.f32 %v4376_v19, 31.0  ;;  %v4432_v9 = vmin.f32 %v4424_v58, 31.0  ;;  %v4448_v2 = vrot.slane %v4312_v30, 7 }
 0x308   : > { %v1491_v35 = vsel %vm1481_vm3, %v1477_v47, 1326507024  ;;  %v1324_v42 = vxor.u32 2147483648, %v7190_v24  ;;  %v3001_v61 = vxor.u32 2147483648, %v3000_v21  ;;  %vm1480_vm12 = vcmp.lt.s32.totalorder %v7177_v36, 3 }
 0x309   : > { %v1486_v11 = vsel %vm1478_vm0, %v1465_v15, %v1468_v48  ;;  %v4472_v1 = vrot.slane %v4384_v44, 6  ;;  %v4496_v26 = vrot.slane %v4432_v9, 5  ;;  %v4594_v7 = vsel %vm4587_vm5, %v4223_v40, %v4448_v2 }
 0x30a   : > { %v1488_v23 = vsel %vm1480_vm12, %v1471_v49, %v1487_v43  ;;  %v3002_v8 = vsel %vm2919_vm15, %v3001_v61, %v3000_v21  ;;  %v1462_v6 = vshrl.u32 %v5381_v34, %v7175_v41  ;;  %v1490_v46 = vsel %vm1478_vm0, %v1468_v48, %v1471_v49 }
 0x30b   : > { %v1492_v12 = vsel %vm1480_vm12, %v1474_v51, %v1491_v35  ;;  %v4603_v57 = vsel %vm4596_vm6, %v4594_v7, %v4472_v1  ;;  %v3005_v53 = vsel %vm7213_vm4, %v6897_v62, %v3002_v8  ;;  %vm1479_vm10 = vcmp.lt.s32.totalorder %v7177_v36, 2 }
 0x30c   : > { %v1483_v18 = vsel %vm1481_vm3, %v1471_v49, 2102212464  ;;  %v4612_v41 = vsel %vm4605_vm7, %v4603_v57, %v4496_v26  ;;  %v1325_v47 = vsel %vm1242_vm1, %v1324_v42, %v7190_v24  ;;  %5210 = vcosq.f32 %v3005_v53 }
 0x30d   : > { %v1489_v51 = vsel %vm1479_vm10, %v1486_v11, %v1488_v23  ;;  %v7554_v14 = vrot.slane %v6701_v22, 2  ;;  %5212 = vsinq.f32 %v3005_v53  ;;  %v1482_v20 = vsel %vm1478_vm0, %v1462_v6, %v1465_v15 }
 0x30e   : > { %v1493_v31 = vsel %vm1479_vm10, %v1490_v46, %v1492_v12  ;;  %v1484_v24 = vsel %vm1480_vm12, %v1468_v48, %v1483_v18  ;;  %v7555_v22 = vrot.slane %v6422_v25, 5  ;;  %vm7556_vm11 = vcmask 1046528  }
 0x30f   : > { %v4621_v37 = vsel %vm4614_vm8, %v4612_v41, %v7554_v14  ;;  %v7266_v16 = vmul.u32.u64.low %v7179_v50, %v1493_v31  ;;  %v7267_v49 = vmul.u32.u64.high %v7179_v50, %v1493_v31, %v7266_v16  ;;  %v3135_v58 = vadd.s32 1, %v7186_v59 }
 0x310   : > { %v4630_v55 = vsel %vm4623_vm9, %v4621_v37, %v6787_v0  ;;  %v7273_v19 = vmul.u32.u64.low %v7179_v50, %v1489_v51  ;;  %v7274_v15 = vmul.u32.u64.high %v7179_v50, %v1489_v51, %v7273_v19  ;;  %v7557_v0 = vand.u32 2147483647, %v6822_v54 }
 0x311   : > { %v4639_v30 = vsel %vm7556_vm11, %v4630_v55, %v7555_v22  ;;  %v3006_v25 = vsel %vm7213_vm4, 0, %v7183_v17  ;;  %v1485_v21 = vsel %vm1479_vm10, %v1482_v20, %v1484_v24  ;;  %vm3136_vm2 = vcmp.gt.s32.totalorder %v3135_v58, 0 }
 0x312   : > { %4647 = vst [vmem:[%s6066_s21 + $0x30] sm:$0xff] %v4639_v30  ;;  %vm7281_vm13 = vcmp.le.f32.partialorder %v7557_v0, 0.7853982  ;;  %v1327_v59 = vsel %vm1242_vm1, %v1326_v60, %v7067_v3  ;;  %vm1503_vm15 = vc.u32 %v7267_v49, %v7273_v19  ;;  %v3137_v43 = vsel %vm3136_vm2, %v3135_v58, 0 }
 0x313   : > { %v1328_v40 = vsel %vm7281_vm13, %v6822_v54, %v1325_v47  ;;  %v3837_v32 = vand.u32 3, %v3006_v25  ;;  %v1504_v17 = vadd.s32 1, %v7274_v15  ;;  %v3125_v44 = vand.u32 2147483647, %v7137_v39 }
 0x314   : > { %v3139_v9 = vand.u32 31, %v3137_v43  ;;  %5214 = vcosq.f32 %v1328_v40  ;;  %v1501_v36 = vmul.u32 %v7179_v50, %v1485_v21  ;;  %v1329_v3 = vsel %vm7281_vm13, 0, %v1327_v59 }
 0x315   : > { %5216 = vsinq.f32 %v1328_v40  ;;  %v1505_v2 = vsel %vm1503_vm15, %v1504_v17, %v7274_v15  ;;  %v3010_v42 = vadd.s32 3, %v3006_v25  ;;  %vm3838_vm14 = vcmp.lt.s32.totalorder %v3837_v32, 2 }
 0x316   : > { %v3140_v35 = vsub.s32 32, %v3139_v9  ;;  %v1506_v60 = vadd.s32 %v1505_v2, %v1501_v36  ;;  %vm3839_vm4 = vcmp.eq.s32.totalorder %v3837_v32, 0  ;;  %v3132_v61 = vand.u32 8388607, %v3125_v44 }
 0x317   : > { %vm3842_vm1 = vcmp.eq.s32.totalorder %v3837_v32, 2  ;;  %v7560_v26 = vmov 2131351028   ;;  %v7310_v23 = vshrl.u32 %v3137_v43, 5  ;;  %v3142_v18 = vshll.u32 %v5381_v34, %v3139_v9 }
 0x318   : > { %v1507_v11 = vadd.s32 536870912, %v1506_v60  ;;  %v3143_v1 = vshrl.u32 %v5382_v38, %v3140_v35  ;;  %v3146_v50 = vshrl.u32 %v7560_v26, %v3140_v35  ;;  %v3149_v8 = vshrl.u32 %v7540_v13, %v3140_v35 }
 0x319   : > { %v5211_v7 = vpop.eup %5210  ;;  %v3152_v6 = vshrl.u32 %v7541_v29, %v3140_v35  ;;  %v3155_v46 = vshrl.u32 %v7542_v5, %v3140_v35  ;;  %v3145_v41 = vshll.u32 %v5382_v38, %v3139_v9  ;;  %v3148_v51 = vshll.u32 %v7560_v26, %v3139_v9 }
 0x31a   : > { %v5213_v12 = vpop.eup %5212  ;;  %v3017_v57 = vxor.u32 2147483648, %v5211_v7  ;;  %v7315_v53 = vshrl.u32 %v1507_v11, 30  ;;  %v3151_v14 = vshll.u32 %v7540_v13, %v3139_v9  ;;  %v3154_v37 = vshll.u32 %v7541_v29, %v3139_v9 }
 0x31b   : > { %v3014_v47 = vxor.u32 2147483648, %v5213_v12  ;;  %v3144_v5 = vor.u32 %v3143_v1, %v3142_v18  ;;  %v3147_v55 = vor.u32 %v3146_v50, %v3145_v41  ;;  %v3150_v16 = vor.u32 %v3149_v8, %v3148_v51 }
 0x31c   : > { %v3844_v20 = vsel %vm3842_vm1, %v3017_v57, %v5213_v12  ;;  %v1509_v31 = vshll.u32 %v7315_v53, 30  ;;  %v3153_v22 = vor.u32 %v3152_v6, %v3151_v14  ;;  %v3156_v30 = vor.u32 %v3155_v46, %v3154_v37 }
 0x31d   : > { %v3841_v24 = vsel %vm3839_vm4, %v5211_v7, %v3014_v47  ;;  %v698_v38 = vmax.f32 %v6789_v4, 0.0  ;;  %v2162_v15 = vadd.s32 3, %v1329_v3  ;;  %vm3009_vm3 = vweird.f32 %v6897_v62 }
 0x31e   : > { %v3845_v13 = vsel %vm3838_vm14, %v3841_v24, %v3844_v20  ;;  %v1333_v58 = vand.u32 3, %v1329_v3  ;;  %v3011_v29 = vand.u32 3, %v3010_v42  ;;  %v7330_v48 = vsub.s32 %v1506_v60, %v1509_v31 }
 0x31f   : > { %v3846_v0 = vsel %vm3009_vm3, nan, %v3845_v13  ;;  %v3133_v25 = vor.u32 8388608, %v3132_v61  ;;  %vm3157_vm0 = vcmp.lt.s32.totalorder %v7310_v23, 1  ;;  %vm3160_vm12 = vcmp.lt.s32.totalorder %v7310_v23, 4 }
 0x320   : > { %5218 = vrcp.f32 %v3846_v0  ;;  %v3165_v4 = vsel %vm3157_vm0, %v3144_v5, %v3147_v55  ;;  %v3166_v21 = vsel %vm3160_vm12, %v3153_v22, 920167782  ;;  %v3169_v59 = vsel %vm3157_vm0, %v3147_v55, %v3150_v16 }
 0x321   : > { %v5215_v40 = vpop.eup %5214  ;;  %v3170_v43 = vsel %vm3160_vm12, %v3156_v30, 1326507024  ;;  %v2163_v17 = vand.u32 3, %v2162_v15  ;;  %v3141_v9 = vshrl.u32 %v5381_v34, %v3140_v35  ;;  %vm3158_vm10 = vcmp.lt.s32.totalorder %v7310_v23, 2 }
 0x322   : > { %v5217_v32 = vpop.eup %5216  ;;  %vm3159_vm11 = vcmp.lt.s32.totalorder %v7310_v23, 3  ;;  %v1512_v36 = vsub.s32 0, %v7330_v48  ;;  %v3162_v2 = vsel %vm3160_vm12, %v3150_v16, 2102212464  ;;  %vm3013_vm13 = vcmp.eq.s32.totalorder %v3011_v29, 0 }
 0x323   : > { %v3167_v3 = vsel %vm3159_vm11, %v3150_v16, %v3166_v21  ;;  %v3171_v60 = vsel %vm3159_vm11, %v3153_v22, %v3170_v43  ;;  %v3173_v11 = vshll.u32 %v3133_v25, 8  ;;  %v1336_v1 = vxor.u32 2147483648, %v5217_v32 }
 0x324   : > { %v3168_v42 = vsel %vm3158_vm10, %v3165_v4, %v3167_v3  ;;  %v3172_v61 = vsel %vm3158_vm10, %v3169_v59, %v3171_v60  ;;  %v1339_v26 = vxor.u32 2147483648, %v5215_v40  ;;  %vm3016_vm2 = vcmp.eq.s32.totalorder %v3011_v29, 2 }
 0x325   : > { %v3161_v34 = vsel %vm3157_vm0, %v3141_v9, %v3144_v5  ;;  %v3018_v35 = vsel %vm3016_vm2, %v3017_v57, %v5213_v12  ;;  %v3163_v50 = vsel %vm3159_vm11, %v3147_v55, %v3162_v2  ;;  %v3015_v46 = vsel %vm3013_vm13, %v5211_v7, %v3014_v47 }
 0x326   : > { %v7348_v8 = vmul.u32.u64.low %v3173_v11, %v3172_v61  ;;  %v7349_v6 = vmul.u32.u64.high %v3173_v11, %v3172_v61, %v7348_v8  ;;  %v4859_v18 = vmin.u32 %v1512_v36, %v7330_v48  ;;  %v706_v14 = vmin.f32 %v698_v38, 1.0 }
 0x327   : > { %v7352_v41 = vmul.u32.u64.low %v3173_v11, %v3168_v42  ;;  %v7353_v51 = vmul.u32.u64.high %v3173_v11, %v3168_v42, %v7352_v41  ;;  %vm1335_vm15 = vcmp.eq.s32.totalorder %v1333_v58, 0  ;;  %vm1338_vm14 = vcmp.eq.s32.totalorder %v1333_v58, 2 }
 0x328   : > { %vm2165_vm4 = vcmp.eq.s32.totalorder %v2163_v17, 0  ;;  %vm2168_vm1 = vcmp.eq.s32.totalorder %v2163_v17, 2  ;;  %vm3012_vm12 = vcmp.lt.s32.totalorder %v3011_v29, 2  ;;  %v3164_v12 = vsel %vm3158_vm10, %v3161_v34, %v3163_v50  ;;  %v567_v50 = vpop.f32.mrf.mxu0 }
 0x329   : > { %v1337_v57 = vsel %vm1335_vm15, %v5215_v40, %v1336_v1  ;;  %v1340_v37 = vsel %vm1338_vm14, %v1339_v26, %v5217_v32  ;;  %v2167_v20 = vsel %vm2165_vm4, %v5215_v40, %v1336_v1  ;;  %v3019_v31 = vsel %vm3012_vm12, %v3015_v46, %v3018_v35 }
 0x32a   : > { %v2170_v7 = vsel %vm2168_vm1, %v1339_v26, %v5217_v32  ;;  %v1514_v47 = vclz %v4859_v18  ;;  %vm3182_vm0 = vc.u32 %v7349_v6, %v7352_v41  ;;  %v3183_v5 = vadd.s32 1, %v7353_v51 }
 0x32b   : > { %v4082_v55 = vmul.f32 5.0, %v706_v14  ;;  %v3180_v24 = vmul.u32 %v3173_v11, %v3164_v12  ;;  %vm1334_vm11 = vcmp.lt.s32.totalorder %v1333_v58, 2  ;;  %vm2164_vm13 = vcmp.lt.s32.totalorder %v2163_v17, 2 }
 0x32c   : > { %v3020_v23 = vsel %vm3009_vm3, nan, %v3019_v31  ;;  %v3184_v22 = vsel %vm3182_vm0, %v3183_v5, %v7353_v51  ;;  %v1341_v30 = vsel %vm1334_vm11, %v1337_v57, %v1340_v37  ;;  %v2171_v38 = vsel %vm2164_vm13, %v2167_v20, %v2170_v7 }
 0x32d   : > { %v5219_v16 = vpop.eup %5218  ;;  %v3185_v13 = vadd.s32 %v3184_v22, %v3180_v24  ;;  %v4183_v29 = vsub.s32 5, %v5783_v33  ;;  %v4860_v0 = vadd.s32 4294967294, %v1514_v47  ;;  %vm1332_vm10 = vweird.f32 %v6822_v54 }
 0x32e   : > { %v4066_v15 = vmul.f32 %v5219_v16, %v3020_v23  ;;  %v1342_v4 = vsel %vm1332_vm10, nan, %v1341_v30  ;;  %v2172_v21 = vsel %vm1332_vm10, nan, %v2171_v38  ;;  %v4141_v43 = vrot.slane %v4082_v55, 3 }
 0x32f   : > { %v3186_v58 = vadd.s32 536870912, %v3185_v13  ;;  %v4184_v17 = vrot.slane %v7110_v56, %v4183_v29  ;;  %v4273_v9 = vrot.slane %v7157_v10, %v4183_v29  ;;  %vm4861_vm3 = vcmp.lt.s32.totalorder %v4860_v0, 0 }
 0x330   : > { %v4074_v25 = vsub.f32 0.0, %v4066_v15  ;;  %v4101_v40 = vrot.slane %v4066_v15, 1  ;;  %v1517_v34 = vsel %vm4861_vm3, 0, %v4860_v0  ;;  %v626_v14 = vrot.slane %v6523_v63, 7 }
 0x331   : > { %v7368_v36 = vshrl.u32 %v3186_v58, 30  ;;  %v568_v7 = vadd.f32 %v567_v50, %v5695_v28  ;;  %v1522_v47 = vsub.s32 4294967266, %v1517_v34  ;;  %v1518_v58 = vsub.s32 32, %v1517_v34 }
 0x332   : > { %v4117_v59 = vmul.f32 %v4101_v40, %v2172_v21  ;;  %v4230_v62 = vmul.f32 %v4101_v40, %v1342_v4  ;;  %v4327_v32 = vrot.slane %v4074_v25, 2  ;;  %v642_v23 = vsub.f32 %v6523_v63, %v626_v14 }
 0x333   : > { %v3188_v42 = vshll.u32 %v7368_v36, 30  ;;  %v4555_v29 = vrot.slane %v568_v7, 2  ;;  %v1523_v0 = vadd.s32 127, %v1522_v47  ;;  %vm7561_vm15 = vcmask 1045504  }
 0x334   : > { %v4125_v2 = vsub.f32 %v1342_v4, %v4117_v59  ;;  %v4238_v3 = vadd.f32 %v4230_v62, %v2172_v21  ;;  %v4343_v60 = vmul.f32 %v4327_v32, %v2172_v21  ;;  %v4391_v54 = vmul.f32 %v4327_v32, %v1342_v4 }
 0x335   : > { %v3189_v35 = vsub.s32 %v3185_v13, %v3188_v42  ;;  %v4519_v59 = vrot.slane %v642_v23, 2  ;;  %v1502_v32 = vadd.s32 %v7273_v19, %v7267_v49  ;;  %v4576_v42 = vrot.slane %v6523_v63, 5 }
 0x336   : > { %v4157_v61 = vmul.f32 %v4141_v43, %v4125_v2  ;;  %v4246_v11 = vmul.f32 %v4238_v3, %v4141_v43  ;;  %v4351_v1 = vsub.f32 %v1342_v4, %v4343_v60  ;;  %v4399_v26 = vadd.f32 %v4391_v54, %v2172_v21 }
 0x337   : > { %v3191_v12 = vsub.s32 0, %v3189_v35  ;;  %v1524_v3 = vshll.u32 %v1523_v0, 23  ;;  %vm7562_vm14 = vcmask 1046528   ;;  %vm3127_vm4 = vcmp.lt.s32.totalorder %v7137_v39, 0 }
 0x338   : > { %v4206_v8 = vadd.f32 %v4184_v17, %v4157_v61  ;;  %v4295_v46 = vadd.f32 %v4273_v9, %v4246_v11  ;;  %v4359_v18 = vmul.f32 %v4351_v1, %v4141_v43  ;;  %v4407_v51 = vmul.f32 %v4399_v26, %v4141_v43 }
 0x339   : > { %v4923_v5 = vmin.u32 %v3191_v12, %v3189_v35  ;;  %v4554_v43 = vrot.slane %v6523_v63, 2  ;;  %v1520_v1 = vshrl.u32 %v1502_v32, %v1518_v58  ;;  %vm3126_vm1 = vcmp.le.f32.partialorder %v3125_v44, 0.7853982 }
 0x33a   : > { %v4214_v57 = vmax.f32 %v4206_v8, 0.0  ;;  %v4303_v37 = vmax.f32 %v4295_v46, 0.0  ;;  %v4367_v20 = vadd.f32 %v4359_v18, %v4184_v17  ;;  %v4415_v31 = vadd.f32 %v4407_v51, %v4273_v9 }
 0x33b   : > { %v3193_v22 = vclz %v4923_v5  ;;  %v3181_v17 = vadd.s32 %v7352_v41, %v7349_v6  ;;  %v4556_v61 = vsel %vm7561_vm15, %v4554_v43, %v4555_v29  ;;  %v1519_v41 = vshll.u32 %v7330_v48, %v1517_v34 }
 0x33c   : > { %v4311_v55 = vmin.f32 %v4303_v37, 31.0  ;;  %v4375_v24 = vmax.f32 %v4367_v20, 0.0  ;;  %v4423_v16 = vmax.f32 %v4415_v31, 0.0  ;;  %v4222_v30 = vmin.f32 %v4214_v57, 31.0 }
 0x33d   : > { %v4924_v25 = vadd.s32 4294967294, %v3193_v22  ;;  %v1525_v8 = vor.u32 4788187, %v1524_v3  ;;  %v1521_v51 = vor.u32 %v1520_v1, %v1519_v41  ;;  %v3211_v47 = vsub.s32 4, %v7368_v36 }
 0x33e   : > { %v4383_v38 = vmin.f32 %v4375_v24, 31.0  ;;  %v4431_v15 = vmin.f32 %v4423_v16, 31.0  ;;  %v4447_v13 = vrot.slane %v4311_v55, 7  ;;  %vm1448_vm12 = vcmp.lt.s32.totalorder %v7071_v27, 0 }
 0x33f   : > { %vm4925_vm2 = vcmp.lt.s32.totalorder %v4924_v25, 0  ;;  %v1526_v14 = vand.u32 2147483647, %v1525_v8  ;;  %v1528_v37 = vcvt.s32.f32 %v1521_v51  ;;  %v3212_v55 = vsel %vm3127_vm4, %v3211_v47, %v7368_v36 }
 0x340   : > { %v4471_v40 = vrot.slane %v4383_v38, 6  ;;  %v4495_v4 = vrot.slane %v4431_v15, 5  ;;  %v4593_v21 = vsel %vm4587_vm5, %v4222_v30, %v4447_v13  ;;  %v3196_v9 = vsel %vm4925_vm2, 0, %v4924_v25 }
 0x341   : > { %v3197_v60 = vsub.s32 32, %v3196_v9  ;;  %v3201_v54 = vsub.s32 4294967266, %v3196_v9  ;;  %v3198_v49 = vshll.u32 %v3189_v35, %v3196_v9  ;;  %v1529_v31 = vmul.f32 %v1528_v37, %v1526_v14 }
 0x342   : > { %v4602_v62 = vsel %vm4596_vm6, %v4593_v21, %v4471_v40  ;;  %v7563_v24 = vand.u32 2147483647, %v7071_v27  ;;  %v3214_v23 = vsel %vm3126_vm1, 0, %v3212_v55  ;;  %v1532_v30 = vsub.s32 4, %v7315_v53 }
 0x343   : > { %v4611_v2 = vsel %vm4605_vm7, %v4602_v62, %v4495_v4  ;;  %v3199_v19 = vshrl.u32 %v3181_v17, %v3197_v60  ;;  %v3202_v50 = vadd.s32 127, %v3201_v54  ;;  %v1530_v34 = vxor.u32 2147483648, %v1529_v31 }
 0x344   : > { %v4620_v11 = vsel %vm4614_vm8, %v4611_v2, %v4519_v59  ;;  %vm7398_vm0 = vcmp.le.f32.partialorder %v7563_v24, 0.7853982  ;;  %v4043_v22 = vand.u32 3, %v3214_v23  ;;  %v1533_v29 = vsel %vm1448_vm12, %v1532_v30, %v7315_v53 }
 0x345   : > { %v4629_v26 = vsel %vm4623_vm9, %v4620_v11, %v4556_v61  ;;  %v3200_v46 = vor.u32 %v3199_v19, %v3198_v49  ;;  %v3203_v18 = vshll.u32 %v3202_v50, 23  ;;  %v1531_v5 = vsel %vm1448_vm12, %v1530_v34, %v1529_v31 }
 0x346   : > { %v4638_v6 = vsel %vm7562_vm14, %v4629_v26, %v4576_v42  ;;  %v1534_v44 = vsel %vm7398_vm0, %v7071_v27, %v1531_v5  ;;  %vm4048_vm11 = vcmp.eq.s32.totalorder %v4043_v22, 2  ;;  %vm4045_vm13 = vcmp.eq.s32.totalorder %v4043_v22, 0 }
 0x347   : > { %4646 = vst [vmem:[%s6066_s21 + $0x28] sm:$0xff] %v4638_v6  ;;  %v3204_v63 = vor.u32 4788187, %v3203_v18  ;;  %v3207_v57 = vcvt.s32.f32 %v3200_v46  ;;  %vm4044_vm10 = vcmp.lt.s32.totalorder %v4043_v22, 2  ;;  %vm3217_vm3 = vweird.f32 %v7137_v39  ;;  %v610_v22 = vpop.f32.mrf.mxu1 }
 0x348   : > { %v3218_v40 = vadd.s32 3, %v3214_v23  ;;  %v1535_v21 = vsel %vm7398_vm0, 0, %v1533_v29  ;;  %v700_v53 = vmax.f32 %v6839_v52, 0.0  ;;  %v4191_v46 = vsub.s32 7, %v5783_v33 }
 0x349   : > { %v3205_v12 = vand.u32 2147483647, %v3204_v63  ;;  %v2370_v59 = vadd.s32 3, %v1535_v21  ;;  %v1539_v17 = vand.u32 3, %v1535_v21  ;;  %v628_v23 = vrot.slane %v6672_v45, 7 }
 0x34a   : > { %v3219_v43 = vand.u32 3, %v3218_v40  ;;  %v708_v42 = vmin.f32 %v700_v53, 1.0  ;;  %v4192_v31 = vrot.slane %v7110_v56, %v4191_v46 }
 0x34b   : > { %v3208_v20 = vmul.f32 %v3207_v57, %v3205_v12  ;;  %v2371_v9 = vand.u32 3, %v2370_v59  ;;  %vm1541_vm14 = vcmp.eq.s32.totalorder %v1539_v17, 0 }
 0x34c   : > { %vm3221_vm2 = vcmp.eq.s32.totalorder %v3219_v43, 0  ;;  %vm3224_vm15 = vcmp.eq.s32.totalorder %v3219_v43, 2  ;;  %v4084_v8 = vmul.f32 5.0, %v708_v42 }
 0x34d   : > { %v3209_v7 = vxor.u32 2147483648, %v3208_v20  ;;  %vm2373_vm12 = vcmp.eq.s32.totalorder %v2371_v9, 0  ;;  %vm2376_vm0 = vcmp.eq.s32.totalorder %v2371_v9, 2 }
 0x34f   : > { %v3210_v35 = vsel %vm3127_vm4, %v3209_v7, %v3208_v20  ;;  %vm3220_vm4 = vcmp.lt.s32.totalorder %v3219_v43, 2  ;;  %v4143_v20 = vrot.slane %v4084_v8, 3 }
 0x350   : > { %v3213_v48 = vsel %vm3126_vm1, %v7137_v39, %v3210_v35  ;;  %vm1544_vm1 = vcmp.eq.s32.totalorder %v1539_v17, 2  ;;  %v4281_v39 = vrot.slane %v7157_v10, %v4191_v46  ;;  %v611_v10 = vadd.f32 %v610_v22, %v5695_v28 }
 0x351   : > { %5220 = vcosq.f32 %v3213_v48  ;;  %v4560_v28 = vrot.slane %v6672_v45, 2 }
 0x352   : > { %5222 = vsinq.f32 %v3213_v48  ;;  %v4561_v43 = vrot.slane %v611_v10, 2 }
 0x353   : > { %5224 = vcosq.f32 %v1534_v44 }
 0x354   : > { %5226 = vsinq.f32 %v1534_v44 }
 0x35e   : > { %v5221_v38 = vpop.eup %5220 }
 0x35f   : > { %v5223_v15 = vpop.eup %5222  ;;  %v3225_v13 = vxor.u32 2147483648, %v5221_v38 }
 0x360   : > { %v3222_v36 = vxor.u32 2147483648, %v5223_v15  ;;  %v5225_v62 = vpop.eup %5224 }
 0x361   : > { %v4050_v0 = vsel %vm4048_vm11, %v3225_v13, %v5223_v15  ;;  %v5227_v32 = vpop.eup %5226  ;;  %v1545_v3 = vxor.u32 2147483648, %v5225_v62  ;;  %v3226_v54 = vsel %vm3224_vm15, %v3225_v13, %v5223_v15  ;;  %vm1540_vm11 = vcmp.lt.s32.totalorder %v1539_v17, 2 }
 0x362   : > { %v4047_v25 = vsel %vm4045_vm13, %v5221_v38, %v3222_v36  ;;  %v1542_v2 = vxor.u32 2147483648, %v5227_v32  ;;  %v3223_v60 = vsel %vm3221_vm2, %v5221_v38, %v3222_v36  ;;  %vm2372_vm13 = vcmp.lt.s32.totalorder %v2371_v9, 2 }
 0x363   : > { %v4051_v4 = vsel %vm4044_vm10, %v4047_v25, %v4050_v0  ;;  %v3227_v61 = vsel %vm3220_vm4, %v3223_v60, %v3226_v54  ;;  %v1546_v1 = vsel %vm1544_vm1, %v1545_v3, %v5227_v32  ;;  %v2378_v49 = vsel %vm2376_vm0, %v1545_v3, %v5227_v32 }
 0x364   : > { %v4052_v58 = vsel %vm3217_vm3, nan, %v4051_v4  ;;  %v1543_v11 = vsel %vm1541_vm14, %v5225_v62, %v1542_v2  ;;  %v2375_v26 = vsel %vm2373_vm12, %v5225_v62, %v1542_v2  ;;  %v3228_v19 = vsel %vm3217_vm3, nan, %v3227_v61 }
 0x365   : > { %5228 = vrcp.f32 %v4052_v58  ;;  %v1547_v50 = vsel %vm1540_vm11, %v1543_v11, %v1546_v1  ;;  %v2379_v6 = vsel %vm2372_vm13, %v2375_v26, %v2378_v49  ;;  %vm1538_vm10 = vweird.f32 %v7071_v27 }
 0x366   : > { %v1548_v63 = vsel %vm1538_vm10, nan, %v1547_v50  ;;  %v2380_v14 = vsel %vm1538_vm10, nan, %v2379_v6  ;;  %v644_v0 = vsub.f32 %v6672_v45, %v628_v23  ;;  %v4578_v9 = vrot.slane %v6672_v45, 5 }
 0x367   : > { %vm7566_vm3 = vcmask 1045504  }
 0x368   : > { %v4521_v32 = vrot.slane %v644_v0, 2  ;;  %v4562_v2 = vsel %vm7566_vm3, %v4560_v28, %v4561_v43 }
 0x372   : > { %v5229_v52 = vpop.eup %5228 }
 0x373   : > { %v4068_v41 = vmul.f32 %v5229_v52, %v3228_v19 }
 0x375   : > { %v4076_v18 = vsub.f32 0.0, %v4068_v41  ;;  %v4103_v51 = vrot.slane %v4068_v41, 1 }
 0x377   : > { %v4119_v12 = vmul.f32 %v4103_v51, %v2380_v14  ;;  %v4232_v57 = vmul.f32 %v4103_v51, %v1548_v63  ;;  %v4329_v37 = vrot.slane %v4076_v18, 2 }
 0x379   : > { %v4127_v7 = vsub.f32 %v1548_v63, %v4119_v12  ;;  %v4240_v35 = vadd.f32 %v4232_v57, %v2380_v14  ;;  %v4345_v48 = vmul.f32 %v4329_v37, %v2380_v14  ;;  %v4393_v34 = vmul.f32 %v4329_v37, %v1548_v63 }
 0x37b   : > { %v4159_v47 = vmul.f32 %v4143_v20, %v4127_v7  ;;  %v4248_v33 = vmul.f32 %v4240_v35, %v4143_v20  ;;  %v4353_v5 = vsub.f32 %v1548_v63, %v4345_v48  ;;  %v4401_v27 = vadd.f32 %v4393_v34, %v2380_v14 }
 0x37d   : > { %v4208_v55 = vadd.f32 %v4192_v31, %v4159_v47  ;;  %v4297_v24 = vadd.f32 %v4281_v39, %v4248_v33  ;;  %v4361_v16 = vmul.f32 %v4353_v5, %v4143_v20  ;;  %v4409_v44 = vmul.f32 %v4401_v27, %v4143_v20 }
 0x37f   : > { %v4216_v30 = vmax.f32 %v4208_v55, 0.0  ;;  %v4305_v38 = vmax.f32 %v4297_v24, 0.0  ;;  %v4369_v56 = vadd.f32 %v4361_v16, %v4192_v31  ;;  %v4417_v15 = vadd.f32 %v4409_v44, %v4281_v39 }
 0x381   : > { %v4313_v13 = vmin.f32 %v4305_v38, 31.0  ;;  %v4377_v36 = vmax.f32 %v4369_v56, 0.0  ;;  %v4425_v29 = vmax.f32 %v4417_v15, 0.0  ;;  %v4224_v25 = vmin.f32 %v4216_v30, 31.0 }
 0x383   : > { %v4385_v40 = vmin.f32 %v4377_v36, 31.0  ;;  %v4433_v4 = vmin.f32 %v4425_v29, 31.0  ;;  %v4449_v21 = vrot.slane %v4313_v13, 7 }
 0x385   : > { %v4473_v58 = vrot.slane %v4385_v40, 6  ;;  %v4497_v59 = vrot.slane %v4433_v4, 5  ;;  %v4595_v62 = vsel %vm4587_vm5, %v4224_v25, %v4449_v21  ;;  %vm7567_vm5 = vcmask 1046528  }
 0x387   : > { %v4604_v53 = vsel %vm4596_vm6, %v4595_v62, %v4473_v58 }
 0x388   : > { %v4613_v17 = vsel %vm4605_vm7, %v4604_v53, %v4497_v59 }
 0x389   : > { %v4622_v3 = vsel %vm4614_vm8, %v4613_v17, %v4521_v32 }
 0x38a   : > { %v4631_v60 = vsel %vm4623_vm9, %v4622_v3, %v4562_v2 }
 0x38b   : > { %v4640_v54 = vsel %vm7567_vm5, %v4631_v60, %v4578_v9 }
 0x38c   : > { %4648 = vst [vmem:[%s6066_s21 + $0x38] sm:$0xff] %v4640_v54 }
 0x38d   : > { %5301 = shalt.err (!%p5298_p6)
}
 0x38e   : > { %s5302_s21 = scalar_lea.hbm %s7435_s11, 1024  ;;  %s5306_s10 = scalar_lea.hbm %s7483_s4, 2048 }
 0x38f   : > { %p5303_p4 = scmp.ne.s32.totalorder %s7435_s11, %s5302_s21  ;;  %p5307_p0 = scmp.lt.s32.totalorder %s7435_s11, %s7483_s4 }
 0x390   : > { %p5308_p3 = scmp.lt.s32.totalorder %s5306_s10, %s5302_s21 }
 0x391   : > { %p5304_p9 = pnand %p5303_p4, %p5496_p13 }
 0x392   : > { %p5309_p1 = por %p5308_p3, %p5307_p0 }
 0x393   : > { %p5305_p12 = pneg %p5304_p9 }
 0x395   : > { %p5310_p8 = pnand %p5309_p1, %p5305_p12 }
 0x397   : > { %5313 = shalt.err (!%p5310_p8)
}
 0x398   : > { %5038 = dma.vmem_to_hbm [thread:$0]  (%p5496_p13), %s4667_s6, 1024, %s7435_s11, %s4650_s18  }
 0x399 PF: > { %s4678_s27 = sand.u32 1, %s5352_s15   ;;  %p7568_p11 = scmp.ne.s32.totalorder %s7505_s26, 0 }
 0x39a   : > { %s4679_s30 = scalar_lea.sflag [#allocation4], %s4678_s27 }
 0x39b   : > { %p5049_p2 = pnand %p4780_p10, %p7568_p11 }
 0x39d   : > { %p5050_p5 = pneg %p5049_p2 }
 0x39f   : > { %5347 = dma.done.wait (%p5050_p5), %s4679_s30, 1024  }
 0x3a0   : > { %5349 = vsyncadd (%p5050_p5), %s4679_s30, 4294966272  ;;  %s21_s20 = sadd.s32 1, %s5372_s20   ;;  %s7569_s15 = smov %s5356_s16 }
 0x3a1   : > { %p18_p7 = scmp.ge.s32.totalorder %s21_s20, 4   ;;  %s7570_s16 = smov %s5360_s17 }
 0x3a2   : > { %s7571_s17 = smov %s5505_s22  ;;  %s7572_s18 = smov %s5368_s19 }
 0x3a3   : > { %s7573_s19 = smov %s7575_s5  ;;  %20 = sbr.rel (!%p18_p7) target bundleno = 7 (0x7), region = 89 }
 0x3a8   :  { %4684 = vsyncpa [#allocation3], 1 }
 0x3a9   :  { %4686 = vsyncpa [#allocation3 + $0x1], 1 }
 0x3aa   :  { %4687 = vsyncpa [#allocation6], 1 }
 0x3ab   :  { %4688 = vsyncpa [#allocation4], 1 }
 0x3ac   :  { %4690 = vsyncpa [#allocation4 + $0x1], 1 }

</bundles_post_ra>
